<compile_context>
chip_gen: v6e
topology: v6e:2x2x1
jax: 0.10.0
libtpu: 0.0.40
codegen_flags: <defaults>
</compile_context>

<pallas_src>
import functools

import jax
import jax.numpy as jnp
from jax.experimental import pallas as pl
from jax.experimental.pallas import tpu as pltpu


# ----------------------------------------------------------------------------
# In-kernel helpers (operate on traced values)
# ----------------------------------------------------------------------------
def _layer_norm(x, gamma, beta, eps):
    """LayerNorm over the last dim.  x:(S,E)  gamma,beta:(1,E)."""
    mean = jnp.mean(x, axis=-1, keepdims=True)
    var = jnp.mean(jnp.square(x - mean), axis=-1, keepdims=True)
    return (x - mean) * jax.lax.rsqrt(var + eps) * gamma + beta


def _multi_head_attention(q, k, v, mask, wo, bo, head_num, head_dim, inv_scale):
    """Multi-head attention + output projection, fused.

    q:(Sq,E) k,v:(Sk,E) mask:(Sq,Sk) wo:(E,E) bo:(1,E) -> (Sq,E).
    Each head's (Sq, hd) output is pushed straight through its row-slice of
    the output projection and accumulated into a lane-dense (Sq, E) buffer,
    so no per-head tensor is concatenated / stored.
    """
    Sq, E = q.shape
    acc = jnp.zeros((Sq, E), jnp.float32)
    for h in range(head_num):                         # static unroll (H small)
        lo, hi = h * head_dim, (h + 1) * head_dim
        qh, kh, vh = q[:, lo:hi], k[:, lo:hi], v[:, lo:hi]
        # scores = qh @ kh^T without materializing a transpose of kh
        s = jax.lax.dot_general(qh, kh, (((1,), (1,)), ((), ())),
                                preferred_element_type=jnp.float32)   # (Sq,Sk)
        # masked_fill(mask == 0, -1e20) BEFORE scaling, as in the torch code
        s = jnp.where(mask == 0.0, jnp.float32(-1e20), s)
        s = s * inv_scale                                             # /sqrt(E)
        s = s - jnp.max(s, axis=-1, keepdims=True)
        p = jnp.exp(s)
        p = p * pl.reciprocal(jnp.sum(p, axis=-1, keepdims=True), approx=True)
        oh = jnp.dot(p, vh, preferred_element_type=jnp.float32)       # (Sq,hd)
        acc = acc + jnp.dot(oh, wo[lo:hi, :],
                            preferred_element_type=jnp.float32)       # (Sq,E)
    return acc + bo


# ----------------------------------------------------------------------------
# Kernels
# ----------------------------------------------------------------------------
def _embed_kernel(seq_ref, w_ref, b_ref, pos_ref, o_ref):
    """feature_embedding(seq) + position_embedding, one batch element."""
    y = jnp.dot(seq_ref[...].astype(jnp.float32), w_ref[...],
                preferred_element_type=jnp.float32)
    o_ref[...] = (y + b_ref[...] + pos_ref[...]).astype(o_ref.dtype)


def _linear_kernel(x_ref, w_ref, b_ref, o_ref):
    """y = x @ w + b.  x:(tm,K) w:(K,N) b:(1,N)."""
    y = jnp.dot(x_ref[...], w_ref[...], preferred_element_type=jnp.float32)
    o_ref[...] = (y + b_ref[...]).astype(o_ref.dtype)


def _decoder_block_kernel(
    # activations / masks
    x_ref, enc_ref, outm_ref, inm_ref,
    # masked self-attention (fused QKV) + LayerNorm
    sa_wqkv_ref, sa_bqkv_ref, sa_wo_ref, sa_bo_ref, ln_g_ref, ln_b_ref,
    # cross-attention (fused KV) + LayerNorm
    ca_wq_ref, ca_bq_ref, ca_wkv_ref, ca_bkv_ref, ca_wo_ref, ca_bo_ref,
    ln1_g_ref, ln1_b_ref,
    # feed-forward + LayerNorm
    w1_ref, b1_ref, w2_ref, b2_ref, ln2_g_ref, ln2_b_ref,
    # output
    o_ref,
    *, head_num, inv_scale, eps):
    """One full DecoderBlock for one batch element (dropout = identity)."""
    E = x_ref.shape[-1]
    hd = E // head_num

    x = x_ref[...].astype(jnp.float32)        # (S, E)
    enc = enc_ref[...].astype(jnp.float32)    # (S_enc, E)
    outm = outm_ref[...]                      # (S, S)
    inm = inm_ref[...]                        # (S, S_enc)

    # ---- masked self-attention (q = k = v = x), fused QKV projection -------
    qkv = jnp.dot(x, sa_wqkv_ref[...], preferred_element_type=jnp.float32)
    qkv = qkv + sa_bqkv_ref[...]                               # (S, 3E)
    q, k, v = qkv[:, :E], qkv[:, E:2 * E], qkv[:, 2 * E:]
    att = _multi_head_attention(q, k, v, outm, sa_wo_ref[...], sa_bo_ref[...],
                                head_num, hd, inv_scale)
    query = _layer_norm(att + x, ln_g_ref[...], ln_b_ref[...], eps)

    # ---- cross-attention (q = query, k = v = encoder_output) ---------------
    qc = jnp.dot(query, ca_wq_ref[...], preferred_element_type=jnp.float32)
    qc = qc + ca_bq_ref[...]
    kv = jnp.dot(enc, ca_wkv_ref[...], preferred_element_type=jnp.float32)
    kv = kv + ca_bkv_ref[...]                                  # (S_enc, 2E)
    kc, vc = kv[:, :E], kv[:, E:]
    att2 = _multi_head_attention(qc, kc, vc, inm, ca_wo_ref[...],
                                 ca_bo_ref[...], head_num, hd, inv_scale)
    x1 = _layer_norm(att2 + query, ln1_g_ref[...], ln1_b_ref[...], eps)

    # ---- feed-forward -------------------------------------------------------
    h = jnp.dot(x1, w1_ref[...], preferred_element_type=jnp.float32)
    h = jnp.maximum(h + b1_ref[...], 0.0)                      # (S, 4E)
    ff = jnp.dot(h, w2_ref[...], preferred_element_type=jnp.float32)
    ff = ff + b2_ref[...]
    o_ref[...] = _layer_norm(x1 + ff, ln2_g_ref[...], ln2_b_ref[...],
                             eps).astype(o_ref.dtype)


# ----------------------------------------------------------------------------
# Pallas-call wrappers
# ----------------------------------------------------------------------------
def embed(seq, w_emb, b_emb, pos):
    """seq:(B,S,F) -> (B,S,E) with positional embedding added."""
    B, S, F = seq.shape
    E = w_emb.shape[1]
    return pl.pallas_call(
        _embed_kernel,
        out_shape=jax.ShapeDtypeStruct((B, S, E), jnp.float32),
        grid=(B,),
        in_specs=[
            pl.BlockSpec((pl.Squeezed(), S, F), lambda b: (b, 0, 0)),
            pl.BlockSpec((F, E), lambda b: (0, 0)),
            pl.BlockSpec((1, E), lambda b: (0, 0)),
            pl.BlockSpec((S, E), lambda b: (0, 0)),
        ],
        out_specs=pl.BlockSpec((pl.Squeezed(), S, E), lambda b: (b, 0, 0)),
        compiler_params=pltpu.CompilerParams(dimension_semantics=("parallel",)),
    )(seq, w_emb, b_emb, pos)


def linear(x2d, w, b2d):
    """x2d:(M,K) @ w:(K,N) + b:(1,N) -> (M,N)."""
    M, K = x2d.shape
    N = w.shape[1]
    tm = M if M <= 512 else (512 if M % 512 == 0 else M)   # largest row tile
    return pl.pallas_call(
        _linear_kernel,
        out_shape=jax.ShapeDtypeStruct((M, N), x2d.dtype),
        grid=(M // tm,),
        in_specs=[
            pl.BlockSpec((tm, K), lambda i: (i, 0)),
            pl.BlockSpec((K, N), lambda i: (0, 0)),
            pl.BlockSpec((1, N), lambda i: (0, 0)),
        ],
        out_specs=pl.BlockSpec((tm, N), lambda i: (i, 0)),
        compiler_params=pltpu.CompilerParams(dimension_semantics=("parallel",)),
    )(x2d, w, b2d)


def decoder_block(p, x, enc, in_mask2d, out_mask2d, head_num):
    """One fused DecoderBlock.  x:(B,S,E) enc:(B,S_enc,E) masks:(Sq,Sk)."""
    B, S, E = x.shape
    S_enc = enc.shape[1]
    kernel = functools.partial(
        _decoder_block_kernel,
        head_num=head_num,
        inv_scale=float(1.0 / (E ** 0.5)),
        eps=1e-5,
    )
    weights = (
        p["sa_wqkv"], p["sa_bqkv"], p["sa_wo"], p["sa_bo"], p["ln_g"], p["ln_b"],
        p["ca_wq"], p["ca_bq"], p["ca_wkv"], p["ca_bkv"], p["ca_wo"], p["ca_bo"],
        p["ln1_g"], p["ln1_b"],
        p["w1"], p["b1"], p["w2"], p["b2"], p["ln2_g"], p["ln2_b"],
    )
    rep = lambda b: (0, 0)  # same block every grid step -> stays resident
    in_specs = [
        pl.BlockSpec((pl.Squeezed(), S, E), lambda b: (b, 0, 0)),       # x
        pl.BlockSpec((pl.Squeezed(), S_enc, E), lambda b: (b, 0, 0)),   # enc
        pl.BlockSpec((S, S), rep),                                      # out mask
        pl.BlockSpec((S, S_enc), rep),                                  # in mask
    ] + [pl.BlockSpec(tuple(w.shape), rep) for w in weights]
    return pl.pallas_call(
        kernel,
        out_shape=jax.ShapeDtypeStruct((B, S, E), jnp.float32),
        grid=(B,),
        in_specs=in_specs,
        out_specs=pl.BlockSpec((pl.Squeezed(), S, E), lambda b: (b, 0, 0)),
        compiler_params=pltpu.CompilerParams(dimension_semantics=("parallel",)),
    )(x, enc, out_mask2d, in_mask2d, *weights)


# ----------------------------------------------------------------------------
# Forward pass (jitted)
# ----------------------------------------------------------------------------
@functools.partial(jax.jit, static_argnums=(5,))
def decoder_forward(params, seq, encoder_output, input_mask, output_mask,
                    head_num):
    B, S, F = seq.shape
    E = params["w_emb"].shape[1]
    S_enc = encoder_output.shape[1]

    # TODO(synk): masks are assumed broadcastable over batch & heads
    # (shape (1,1,Sq,Sk)); batch-dependent padding masks would need a batch dim.
    out_m = output_mask.astype(jnp.float32).reshape(S, S)
    in_m = input_mask.astype(jnp.float32).reshape(S, S_enc)

    x = embed(seq, params["w_emb"], params["b_emb"], params["pos_emb"][:S])
    for lp in params["layers"]:
        x = decoder_block(lp, x, encoder_output, in_m, out_m, head_num)

    out = linear(x.reshape(B * S, E), params["w_fc"], params["b_fc"])
    return out.reshape(B, S, F)


# ----------------------------------------------------------------------------
# Deterministic parameter initialization (fused QKV / KV layouts)
# ----------------------------------------------------------------------------
def _lin_init(key, fan_in, fan_out):
    k1, k2 = jax.random.split(key)
    w = jax.random.normal(k1, (fan_in, fan_out), jnp.float32) * 0.05
    b = jax.random.normal(k2, (1, fan_out), jnp.float32) * 0.01
    return w, b


def init_decoder_params(key, target_feature, embed_dim, num_layer,
                        expansion_dim, seq_len):
    E = embed_dim
    keys = jax.random.split(key, 3 + num_layer)
    params = {
        "pos_emb": jax.random.normal(keys[1], (seq_len, E), jnp.float32) * 0.05,
    }
    params["w_emb"], params["b_emb"] = _lin_init(keys[0], target_feature, E)
    params["w_fc"], params["b_fc"] = _lin_init(keys[2], E, target_feature)

    layers = []
    for li in range(num_layer):
        lk = jax.random.split(keys[3 + li], 10)
        wq, bq = _lin_init(lk[0], E, E)
        wk, bk = _lin_init(lk[1], E, E)
        wv, bv = _lin_init(lk[2], E, E)
        wo, bo = _lin_init(lk[3], E, E)
        cwq, cbq = _lin_init(lk[4], E, E)
        cwk, cbk = _lin_init(lk[5], E, E)
        cwv, cbv = _lin_init(lk[6], E, E)
        cwo, cbo = _lin_init(lk[7], E, E)
        w1, b1 = _lin_init(lk[8], E, expansion_dim * E)
        w2, b2 = _lin_init(lk[9], expansion_dim * E, E)
        layers.append({
            # masked self-attention: fused [q|k|v]
            "sa_wqkv": jnp.concatenate([wq, wk, wv], axis=1),
            "sa_bqkv": jnp.concatenate([bq, bk, bv], axis=1),
            "sa_wo": wo, "sa_bo": bo,
            "ln_g": jnp.ones((1, E), jnp.float32),
            "ln_b": jnp.zeros((1, E), jnp.float32),
            # cross-attention: q separate, fused [k|v] on the encoder side
            "ca_wq": cwq, "ca_bq": cbq,
            "ca_wkv": jnp.concatenate([cwk, cwv], axis=1),
            "ca_bkv": jnp.concatenate([cbk, cbv], axis=1),
            "ca_wo": cwo, "ca_bo": cbo,
            "ln1_g": jnp.ones((1, E), jnp.float32),
            "ln1_b": jnp.zeros((1, E), jnp.float32),
            # feed-forward
            "w1": w1, "b1": b1, "w2": w2, "b2": b2,
            "ln2_g": jnp.ones((1, E), jnp.float32),
            "ln2_b": jnp.zeros((1, E), jnp.float32),
        })
    params["layers"] = layers
    return params


# ----------------------------------------------------------------------------
# Harness
# ----------------------------------------------------------------------------
if __name__ == "__main__":
    B = 2            # batch
    S = 8            # decoder sequence length
    S_ENC = 8        # encoder sequence length
    F = 8            # target_feature
    E = 32           # embed_dim
    H = 4            # head_num
    NUM_LAYER = 2
    EXPANSION = 4
    SEQ_LEN = 8      # size of the position-embedding table

    root = jax.random.PRNGKey(0)
    k_param, k_seq, k_enc = jax.random.split(root, 3)

    params = init_decoder_params(k_param, F, E, NUM_LAYER, EXPANSION, SEQ_LEN)

    seq = jax.random.normal(k_seq, (B, S, F), jnp.float32)
    encoder_output = jax.random.normal(k_enc, (B, S_ENC, E), jnp.float32)

    # output_mask: causal (decoder self-attention); input_mask: no padding
    output_mask = jnp.tril(jnp.ones((S, S), jnp.float32))[None, None]   # (1,1,S,S)
    input_mask = jnp.ones((1, 1, S, S_ENC), jnp.float32)

    out = decoder_forward(params, seq, encoder_output, input_mask,
                          output_mask, H)
    out = jax.block_until_ready(out)

    assert out.shape == (B, S, F), out.shape
    assert jnp.all(jnp.isfinite(out))
    print("KERNEL_OK")
</pallas_src>

<mosaic_0001>
module attributes {stable_mosaic.version = 11 : i64} {
  func.func @_embed_kernel(%arg0: i32, %arg1: memref<1x8x8xf32, #tpu.memory_space<vmem>>, %arg2: memref<8x32xf32, #tpu.memory_space<vmem>>, %arg3: memref<1x32xf32, #tpu.memory_space<vmem>>, %arg4: memref<8x32xf32, #tpu.memory_space<vmem>>, %arg5: memref<1x8x32xf32, #tpu.memory_space<vmem>>) attributes {dimension_semantics = [#tpu.dimension_semantics<parallel>], iteration_bounds = array<i64: 2>, scalar_prefetch = 0 : i64, scratch_operands = 0 : i64, tpu.core_type = #tpu.core_type<tc>, window_params = [{transform_indices = @transform_0, window_bounds = array<i64: 1, 8, 8>}, {pipeline_mode = #tpu.pipeline_mode<synchronous>, transform_indices = @transform_1, window_bounds = array<i64: 8, 32>}, {pipeline_mode = #tpu.pipeline_mode<synchronous>, transform_indices = @transform_2, window_bounds = array<i64: 1, 32>}, {pipeline_mode = #tpu.pipeline_mode<synchronous>, transform_indices = @transform_3, window_bounds = array<i64: 8, 32>}, {transform_indices = @transform_4, window_bounds = array<i64: 1, 8, 32>}]} {
    %c0 = arith.constant 0 : index
    %c0_0 = arith.constant 0 : index
    %c0_1 = arith.constant 0 : index
    %0 = vector.load %arg1[%c0, %c0_0, %c0_1] : memref<1x8x8xf32, #tpu.memory_space<vmem>>, vector<1x8x8xf32>
    %1 = vector.shape_cast %0 : vector<1x8x8xf32> to vector<8x8xf32>
    %c0_2 = arith.constant 0 : index
    %c0_3 = arith.constant 0 : index
    %2 = vector.load %arg2[%c0_2, %c0_3] : memref<8x32xf32, #tpu.memory_space<vmem>>, vector<8x32xf32>
    %cst = arith.constant dense<0.000000e+00> : vector<8x32xf32>
    %3 = tpu.matmul %1, %2, %cst {dimension_numbers = #tpu.dot_dimension_numbers<[1], [0], [0], [1], [0, 0, 1, 1], [], []>} : vector<8x8xf32>, vector<8x32xf32>, vector<8x32xf32> -> vector<8x32xf32>
    %c0_4 = arith.constant 0 : index
    %c0_5 = arith.constant 0 : index
    %4 = vector.load %arg3[%c0_4, %c0_5] : memref<1x32xf32, #tpu.memory_space<vmem>>, vector<1x32xf32>
    %5 = vector.broadcast %4 : vector<1x32xf32> to vector<8x32xf32>
    %6 = arith.addf %3, %5 : vector<8x32xf32>
    %c0_6 = arith.constant 0 : index
    %c0_7 = arith.constant 0 : index
    %7 = vector.load %arg4[%c0_6, %c0_7] : memref<8x32xf32, #tpu.memory_space<vmem>>, vector<8x32xf32>
    %8 = arith.addf %6, %7 : vector<8x32xf32>
    %c0_8 = arith.constant 0 : index
    %c0_9 = arith.constant 0 : index
    %c0_10 = arith.constant 0 : index
    %9 = vector.load %arg5[%c0_8, %c0_9, %c0_10] : memref<1x8x32xf32, #tpu.memory_space<vmem>>, vector<1x8x32xf32>
    %10 = vector.shape_cast %9 : vector<1x8x32xf32> to vector<8x32xf32>
    %11 = vector.shape_cast %8 : vector<8x32xf32> to vector<1x8x32xf32>
    tpu.vector_store %arg5[%c0_8, %c0_9, %c0_10], %11 {strides = array<i32>} : memref<1x8x32xf32, #tpu.memory_space<vmem>>, vector<1x8x32xf32>,
    return
  }
  func.func @transform_0(%arg0: i32) -> (i32, i32, i32) {
    %c0_i32 = arith.constant 0 : i32
    %c0_i32_0 = arith.constant 0 : i32
    %c0_i32_1 = arith.constant 0 : i32
    return %arg0, %c0_i32, %c0_i32_0 : i32, i32, i32
  }
  func.func @transform_1(%arg0: i32) -> (i32, i32) {
    %c0_i32 = arith.constant 0 : i32
    %c0_i32_0 = arith.constant 0 : i32
    %c0_i32_1 = arith.constant 0 : i32
    return %c0_i32, %c0_i32_0 : i32, i32
  }
  func.func @transform_2(%arg0: i32) -> (i32, i32) {
    %c0_i32 = arith.constant 0 : i32
    %c0_i32_0 = arith.constant 0 : i32
    %c0_i32_1 = arith.constant 0 : i32
    return %c0_i32, %c0_i32_0 : i32, i32
  }
  func.func @transform_3(%arg0: i32) -> (i32, i32) {
    %c0_i32 = arith.constant 0 : i32
    %c0_i32_0 = arith.constant 0 : i32
    %c0_i32_1 = arith.constant 0 : i32
    return %c0_i32, %c0_i32_0 : i32, i32
  }
  func.func @transform_4(%arg0: i32) -> (i32, i32, i32) {
    %c0_i32 = arith.constant 0 : i32
    %c0_i32_0 = arith.constant 0 : i32
    %c0_i32_1 = arith.constant 0 : i32
    return %arg0, %c0_i32, %c0_i32_0 : i32, i32, i32
  }
}

module attributes {stable_mosaic.version = 11 : i64} {
  func.func @_decoder_block_kernel(%arg0: i32, %arg1: memref<1x8x32xf32, #tpu.memory_space<vmem>>, %arg2: memref<1x8x32xf32, #tpu.memory_space<vmem>>, %arg3: memref<8x8xf32, #tpu.memory_space<vmem>>, %arg4: memref<8x8xf32, #tpu.memory_space<vmem>>, %arg5: memref<32x96xf32, #tpu.memory_space<vmem>>, %arg6: memref<1x96xf32, #tpu.memory_space<vmem>>, %arg7: memref<32x32xf32, #tpu.memory_space<vmem>>, %arg8: memref<1x32xf32, #tpu.memory_space<vmem>>, %arg9: memref<1x32xf32, #tpu.memory_space<vmem>>, %arg10: memref<1x32xf32, #tpu.memory_space<vmem>>, %arg11: memref<32x32xf32, #tpu.memory_space<vmem>>, %arg12: memref<1x32xf32, #tpu.memory_space<vmem>>, %arg13: memref<32x64xf32, #tpu.memory_space<vmem>>, %arg14: memref<1x64xf32, #tpu.memory_space<vmem>>, %arg15: memref<32x32xf32, #tpu.memory_space<vmem>>, %arg16: memref<1x32xf32, #tpu.memory_space<vmem>>, %arg17: memref<1x32xf32, #tpu.memory_space<vmem>>, %arg18: memref<1x32xf32, #tpu.memory_space<vmem>>, %arg19: memref<32x128xf32, #tpu.memory_space<vmem>>, %arg20: memref<1x128xf32, #tpu.memory_space<vmem>>, %arg21: memref<128x32xf32, #tpu.memory_space<vmem>>, %arg22: memref<1x32xf32, #tpu.memory_space<vmem>>, %arg23: memref<1x32xf32, #tpu.memory_space<vmem>>, %arg24: memref<1x32xf32, #tpu.memory_space<vmem>>, %arg25: memref<1x8x32xf32, #tpu.memory_space<vmem>>) attributes {dimension_semantics = [#tpu.dimension_semantics<parallel>], iteration_bounds = array<i64: 2>, scalar_prefetch = 0 : i64, scratch_operands = 0 : i64, tpu.core_type = #tpu.core_type<tc>, window_params = [{transform_indices = @transform_0, window_bounds = array<i64: 1, 8, 32>}, {transform_indices = @transform_1, window_bounds = array<i64: 1, 8, 32>}, {pipeline_mode = #tpu.pipeline_mode<synchronous>, transform_indices = @transform_2, window_bounds = array<i64: 8, 8>}, {pipeline_mode = #tpu.pipeline_mode<synchronous>, transform_indices = @transform_3, window_bounds = array<i64: 8, 8>}, {pipeline_mode = #tpu.pipeline_mode<synchronous>, transform_indices = @transform_4, window_bounds = array<i64: 32, 96>}, {pipeline_mode = #tpu.pipeline_mode<synchronous>, transform_indices = @transform_5, window_bounds = array<i64: 1, 96>}, {pipeline_mode = #tpu.pipeline_mode<synchronous>, transform_indices = @transform_6, window_bounds = array<i64: 32, 32>}, {pipeline_mode = #tpu.pipeline_mode<synchronous>, transform_indices = @transform_7, window_bounds = array<i64: 1, 32>}, {pipeline_mode = #tpu.pipeline_mode<synchronous>, transform_indices = @transform_8, window_bounds = array<i64: 1, 32>}, {pipeline_mode = #tpu.pipeline_mode<synchronous>, transform_indices = @transform_9, window_bounds = array<i64: 1, 32>}, {pipeline_mode = #tpu.pipeline_mode<synchronous>, transform_indices = @transform_10, window_bounds = array<i64: 32, 32>}, {pipeline_mode = #tpu.pipeline_mode<synchronous>, transform_indices = @transform_11, window_bounds = array<i64: 1, 32>}, {pipeline_mode = #tpu.pipeline_mode<synchronous>, transform_indices = @transform_12, window_bounds = array<i64: 32, 64>}, {pipeline_mode = #tpu.pipeline_mode<synchronous>, transform_indices = @transform_13, window_bounds = array<i64: 1, 64>}, {pipeline_mode = #tpu.pipeline_mode<synchronous>, transform_indices = @transform_14, window_bounds = array<i64: 32, 32>}, {pipeline_mode = #tpu.pipeline_mode<synchronous>, transform_indices = @transform_15, window_bounds = array<i64: 1, 32>}, {pipeline_mode = #tpu.pipeline_mode<synchronous>, transform_indices = @transform_16, window_bounds = array<i64: 1, 32>}, {pipeline_mode = #tpu.pipeline_mode<synchronous>, transform_indices = @transform_17, window_bounds = array<i64: 1, 32>}, {pipeline_mode = #tpu.pipeline_mode<synchronous>, transform_indices = @transform_18, window_bounds = array<i64: 32, 128>}, {pipeline_mode = #tpu.pipeline_mode<synchronous>, transform_indices = @transform_19, window_bounds = array<i64: 1, 128>}, {pipeline_mode = #tpu.pipeline_mode<synchronous>, transform_indices = @transform_20, window_bounds = array<i64: 128, 32>}, {pipeline_mode = #tpu.pipeline_mode<synchronous>, transform_indices = @transform_21, window_bounds = array<i64: 1, 32>}, {pipeline_mode = #tpu.pipeline_mode<synchronous>, transform_indices = @transform_22, window_bounds = array<i64: 1, 32>}, {pipeline_mode = #tpu.pipeline_mode<synchronous>, transform_indices = @transform_23, window_bounds = array<i64: 1, 32>}, {transform_indices = @transform_24, window_bounds = array<i64: 1, 8, 32>}]} {
    %c0 = arith.constant 0 : index
    %c0_0 = arith.constant 0 : index
    %c0_1 = arith.constant 0 : index
    %0 = vector.load %arg1[%c0, %c0_0, %c0_1] : memref<1x8x32xf32, #tpu.memory_space<vmem>>, vector<1x8x32xf32>
    %1 = vector.shape_cast %0 : vector<1x8x32xf32> to vector<8x32xf32>
    %c0_2 = arith.constant 0 : index
    %c0_3 = arith.constant 0 : index
    %c0_4 = arith.constant 0 : index
    %2 = vector.load %arg2[%c0_2, %c0_3, %c0_4] : memref<1x8x32xf32, #tpu.memory_space<vmem>>, vector<1x8x32xf32>
    %3 = vector.shape_cast %2 : vector<1x8x32xf32> to vector<8x32xf32>
    %c0_5 = arith.constant 0 : index
    %c0_6 = arith.constant 0 : index
    %4 = vector.load %arg3[%c0_5, %c0_6] : memref<8x8xf32, #tpu.memory_space<vmem>>, vector<8x8xf32>
    %c0_7 = arith.constant 0 : index
    %c0_8 = arith.constant 0 : index
    %5 = vector.load %arg4[%c0_7, %c0_8] : memref<8x8xf32, #tpu.memory_space<vmem>>, vector<8x8xf32>
    %c0_9 = arith.constant 0 : index
    %c0_10 = arith.constant 0 : index
    %6 = vector.load %arg5[%c0_9, %c0_10] : memref<32x96xf32, #tpu.memory_space<vmem>>, vector<32x96xf32>
    %cst = arith.constant dense<0.000000e+00> : vector<8x96xf32>
    %7 = tpu.matmul %1, %6, %cst {dimension_numbers = #tpu.dot_dimension_numbers<[1], [0], [0], [1], [0, 0, 1, 1], [], []>} : vector<8x32xf32>, vector<32x96xf32>, vector<8x96xf32> -> vector<8x96xf32>
    %c0_11 = arith.constant 0 : index
    %c0_12 = arith.constant 0 : index
    %8 = vector.load %arg6[%c0_11, %c0_12] : memref<1x96xf32, #tpu.memory_space<vmem>>, vector<1x96xf32>
    %9 = vector.broadcast %8 : vector<1x96xf32> to vector<8x96xf32>
    %10 = arith.addf %7, %9 : vector<8x96xf32>
    %11 = vector.extract_strided_slice %10 {offsets = [0, 0], sizes = [8, 32], strides = [1, 1]} : vector<8x96xf32> to vector<8x32xf32>
    %12 = vector.extract_strided_slice %10 {offsets = [0, 32], sizes = [8, 32], strides = [1, 1]} : vector<8x96xf32> to vector<8x32xf32>
    %13 = vector.extract_strided_slice %10 {offsets = [0, 64], sizes = [8, 32], strides = [1, 1]} : vector<8x96xf32> to vector<8x32xf32>
    %c0_13 = arith.constant 0 : index
    %c0_14 = arith.constant 0 : index
    %14 = vector.load %arg7[%c0_13, %c0_14] : memref<32x32xf32, #tpu.memory_space<vmem>>, vector<32x32xf32>
    %c0_15 = arith.constant 0 : index
    %c0_16 = arith.constant 0 : index
    %15 = vector.load %arg8[%c0_15, %c0_16] : memref<1x32xf32, #tpu.memory_space<vmem>>, vector<1x32xf32>
    %cst_17 = arith.constant 0.000000e+00 : f32
    %16 = vector.broadcast %cst_17 : f32 to vector<8x32xf32>
    %17 = vector.extract_strided_slice %11 {offsets = [0, 0], sizes = [8, 8], strides = [1, 1]} : vector<8x32xf32> to vector<8x8xf32>
    %18 = vector.extract_strided_slice %12 {offsets = [0, 0], sizes = [8, 8], strides = [1, 1]} : vector<8x32xf32> to vector<8x8xf32>
    %19 = vector.extract_strided_slice %13 {offsets = [0, 0], sizes = [8, 8], strides = [1, 1]} : vector<8x32xf32> to vector<8x8xf32>
    %cst_18 = arith.constant dense<0.000000e+00> : vector<8x8xf32>
    %20 = tpu.matmul %17, %18, %cst_18 {dimension_numbers = #tpu.dot_dimension_numbers<[1], [1], [0], [0], [0, 0, 1, 0], [], []>} : vector<8x8xf32>, vector<8x8xf32>, vector<8x8xf32> -> vector<8x8xf32>
    %cst_19 = arith.constant 0.000000e+00 : f32
    %21 = vector.broadcast %cst_19 : f32 to vector<8x8xf32>
    %22 = arith.cmpf oeq, %4, %21 : vector<8x8xf32>
    %cst_20 = arith.constant -1.000000e+20 : f32
    %23 = vector.broadcast %cst_20 : f32 to vector<8x8xf32>
    %24 = arith.select %22, %23, %20 : vector<8x8xi1>, vector<8x8xf32>
    %cst_21 = arith.constant 0.176776692 : f32
    %25 = vector.broadcast %cst_21 : f32 to vector<8x8xf32>
    %26 = arith.mulf %24, %25 : vector<8x8xf32>
    %cst_22 = arith.constant dense<0xFF800000> : vector<8xf32>
    %27 = vector.multi_reduction <maximumf>, %26, %cst_22 [1] : vector<8x8xf32> to vector<8xf32>
    %28 = vector.shape_cast %27 : vector<8xf32> to vector<8x1xf32>
    %29 = vector.broadcast %28 : vector<8x1xf32> to vector<8x8xf32>
    %30 = arith.subf %26, %29 : vector<8x8xf32>
    %31 = math.exp %30 : vector<8x8xf32>
    %cst_23 = arith.constant dense<0.000000e+00> : vector<8xf32>
    %32 = vector.multi_reduction <add>, %31, %cst_23 [1] : vector<8x8xf32> to vector<8xf32>
    %33 = vector.shape_cast %32 : vector<8xf32> to vector<8x1xf32>
    %34 = tpu.reciprocal %33 {approx = true} : vector<8x1xf32> -> vector<8x1xf32>
    %35 = vector.broadcast %34 : vector<8x1xf32> to vector<8x8xf32>
    %36 = arith.mulf %31, %35 : vector<8x8xf32>
    %cst_24 = arith.constant dense<0.000000e+00> : vector<8x8xf32>
    %37 = tpu.matmul %36, %19, %cst_24 {dimension_numbers = #tpu.dot_dimension_numbers<[1], [0], [0], [1], [0, 0, 1, 1], [], []>} : vector<8x8xf32>, vector<8x8xf32>, vector<8x8xf32> -> vector<8x8xf32>
    %38 = vector.extract_strided_slice %14 {offsets = [0, 0], sizes = [8, 32], strides = [1, 1]} : vector<32x32xf32> to vector<8x32xf32>
    %cst_25 = arith.constant dense<0.000000e+00> : vector<8x32xf32>
    %39 = tpu.matmul %37, %38, %cst_25 {dimension_numbers = #tpu.dot_dimension_numbers<[1], [0], [0], [1], [0, 0, 1, 1], [], []>} : vector<8x8xf32>, vector<8x32xf32>, vector<8x32xf32> -> vector<8x32xf32>
    %40 = arith.addf %16, %39 : vector<8x32xf32>
    %41 = vector.extract_strided_slice %11 {offsets = [0, 8], sizes = [8, 8], strides = [1, 1]} : vector<8x32xf32> to vector<8x8xf32>
    %42 = vector.extract_strided_slice %12 {offsets = [0, 8], sizes = [8, 8], strides = [1, 1]} : vector<8x32xf32> to vector<8x8xf32>
    %43 = vector.extract_strided_slice %13 {offsets = [0, 8], sizes = [8, 8], strides = [1, 1]} : vector<8x32xf32> to vector<8x8xf32>
    %cst_26 = arith.constant dense<0.000000e+00> : vector<8x8xf32>
    %44 = tpu.matmul %41, %42, %cst_26 {dimension_numbers = #tpu.dot_dimension_numbers<[1], [1], [0], [0], [0, 0, 1, 0], [], []>} : vector<8x8xf32>, vector<8x8xf32>, vector<8x8xf32> -> vector<8x8xf32>
    %cst_27 = arith.constant 0.000000e+00 : f32
    %45 = vector.broadcast %cst_27 : f32 to vector<8x8xf32>
    %46 = arith.cmpf oeq, %4, %45 : vector<8x8xf32>
    %cst_28 = arith.constant -1.000000e+20 : f32
    %47 = vector.broadcast %cst_28 : f32 to vector<8x8xf32>
    %48 = arith.select %46, %47, %44 : vector<8x8xi1>, vector<8x8xf32>
    %cst_29 = arith.constant 0.176776692 : f32
    %49 = vector.broadcast %cst_29 : f32 to vector<8x8xf32>
    %50 = arith.mulf %48, %49 : vector<8x8xf32>
    %cst_30 = arith.constant dense<0xFF800000> : vector<8xf32>
    %51 = vector.multi_reduction <maximumf>, %50, %cst_30 [1] : vector<8x8xf32> to vector<8xf32>
    %52 = vector.shape_cast %51 : vector<8xf32> to vector<8x1xf32>
    %53 = vector.broadcast %52 : vector<8x1xf32> to vector<8x8xf32>
    %54 = arith.subf %50, %53 : vector<8x8xf32>
    %55 = math.exp %54 : vector<8x8xf32>
    %cst_31 = arith.constant dense<0.000000e+00> : vector<8xf32>
    %56 = vector.multi_reduction <add>, %55, %cst_31 [1] : vector<8x8xf32> to vector<8xf32>
    %57 = vector.shape_cast %56 : vector<8xf32> to vector<8x1xf32>
    %58 = tpu.reciprocal %57 {approx = true} : vector<8x1xf32> -> vector<8x1xf32>
    %59 = vector.broadcast %58 : vector<8x1xf32> to vector<8x8xf32>
    %60 = arith.mulf %55, %59 : vector<8x8xf32>
    %cst_32 = arith.constant dense<0.000000e+00> : vector<8x8xf32>
    %61 = tpu.matmul %60, %43, %cst_32 {dimension_numbers = #tpu.dot_dimension_numbers<[1], [0], [0], [1], [0, 0, 1, 1], [], []>} : vector<8x8xf32>, vector<8x8xf32>, vector<8x8xf32> -> vector<8x8xf32>
    %62 = vector.extract_strided_slice %14 {offsets = [8, 0], sizes = [8, 32], strides = [1, 1]} : vector<32x32xf32> to vector<8x32xf32>
    %cst_33 = arith.constant dense<0.000000e+00> : vector<8x32xf32>
    %63 = tpu.matmul %61, %62, %cst_33 {dimension_numbers = #tpu.dot_dimension_numbers<[1], [0], [0], [1], [0, 0, 1, 1], [], []>} : vector<8x8xf32>, vector<8x32xf32>, vector<8x32xf32> -> vector<8x32xf32>
    %64 = arith.addf %40, %63 : vector<8x32xf32>
    %65 = vector.extract_strided_slice %11 {offsets = [0, 16], sizes = [8, 8], strides = [1, 1]} : vector<8x32xf32> to vector<8x8xf32>
    %66 = vector.extract_strided_slice %12 {offsets = [0, 16], sizes = [8, 8], strides = [1, 1]} : vector<8x32xf32> to vector<8x8xf32>
    %67 = vector.extract_strided_slice %13 {offsets = [0, 16], sizes = [8, 8], strides = [1, 1]} : vector<8x32xf32> to vector<8x8xf32>
    %cst_34 = arith.constant dense<0.000000e+00> : vector<8x8xf32>
    %68 = tpu.matmul %65, %66, %cst_34 {dimension_numbers = #tpu.dot_dimension_numbers<[1], [1], [0], [0], [0, 0, 1, 0], [], []>} : vector<8x8xf32>, vector<8x8xf32>, vector<8x8xf32> -> vector<8x8xf32>
    %cst_35 = arith.constant 0.000000e+00 : f32
    %69 = vector.broadcast %cst_35 : f32 to vector<8x8xf32>
    %70 = arith.cmpf oeq, %4, %69 : vector<8x8xf32>
    %cst_36 = arith.constant -1.000000e+20 : f32
    %71 = vector.broadcast %cst_36 : f32 to vector<8x8xf32>
    %72 = arith.select %70, %71, %68 : vector<8x8xi1>, vector<8x8xf32>
    %cst_37 = arith.constant 0.176776692 : f32
    %73 = vector.broadcast %cst_37 : f32 to vector<8x8xf32>
    %74 = arith.mulf %72, %73 : vector<8x8xf32>
    %cst_38 = arith.constant dense<0xFF800000> : vector<8xf32>
    %75 = vector.multi_reduction <maximumf>, %74, %cst_38 [1] : vector<8x8xf32> to vector<8xf32>
    %76 = vector.shape_cast %75 : vector<8xf32> to vector<8x1xf32>
    %77 = vector.broadcast %76 : vector<8x1xf32> to vector<8x8xf32>
    %78 = arith.subf %74, %77 : vector<8x8xf32>
    %79 = math.exp %78 : vector<8x8xf32>
    %cst_39 = arith.constant dense<0.000000e+00> : vector<8xf32>
    %80 = vector.multi_reduction <add>, %79, %cst_39 [1] : vector<8x8xf32> to vector<8xf32>
    %81 = vector.shape_cast %80 : vector<8xf32> to vector<8x1xf32>
    %82 = tpu.reciprocal %81 {approx = true} : vector<8x1xf32> -> vector<8x1xf32>
    %83 = vector.broadcast %82 : vector<8x1xf32> to vector<8x8xf32>
    %84 = arith.mulf %79, %83 : vector<8x8xf32>
    %cst_40 = arith.constant dense<0.000000e+00> : vector<8x8xf32>
    %85 = tpu.matmul %84, %67, %cst_40 {dimension_numbers = #tpu.dot_dimension_numbers<[1], [0], [0], [1], [0, 0, 1, 1], [], []>} : vector<8x8xf32>, vector<8x8xf32>, vector<8x8xf32> -> vector<8x8xf32>
    %86 = vector.extract_strided_slice %14 {offsets = [16, 0], sizes = [8, 32], strides = [1, 1]} : vector<32x32xf32> to vector<8x32xf32>
    %cst_41 = arith.constant dense<0.000000e+00> : vector<8x32xf32>
    %87 = tpu.matmul %85, %86, %cst_41 {dimension_numbers = #tpu.dot_dimension_numbers<[1], [0], [0], [1], [0, 0, 1, 1], [], []>} : vector<8x8xf32>, vector<8x32xf32>, vector<8x32xf32> -> vector<8x32xf32>
    %88 = arith.addf %64, %87 : vector<8x32xf32>
    %89 = vector.extract_strided_slice %11 {offsets = [0, 24], sizes = [8, 8], strides = [1, 1]} : vector<8x32xf32> to vector<8x8xf32>
    %90 = vector.extract_strided_slice %12 {offsets = [0, 24], sizes = [8, 8], strides = [1, 1]} : vector<8x32xf32> to vector<8x8xf32>
    %91 = vector.extract_strided_slice %13 {offsets = [0, 24], sizes = [8, 8], strides = [1, 1]} : vector<8x32xf32> to vector<8x8xf32>
    %cst_42 = arith.constant dense<0.000000e+00> : vector<8x8xf32>
    %92 = tpu.matmul %89, %90, %cst_42 {dimension_numbers = #tpu.dot_dimension_numbers<[1], [1], [0], [0], [0, 0, 1, 0], [], []>} : vector<8x8xf32>, vector<8x8xf32>, vector<8x8xf32> -> vector<8x8xf32>
    %cst_43 = arith.constant 0.000000e+00 : f32
    %93 = vector.broadcast %cst_43 : f32 to vector<8x8xf32>
    %94 = arith.cmpf oeq, %4, %93 : vector<8x8xf32>
    %cst_44 = arith.constant -1.000000e+20 : f32
    %95 = vector.broadcast %cst_44 : f32 to vector<8x8xf32>
    %96 = arith.select %94, %95, %92 : vector<8x8xi1>, vector<8x8xf32>
    %cst_45 = arith.constant 0.176776692 : f32
    %97 = vector.broadcast %cst_45 : f32 to vector<8x8xf32>
    %98 = arith.mulf %96, %97 : vector<8x8xf32>
    %cst_46 = arith.constant dense<0xFF800000> : vector<8xf32>
    %99 = vector.multi_reduction <maximumf>, %98, %cst_46 [1] : vector<8x8xf32> to vector<8xf32>
    %100 = vector.shape_cast %99 : vector<8xf32> to vector<8x1xf32>
    %101 = vector.broadcast %100 : vector<8x1xf32> to vector<8x8xf32>
    %102 = arith.subf %98, %101 : vector<8x8xf32>
    %103 = math.exp %102 : vector<8x8xf32>
    %cst_47 = arith.constant dense<0.000000e+00> : vector<8xf32>
    %104 = vector.multi_reduction <add>, %103, %cst_47 [1] : vector<8x8xf32> to vector<8xf32>
    %105 = vector.shape_cast %104 : vector<8xf32> to vector<8x1xf32>
    %106 = tpu.reciprocal %105 {approx = true} : vector<8x1xf32> -> vector<8x1xf32>
    %107 = vector.broadcast %106 : vector<8x1xf32> to vector<8x8xf32>
    %108 = arith.mulf %103, %107 : vector<8x8xf32>
    %cst_48 = arith.constant dense<0.000000e+00> : vector<8x8xf32>
    %109 = tpu.matmul %108, %91, %cst_48 {dimension_numbers = #tpu.dot_dimension_numbers<[1], [0], [0], [1], [0, 0, 1, 1], [], []>} : vector<8x8xf32>, vector<8x8xf32>, vector<8x8xf32> -> vector<8x8xf32>
    %110 = vector.extract_strided_slice %14 {offsets = [24, 0], sizes = [8, 32], strides = [1, 1]} : vector<32x32xf32> to vector<8x32xf32>
    %cst_49 = arith.constant dense<0.000000e+00> : vector<8x32xf32>
    %111 = tpu.matmul %109, %110, %cst_49 {dimension_numbers = #tpu.dot_dimension_numbers<[1], [0], [0], [1], [0, 0, 1, 1], [], []>} : vector<8x8xf32>, vector<8x32xf32>, vector<8x32xf32> -> vector<8x32xf32>
    %112 = arith.addf %88, %111 : vector<8x32xf32>
    %113 = vector.broadcast %15 : vector<1x32xf32> to vector<8x32xf32>
    %114 = arith.addf %112, %113 : vector<8x32xf32>
    %115 = arith.addf %114, %1 : vector<8x32xf32>
    %c0_50 = arith.constant 0 : index
    %c0_51 = arith.constant 0 : index
    %116 = vector.load %arg9[%c0_50, %c0_51] : memref<1x32xf32, #tpu.memory_space<vmem>>, vector<1x32xf32>
    %c0_52 = arith.constant 0 : index
    %c0_53 = arith.constant 0 : index
    %117 = vector.load %arg10[%c0_52, %c0_53] : memref<1x32xf32, #tpu.memory_space<vmem>>, vector<1x32xf32>
    %cst_54 = arith.constant dense<0.000000e+00> : vector<8xf32>
    %118 = vector.multi_reduction <add>, %115, %cst_54 [1] : vector<8x32xf32> to vector<8xf32>
    %119 = vector.shape_cast %118 : vector<8xf32> to vector<8x1xf32>
    %cst_55 = arith.constant 3.200000e+01 : f32
    %120 = vector.broadcast %cst_55 : f32 to vector<8x1xf32>
    %121 = arith.divf %119, %120 : vector<8x1xf32>
    %122 = vector.broadcast %121 : vector<8x1xf32> to vector<8x32xf32>
    %123 = arith.subf %115, %122 : vector<8x32xf32>
    %124 = arith.mulf %123, %123 : vector<8x32xf32>
    %cst_56 = arith.constant dense<0.000000e+00> : vector<8xf32>
    %125 = vector.multi_reduction <add>, %124, %cst_56 [1] : vector<8x32xf32> to vector<8xf32>
    %126 = vector.shape_cast %125 : vector<8xf32> to vector<8x1xf32>
    %cst_57 = arith.constant 3.200000e+01 : f32
    %127 = vector.broadcast %cst_57 : f32 to vector<8x1xf32>
    %128 = arith.divf %126, %127 : vector<8x1xf32>
    %129 = vector.broadcast %121 : vector<8x1xf32> to vector<8x32xf32>
    %130 = arith.subf %115, %129 : vector<8x32xf32>
    %cst_58 = arith.constant 9.99999974E-6 : f32
    %131 = vector.broadcast %cst_58 : f32 to vector<8x1xf32>
    %132 = arith.addf %128, %131 : vector<8x1xf32>
    %133 = math.rsqrt %132 : vector<8x1xf32>
    %134 = vector.broadcast %133 : vector<8x1xf32> to vector<8x32xf32>
    %135 = arith.mulf %130, %134 : vector<8x32xf32>
    %136 = vector.broadcast %116 : vector<1x32xf32> to vector<8x32xf32>
    %137 = arith.mulf %135, %136 : vector<8x32xf32>
    %138 = vector.broadcast %117 : vector<1x32xf32> to vector<8x32xf32>
    %139 = arith.addf %137, %138 : vector<8x32xf32>
    %c0_59 = arith.constant 0 : index
    %c0_60 = arith.constant 0 : index
    %140 = vector.load %arg11[%c0_59, %c0_60] : memref<32x32xf32, #tpu.memory_space<vmem>>, vector<32x32xf32>
    %cst_61 = arith.constant dense<0.000000e+00> : vector<8x32xf32>
    %141 = tpu.matmul %139, %140, %cst_61 {dimension_numbers = #tpu.dot_dimension_numbers<[1], [0], [0], [1], [0, 0, 1, 1], [], []>} : vector<8x32xf32>, vector<32x32xf32>, vector<8x32xf32> -> vector<8x32xf32>
    %c0_62 = arith.constant 0 : index
    %c0_63 = arith.constant 0 : index
    %142 = vector.load %arg12[%c0_62, %c0_63] : memref<1x32xf32, #tpu.memory_space<vmem>>, vector<1x32xf32>
    %143 = vector.broadcast %142 : vector<1x32xf32> to vector<8x32xf32>
    %144 = arith.addf %141, %143 : vector<8x32xf32>
    %c0_64 = arith.constant 0 : index
    %c0_65 = arith.constant 0 : index
    %145 = vector.load %arg13[%c0_64, %c0_65] : memref<32x64xf32, #tpu.memory_space<vmem>>, vector<32x64xf32>
    %cst_66 = arith.constant dense<0.000000e+00> : vector<8x64xf32>
    %146 = tpu.matmul %3, %145, %cst_66 {dimension_numbers = #tpu.dot_dimension_numbers<[1], [0], [0], [1], [0, 0, 1, 1], [], []>} : vector<8x32xf32>, vector<32x64xf32>, vector<8x64xf32> -> vector<8x64xf32>
    %c0_67 = arith.constant 0 : index
    %c0_68 = arith.constant 0 : index
    %147 = vector.load %arg14[%c0_67, %c0_68] : memref<1x64xf32, #tpu.memory_space<vmem>>, vector<1x64xf32>
    %148 = vector.broadcast %147 : vector<1x64xf32> to vector<8x64xf32>
    %149 = arith.addf %146, %148 : vector<8x64xf32>
    %150 = vector.extract_strided_slice %149 {offsets = [0, 0], sizes = [8, 32], strides = [1, 1]} : vector<8x64xf32> to vector<8x32xf32>
    %151 = vector.extract_strided_slice %149 {offsets = [0, 32], sizes = [8, 32], strides = [1, 1]} : vector<8x64xf32> to vector<8x32xf32>
    %c0_69 = arith.constant 0 : index
    %c0_70 = arith.constant 0 : index
    %152 = vector.load %arg15[%c0_69, %c0_70] : memref<32x32xf32, #tpu.memory_space<vmem>>, vector<32x32xf32>
    %c0_71 = arith.constant 0 : index
    %c0_72 = arith.constant 0 : index
    %153 = vector.load %arg16[%c0_71, %c0_72] : memref<1x32xf32, #tpu.memory_space<vmem>>, vector<1x32xf32>
    %cst_73 = arith.constant 0.000000e+00 : f32
    %154 = vector.broadcast %cst_73 : f32 to vector<8x32xf32>
    %155 = vector.extract_strided_slice %144 {offsets = [0, 0], sizes = [8, 8], strides = [1, 1]} : vector<8x32xf32> to vector<8x8xf32>
    %156 = vector.extract_strided_slice %150 {offsets = [0, 0], sizes = [8, 8], strides = [1, 1]} : vector<8x32xf32> to vector<8x8xf32>
    %157 = vector.extract_strided_slice %151 {offsets = [0, 0], sizes = [8, 8], strides = [1, 1]} : vector<8x32xf32> to vector<8x8xf32>
    %cst_74 = arith.constant dense<0.000000e+00> : vector<8x8xf32>
    %158 = tpu.matmul %155, %156, %cst_74 {dimension_numbers = #tpu.dot_dimension_numbers<[1], [1], [0], [0], [0, 0, 1, 0], [], []>} : vector<8x8xf32>, vector<8x8xf32>, vector<8x8xf32> -> vector<8x8xf32>
    %cst_75 = arith.constant 0.000000e+00 : f32
    %159 = vector.broadcast %cst_75 : f32 to vector<8x8xf32>
    %160 = arith.cmpf oeq, %5, %159 : vector<8x8xf32>
    %cst_76 = arith.constant -1.000000e+20 : f32
    %161 = vector.broadcast %cst_76 : f32 to vector<8x8xf32>
    %162 = arith.select %160, %161, %158 : vector<8x8xi1>, vector<8x8xf32>
    %cst_77 = arith.constant 0.176776692 : f32
    %163 = vector.broadcast %cst_77 : f32 to vector<8x8xf32>
    %164 = arith.mulf %162, %163 : vector<8x8xf32>
    %cst_78 = arith.constant dense<0xFF800000> : vector<8xf32>
    %165 = vector.multi_reduction <maximumf>, %164, %cst_78 [1] : vector<8x8xf32> to vector<8xf32>
    %166 = vector.shape_cast %165 : vector<8xf32> to vector<8x1xf32>
    %167 = vector.broadcast %166 : vector<8x1xf32> to vector<8x8xf32>
    %168 = arith.subf %164, %167 : vector<8x8xf32>
    %169 = math.exp %168 : vector<8x8xf32>
    %cst_79 = arith.constant dense<0.000000e+00> : vector<8xf32>
    %170 = vector.multi_reduction <add>, %169, %cst_79 [1] : vector<8x8xf32> to vector<8xf32>
    %171 = vector.shape_cast %170 : vector<8xf32> to vector<8x1xf32>
    %172 = tpu.reciprocal %171 {approx = true} : vector<8x1xf32> -> vector<8x1xf32>
    %173 = vector.broadcast %172 : vector<8x1xf32> to vector<8x8xf32>
    %174 = arith.mulf %169, %173 : vector<8x8xf32>
    %cst_80 = arith.constant dense<0.000000e+00> : vector<8x8xf32>
    %175 = tpu.matmul %174, %157, %cst_80 {dimension_numbers = #tpu.dot_dimension_numbers<[1], [0], [0], [1], [0, 0, 1, 1], [], []>} : vector<8x8xf32>, vector<8x8xf32>, vector<8x8xf32> -> vector<8x8xf32>
    %176 = vector.extract_strided_slice %152 {offsets = [0, 0], sizes = [8, 32], strides = [1, 1]} : vector<32x32xf32> to vector<8x32xf32>
    %cst_81 = arith.constant dense<0.000000e+00> : vector<8x32xf32>
    %177 = tpu.matmul %175, %176, %cst_81 {dimension_numbers = #tpu.dot_dimension_numbers<[1], [0], [0], [1], [0, 0, 1, 1], [], []>} : vector<8x8xf32>, vector<8x32xf32>, vector<8x32xf32> -> vector<8x32xf32>
    %178 = arith.addf %154, %177 : vector<8x32xf32>
    %179 = vector.extract_strided_slice %144 {offsets = [0, 8], sizes = [8, 8], strides = [1, 1]} : vector<8x32xf32> to vector<8x8xf32>
    %180 = vector.extract_strided_slice %150 {offsets = [0, 8], sizes = [8, 8], strides = [1, 1]} : vector<8x32xf32> to vector<8x8xf32>
    %181 = vector.extract_strided_slice %151 {offsets = [0, 8], sizes = [8, 8], strides = [1, 1]} : vector<8x32xf32> to vector<8x8xf32>
    %cst_82 = arith.constant dense<0.000000e+00> : vector<8x8xf32>
    %182 = tpu.matmul %179, %180, %cst_82 {dimension_numbers = #tpu.dot_dimension_numbers<[1], [1], [0], [0], [0, 0, 1, 0], [], []>} : vector<8x8xf32>, vector<8x8xf32>, vector<8x8xf32> -> vector<8x8xf32>
    %cst_83 = arith.constant 0.000000e+00 : f32
    %183 = vector.broadcast %cst_83 : f32 to vector<8x8xf32>
    %184 = arith.cmpf oeq, %5, %183 : vector<8x8xf32>
    %cst_84 = arith.constant -1.000000e+20 : f32
    %185 = vector.broadcast %cst_84 : f32 to vector<8x8xf32>
    %186 = arith.select %184, %185, %182 : vector<8x8xi1>, vector<8x8xf32>
    %cst_85 = arith.constant 0.176776692 : f32
    %187 = vector.broadcast %cst_85 : f32 to vector<8x8xf32>
    %188 = arith.mulf %186, %187 : vector<8x8xf32>
    %cst_86 = arith.constant dense<0xFF800000> : vector<8xf32>
    %189 = vector.multi_reduction <maximumf>, %188, %cst_86 [1] : vector<8x8xf32> to vector<8xf32>
    %190 = vector.shape_cast %189 : vector<8xf32> to vector<8x1xf32>
    %191 = vector.broadcast %190 : vector<8x1xf32> to vector<8x8xf32>
    %192 = arith.subf %188, %191 : vector<8x8xf32>
    %193 = math.exp %192 : vector<8x8xf32>
    %cst_87 = arith.constant dense<0.000000e+00> : vector<8xf32>
    %194 = vector.multi_reduction <add>, %193, %cst_87 [1] : vector<8x8xf32> to vector<8xf32>
    %195 = vector.shape_cast %194 : vector<8xf32> to vector<8x1xf32>
    %196 = tpu.reciprocal %195 {approx = true} : vector<8x1xf32> -> vector<8x1xf32>
    %197 = vector.broadcast %196 : vector<8x1xf32> to vector<8x8xf32>
    %198 = arith.mulf %193, %197 : vector<8x8xf32>
    %cst_88 = arith.constant dense<0.000000e+00> : vector<8x8xf32>
    %199 = tpu.matmul %198, %181, %cst_88 {dimension_numbers = #tpu.dot_dimension_numbers<[1], [0], [0], [1], [0, 0, 1, 1], [], []>} : vector<8x8xf32>, vector<8x8xf32>, vector<8x8xf32> -> vector<8x8xf32>
    %200 = vector.extract_strided_slice %152 {offsets = [8, 0], sizes = [8, 32], strides = [1, 1]} : vector<32x32xf32> to vector<8x32xf32>
    %cst_89 = arith.constant dense<0.000000e+00> : vector<8x32xf32>
    %201 = tpu.matmul %199, %200, %cst_89 {dimension_numbers = #tpu.dot_dimension_numbers<[1], [0], [0], [1], [0, 0, 1, 1], [], []>} : vector<8x8xf32>, vector<8x32xf32>, vector<8x32xf32> -> vector<8x32xf32>
    %202 = arith.addf %178, %201 : vector<8x32xf32>
    %203 = vector.extract_strided_slice %144 {offsets = [0, 16], sizes = [8, 8], strides = [1, 1]} : vector<8x32xf32> to vector<8x8xf32>
    %204 = vector.extract_strided_slice %150 {offsets = [0, 16], sizes = [8, 8], strides = [1, 1]} : vector<8x32xf32> to vector<8x8xf32>
    %205 = vector.extract_strided_slice %151 {offsets = [0, 16], sizes = [8, 8], strides = [1, 1]} : vector<8x32xf32> to vector<8x8xf32>
    %cst_90 = arith.constant dense<0.000000e+00> : vector<8x8xf32>
    %206 = tpu.matmul %203, %204, %cst_90 {dimension_numbers = #tpu.dot_dimension_numbers<[1], [1], [0], [0], [0, 0, 1, 0], [], []>} : vector<8x8xf32>, vector<8x8xf32>, vector<8x8xf32> -> vector<8x8xf32>
    %cst_91 = arith.constant 0.000000e+00 : f32
    %207 = vector.broadcast %cst_91 : f32 to vector<8x8xf32>
    %208 = arith.cmpf oeq, %5, %207 : vector<8x8xf32>
    %cst_92 = arith.constant -1.000000e+20 : f32
    %209 = vector.broadcast %cst_92 : f32 to vector<8x8xf32>
    %210 = arith.select %208, %209, %206 : vector<8x8xi1>, vector<8x8xf32>
    %cst_93 = arith.constant 0.176776692 : f32
    %211 = vector.broadcast %cst_93 : f32 to vector<8x8xf32>
    %212 = arith.mulf %210, %211 : vector<8x8xf32>
    %cst_94 = arith.constant dense<0xFF800000> : vector<8xf32>
    %213 = vector.multi_reduction <maximumf>, %212, %cst_94 [1] : vector<8x8xf32> to vector<8xf32>
    %214 = vector.shape_cast %213 : vector<8xf32> to vector<8x1xf32>
    %215 = vector.broadcast %214 : vector<8x1xf32> to vector<8x8xf32>
    %216 = arith.subf %212, %215 : vector<8x8xf32>
    %217 = math.exp %216 : vector<8x8xf32>
    %cst_95 = arith.constant dense<0.000000e+00> : vector<8xf32>
    %218 = vector.multi_reduction <add>, %217, %cst_95 [1] : vector<8x8xf32> to vector<8xf32>
    %219 = vector.shape_cast %218 : vector<8xf32> to vector<8x1xf32>
    %220 = tpu.reciprocal %219 {approx = true} : vector<8x1xf32> -> vector<8x1xf32>
    %221 = vector.broadcast %220 : vector<8x1xf32> to vector<8x8xf32>
    %222 = arith.mulf %217, %221 : vector<8x8xf32>
    %cst_96 = arith.constant dense<0.000000e+00> : vector<8x8xf32>
    %223 = tpu.matmul %222, %205, %cst_96 {dimension_numbers = #tpu.dot_dimension_numbers<[1], [0], [0], [1], [0, 0, 1, 1], [], []>} : vector<8x8xf32>, vector<8x8xf32>, vector<8x8xf32> -> vector<8x8xf32>
    %224 = vector.extract_strided_slice %152 {offsets = [16, 0], sizes = [8, 32], strides = [1, 1]} : vector<32x32xf32> to vector<8x32xf32>
    %cst_97 = arith.constant dense<0.000000e+00> : vector<8x32xf32>
    %225 = tpu.matmul %223, %224, %cst_97 {dimension_numbers = #tpu.dot_dimension_numbers<[1], [0], [0], [1], [0, 0, 1, 1], [], []>} : vector<8x8xf32>, vector<8x32xf32>, vector<8x32xf32> -> vector<8x32xf32>
    %226 = arith.addf %202, %225 : vector<8x32xf32>
    %227 = vector.extract_strided_slice %144 {offsets = [0, 24], sizes = [8, 8], strides = [1, 1]} : vector<8x32xf32> to vector<8x8xf32>
    %228 = vector.extract_strided_slice %150 {offsets = [0, 24], sizes = [8, 8], strides = [1, 1]} : vector<8x32xf32> to vector<8x8xf32>
    %229 = vector.extract_strided_slice %151 {offsets = [0, 24], sizes = [8, 8], strides = [1, 1]} : vector<8x32xf32> to vector<8x8xf32>
    %cst_98 = arith.constant dense<0.000000e+00> : vector<8x8xf32>
    %230 = tpu.matmul %227, %228, %cst_98 {dimension_numbers = #tpu.dot_dimension_numbers<[1], [1], [0], [0], [0, 0, 1, 0], [], []>} : vector<8x8xf32>, vector<8x8xf32>, vector<8x8xf32> -> vector<8x8xf32>
    %cst_99 = arith.constant 0.000000e+00 : f32
    %231 = vector.broadcast %cst_99 : f32 to vector<8x8xf32>
    %232 = arith.cmpf oeq, %5, %231 : vector<8x8xf32>
    %cst_100 = arith.constant -1.000000e+20 : f32
    %233 = vector.broadcast %cst_100 : f32 to vector<8x8xf32>
    %234 = arith.select %232, %233, %230 : vector<8x8xi1>, vector<8x8xf32>
    %cst_101 = arith.constant 0.176776692 : f32
    %235 = vector.broadcast %cst_101 : f32 to vector<8x8xf32>
    %236 = arith.mulf %234, %235 : vector<8x8xf32>
    %cst_102 = arith.constant dense<0xFF800000> : vector<8xf32>
    %237 = vector.multi_reduction <maximumf>, %236, %cst_102 [1] : vector<8x8xf32> to vector<8xf32>
    %238 = vector.shape_cast %237 : vector<8xf32> to vector<8x1xf32>
    %239 = vector.broadcast %238 : vector<8x1xf32> to vector<8x8xf32>
    %240 = arith.subf %236, %239 : vector<8x8xf32>
    %241 = math.exp %240 : vector<8x8xf32>
    %cst_103 = arith.constant dense<0.000000e+00> : vector<8xf32>
    %242 = vector.multi_reduction <add>, %241, %cst_103 [1] : vector<8x8xf32> to vector<8xf32>
    %243 = vector.shape_cast %242 : vector<8xf32> to vector<8x1xf32>
    %244 = tpu.reciprocal %243 {approx = true} : vector<8x1xf32> -> vector<8x1xf32>
    %245 = vector.broadcast %244 : vector<8x1xf32> to vector<8x8xf32>
    %246 = arith.mulf %241, %245 : vector<8x8xf32>
    %cst_104 = arith.constant dense<0.000000e+00> : vector<8x8xf32>
    %247 = tpu.matmul %246, %229, %cst_104 {dimension_numbers = #tpu.dot_dimension_numbers<[1], [0], [0], [1], [0, 0, 1, 1], [], []>} : vector<8x8xf32>, vector<8x8xf32>, vector<8x8xf32> -> vector<8x8xf32>
    %248 = vector.extract_strided_slice %152 {offsets = [24, 0], sizes = [8, 32], strides = [1, 1]} : vector<32x32xf32> to vector<8x32xf32>
    %cst_105 = arith.constant dense<0.000000e+00> : vector<8x32xf32>
    %249 = tpu.matmul %247, %248, %cst_105 {dimension_numbers = #tpu.dot_dimension_numbers<[1], [0], [0], [1], [0, 0, 1, 1], [], []>} : vector<8x8xf32>, vector<8x32xf32>, vector<8x32xf32> -> vector<8x32xf32>
    %250 = arith.addf %226, %249 : vector<8x32xf32>
    %251 = vector.broadcast %153 : vector<1x32xf32> to vector<8x32xf32>
    %252 = arith.addf %250, %251 : vector<8x32xf32>
    %253 = arith.addf %252, %139 : vector<8x32xf32>
    %c0_106 = arith.constant 0 : index
    %c0_107 = arith.constant 0 : index
    %254 = vector.load %arg17[%c0_106, %c0_107] : memref<1x32xf32, #tpu.memory_space<vmem>>, vector<1x32xf32>
    %c0_108 = arith.constant 0 : index
    %c0_109 = arith.constant 0 : index
    %255 = vector.load %arg18[%c0_108, %c0_109] : memref<1x32xf32, #tpu.memory_space<vmem>>, vector<1x32xf32>
    %cst_110 = arith.constant dense<0.000000e+00> : vector<8xf32>
    %256 = vector.multi_reduction <add>, %253, %cst_110 [1] : vector<8x32xf32> to vector<8xf32>
    %257 = vector.shape_cast %256 : vector<8xf32> to vector<8x1xf32>
    %cst_111 = arith.constant 3.200000e+01 : f32
    %258 = vector.broadcast %cst_111 : f32 to vector<8x1xf32>
    %259 = arith.divf %257, %258 : vector<8x1xf32>
    %260 = vector.broadcast %259 : vector<8x1xf32> to vector<8x32xf32>
    %261 = arith.subf %253, %260 : vector<8x32xf32>
    %262 = arith.mulf %261, %261 : vector<8x32xf32>
    %cst_112 = arith.constant dense<0.000000e+00> : vector<8xf32>
    %263 = vector.multi_reduction <add>, %262, %cst_112 [1] : vector<8x32xf32> to vector<8xf32>
    %264 = vector.shape_cast %263 : vector<8xf32> to vector<8x1xf32>
    %cst_113 = arith.constant 3.200000e+01 : f32
    %265 = vector.broadcast %cst_113 : f32 to vector<8x1xf32>
    %266 = arith.divf %264, %265 : vector<8x1xf32>
    %267 = vector.broadcast %259 : vector<8x1xf32> to vector<8x32xf32>
    %268 = arith.subf %253, %267 : vector<8x32xf32>
    %cst_114 = arith.constant 9.99999974E-6 : f32
    %269 = vector.broadcast %cst_114 : f32 to vector<8x1xf32>
    %270 = arith.addf %266, %269 : vector<8x1xf32>
    %271 = math.rsqrt %270 : vector<8x1xf32>
    %272 = vector.broadcast %271 : vector<8x1xf32> to vector<8x32xf32>
    %273 = arith.mulf %268, %272 : vector<8x32xf32>
    %274 = vector.broadcast %254 : vector<1x32xf32> to vector<8x32xf32>
    %275 = arith.mulf %273, %274 : vector<8x32xf32>
    %276 = vector.broadcast %255 : vector<1x32xf32> to vector<8x32xf32>
    %277 = arith.addf %275, %276 : vector<8x32xf32>
    %c0_115 = arith.constant 0 : index
    %c0_116 = arith.constant 0 : index
    %278 = vector.load %arg19[%c0_115, %c0_116] : memref<32x128xf32, #tpu.memory_space<vmem>>, vector<32x128xf32>
    %cst_117 = arith.constant dense<0.000000e+00> : vector<8x128xf32>
    %279 = tpu.matmul %277, %278, %cst_117 {dimension_numbers = #tpu.dot_dimension_numbers<[1], [0], [0], [1], [0, 0, 1, 1], [], []>} : vector<8x32xf32>, vector<32x128xf32>, vector<8x128xf32> -> vector<8x128xf32>
    %c0_118 = arith.constant 0 : index
    %c0_119 = arith.constant 0 : index
    %280 = vector.load %arg20[%c0_118, %c0_119] : memref<1x128xf32, #tpu.memory_space<vmem>>, vector<1x128xf32>
    %281 = vector.broadcast %280 : vector<1x128xf32> to vector<8x128xf32>
    %282 = arith.addf %279, %281 : vector<8x128xf32>
    %cst_120 = arith.constant 0.000000e+00 : f32
    %283 = vector.broadcast %cst_120 : f32 to vector<8x128xf32>
    %284 = arith.maximumf %282, %283 : vector<8x128xf32>
    %c0_121 = arith.constant 0 : index
    %c0_122 = arith.constant 0 : index
    %285 = vector.load %arg21[%c0_121, %c0_122] : memref<128x32xf32, #tpu.memory_space<vmem>>, vector<128x32xf32>
    %cst_123 = arith.constant dense<0.000000e+00> : vector<8x32xf32>
    %286 = tpu.matmul %284, %285, %cst_123 {dimension_numbers = #tpu.dot_dimension_numbers<[1], [0], [0], [1], [0, 0, 1, 1], [], []>} : vector<8x128xf32>, vector<128x32xf32>, vector<8x32xf32> -> vector<8x32xf32>
    %c0_124 = arith.constant 0 : index
    %c0_125 = arith.constant 0 : index
    %287 = vector.load %arg22[%c0_124, %c0_125] : memref<1x32xf32, #tpu.memory_space<vmem>>, vector<1x32xf32>
    %288 = vector.broadcast %287 : vector<1x32xf32> to vector<8x32xf32>
    %289 = arith.addf %286, %288 : vector<8x32xf32>
    %290 = arith.addf %277, %289 : vector<8x32xf32>
    %c0_126 = arith.constant 0 : index
    %c0_127 = arith.constant 0 : index
    %291 = vector.load %arg23[%c0_126, %c0_127] : memref<1x32xf32, #tpu.memory_space<vmem>>, vector<1x32xf32>
    %c0_128 = arith.constant 0 : index
    %c0_129 = arith.constant 0 : index
    %292 = vector.load %arg24[%c0_128, %c0_129] : memref<1x32xf32, #tpu.memory_space<vmem>>, vector<1x32xf32>
    %cst_130 = arith.constant dense<0.000000e+00> : vector<8xf32>
    %293 = vector.multi_reduction <add>, %290, %cst_130 [1] : vector<8x32xf32> to vector<8xf32>
    %294 = vector.shape_cast %293 : vector<8xf32> to vector<8x1xf32>
    %cst_131 = arith.constant 3.200000e+01 : f32
    %295 = vector.broadcast %cst_131 : f32 to vector<8x1xf32>
    %296 = arith.divf %294, %295 : vector<8x1xf32>
    %297 = vector.broadcast %296 : vector<8x1xf32> to vector<8x32xf32>
    %298 = arith.subf %290, %297 : vector<8x32xf32>
    %299 = arith.mulf %298, %298 : vector<8x32xf32>
    %cst_132 = arith.constant dense<0.000000e+00> : vector<8xf32>
    %300 = vector.multi_reduction <add>, %299, %cst_132 [1] : vector<8x32xf32> to vector<8xf32>
    %301 = vector.shape_cast %300 : vector<8xf32> to vector<8x1xf32>
    %cst_133 = arith.constant 3.200000e+01 : f32
    %302 = vector.broadcast %cst_133 : f32 to vector<8x1xf32>
    %303 = arith.divf %301, %302 : vector<8x1xf32>
    %304 = vector.broadcast %296 : vector<8x1xf32> to vector<8x32xf32>
    %305 = arith.subf %290, %304 : vector<8x32xf32>
    %cst_134 = arith.constant 9.99999974E-6 : f32
    %306 = vector.broadcast %cst_134 : f32 to vector<8x1xf32>
    %307 = arith.addf %303, %306 : vector<8x1xf32>
    %308 = math.rsqrt %307 : vector<8x1xf32>
    %309 = vector.broadcast %308 : vector<8x1xf32> to vector<8x32xf32>
    %310 = arith.mulf %305, %309 : vector<8x32xf32>
    %311 = vector.broadcast %291 : vector<1x32xf32> to vector<8x32xf32>
    %312 = arith.mulf %310, %311 : vector<8x32xf32>
    %313 = vector.broadcast %292 : vector<1x32xf32> to vector<8x32xf32>
    %314 = arith.addf %312, %313 : vector<8x32xf32>
    %c0_135 = arith.constant 0 : index
    %c0_136 = arith.constant 0 : index
    %c0_137 = arith.constant 0 : index
    %315 = vector.load %arg25[%c0_135, %c0_136, %c0_137] : memref<1x8x32xf32, #tpu.memory_space<vmem>>, vector<1x8x32xf32>
    %316 = vector.shape_cast %315 : vector<1x8x32xf32> to vector<8x32xf32>
    %317 = vector.shape_cast %314 : vector<8x32xf32> to vector<1x8x32xf32>
    tpu.vector_store %arg25[%c0_135, %c0_136, %c0_137], %317 {strides = array<i32>} : memref<1x8x32xf32, #tpu.memory_space<vmem>>, vector<1x8x32xf32>,
    return
  }
  func.func @transform_0(%arg0: i32) -> (i32, i32, i32) {
    %c0_i32 = arith.constant 0 : i32
    %c0_i32_0 = arith.constant 0 : i32
    %c0_i32_1 = arith.constant 0 : i32
    return %arg0, %c0_i32, %c0_i32_0 : i32, i32, i32
  }
  func.func @transform_1(%arg0: i32) -> (i32, i32, i32) {
    %c0_i32 = arith.constant 0 : i32
    %c0_i32_0 = arith.constant 0 : i32
    %c0_i32_1 = arith.constant 0 : i32
    return %arg0, %c0_i32, %c0_i32_0 : i32, i32, i32
  }
  func.func @transform_2(%arg0: i32) -> (i32, i32) {
    %c0_i32 = arith.constant 0 : i32
    %c0_i32_0 = arith.constant 0 : i32
    %c0_i32_1 = arith.constant 0 : i32
    return %c0_i32, %c0_i32_0 : i32, i32
  }
  func.func @transform_3(%arg0: i32) -> (i32, i32) {
    %c0_i32 = arith.constant 0 : i32
    %c0_i32_0 = arith.constant 0 : i32
    %c0_i32_1 = arith.constant 0 : i32
    return %c0_i32, %c0_i32_0 : i32, i32
  }
  func.func @transform_4(%arg0: i32) -> (i32, i32) {
    %c0_i32 = arith.constant 0 : i32
    %c0_i32_0 = arith.constant 0 : i32
    %c0_i32_1 = arith.constant 0 : i32
    return %c0_i32, %c0_i32_0 : i32, i32
  }
  func.func @transform_5(%arg0: i32) -> (i32, i32) {
    %c0_i32 = arith.constant 0 : i32
    %c0_i32_0 = arith.constant 0 : i32
    %c0_i32_1 = arith.constant 0 : i32
    return %c0_i32, %c0_i32_0 : i32, i32
  }
  func.func @transform_6(%arg0: i32) -> (i32, i32) {
    %c0_i32 = arith.constant 0 : i32
    %c0_i32_0 = arith.constant 0 : i32
    %c0_i32_1 = arith.constant 0 : i32
    return %c0_i32, %c0_i32_0 : i32, i32
  }
  func.func @transform_7(%arg0: i32) -> (i32, i32) {
    %c0_i32 = arith.constant 0 : i32
    %c0_i32_0 = arith.constant 0 : i32
    %c0_i32_1 = arith.constant 0 : i32
    return %c0_i32, %c0_i32_0 : i32, i32
  }
  func.func @transform_8(%arg0: i32) -> (i32, i32) {
    %c0_i32 = arith.constant 0 : i32
    %c0_i32_0 = arith.constant 0 : i32
    %c0_i32_1 = arith.constant 0 : i32
    return %c0_i32, %c0_i32_0 : i32, i32
  }
  func.func @transform_9(%arg0: i32) -> (i32, i32) {
    %c0_i32 = arith.constant 0 : i32
    %c0_i32_0 = arith.constant 0 : i32
    %c0_i32_1 = arith.constant 0 : i32
    return %c0_i32, %c0_i32_0 : i32, i32
  }
  func.func @transform_10(%arg0: i32) -> (i32, i32) {
    %c0_i32 = arith.constant 0 : i32
    %c0_i32_0 = arith.constant 0 : i32
    %c0_i32_1 = arith.constant 0 : i32
    return %c0_i32, %c0_i32_0 : i32, i32
  }
  func.func @transform_11(%arg0: i32) -> (i32, i32) {
    %c0_i32 = arith.constant 0 : i32
    %c0_i32_0 = arith.constant 0 : i32
    %c0_i32_1 = arith.constant 0 : i32
    return %c0_i32, %c0_i32_0 : i32, i32
  }
  func.func @transform_12(%arg0: i32) -> (i32, i32) {
    %c0_i32 = arith.constant 0 : i32
    %c0_i32_0 = arith.constant 0 : i32
    %c0_i32_1 = arith.constant 0 : i32
    return %c0_i32, %c0_i32_0 : i32, i32
  }
  func.func @transform_13(%arg0: i32) -> (i32, i32) {
    %c0_i32 = arith.constant 0 : i32
    %c0_i32_0 = arith.constant 0 : i32
    %c0_i32_1 = arith.constant 0 : i32
    return %c0_i32, %c0_i32_0 : i32, i32
  }
  func.func @transform_14(%arg0: i32) -> (i32, i32) {
    %c0_i32 = arith.constant 0 : i32
    %c0_i32_0 = arith.constant 0 : i32
    %c0_i32_1 = arith.constant 0 : i32
    return %c0_i32, %c0_i32_0 : i32, i32
  }
  func.func @transform_15(%arg0: i32) -> (i32, i32) {
    %c0_i32 = arith.constant 0 : i32
    %c0_i32_0 = arith.constant 0 : i32
    %c0_i32_1 = arith.constant 0 : i32
    return %c0_i32, %c0_i32_0 : i32, i32
  }
  func.func @transform_16(%arg0: i32) -> (i32, i32) {
    %c0_i32 = arith.constant 0 : i32
    %c0_i32_0 = arith.constant 0 : i32
    %c0_i32_1 = arith.constant 0 : i32
    return %c0_i32, %c0_i32_0 : i32, i32
  }
  func.func @transform_17(%arg0: i32) -> (i32, i32) {
    %c0_i32 = arith.constant 0 : i32
    %c0_i32_0 = arith.constant 0 : i32
    %c0_i32_1 = arith.constant 0 : i32
    return %c0_i32, %c0_i32_0 : i32, i32
  }
  func.func @transform_18(%arg0: i32) -> (i32, i32) {
    %c0_i32 = arith.constant 0 : i32
    %c0_i32_0 = arith.constant 0 : i32
    %c0_i32_1 = arith.constant 0 : i32
    return %c0_i32, %c0_i32_0 : i32, i32
  }
  func.func @transform_19(%arg0: i32) -> (i32, i32) {
    %c0_i32 = arith.constant 0 : i32
    %c0_i32_0 = arith.constant 0 : i32
    %c0_i32_1 = arith.constant 0 : i32
    return %c0_i32, %c0_i32_0 : i32, i32
  }
  func.func @transform_20(%arg0: i32) -> (i32, i32) {
    %c0_i32 = arith.constant 0 : i32
    %c0_i32_0 = arith.constant 0 : i32
    %c0_i32_1 = arith.constant 0 : i32
    return %c0_i32, %c0_i32_0 : i32, i32
  }
  func.func @transform_21(%arg0: i32) -> (i32, i32) {
    %c0_i32 = arith.constant 0 : i32
    %c0_i32_0 = arith.constant 0 : i32
    %c0_i32_1 = arith.constant 0 : i32
    return %c0_i32, %c0_i32_0 : i32, i32
  }
  func.func @transform_22(%arg0: i32) -> (i32, i32) {
    %c0_i32 = arith.constant 0 : i32
    %c0_i32_0 = arith.constant 0 : i32
    %c0_i32_1 = arith.constant 0 : i32
    return %c0_i32, %c0_i32_0 : i32, i32
  }
  func.func @transform_23(%arg0: i32) -> (i32, i32) {
    %c0_i32 = arith.constant 0 : i32
    %c0_i32_0 = arith.constant 0 : i32
    %c0_i32_1 = arith.constant 0 : i32
    return %c0_i32, %c0_i32_0 : i32, i32
  }
  func.func @transform_24(%arg0: i32) -> (i32, i32, i32) {
    %c0_i32 = arith.constant 0 : i32
    %c0_i32_0 = arith.constant 0 : i32
    %c0_i32_1 = arith.constant 0 : i32
    return %arg0, %c0_i32, %c0_i32_0 : i32, i32, i32
  }
}

module attributes {stable_mosaic.version = 11 : i64} {
  func.func @_decoder_block_kernel(%arg0: i32, %arg1: memref<1x8x32xf32, #tpu.memory_space<vmem>>, %arg2: memref<1x8x32xf32, #tpu.memory_space<vmem>>, %arg3: memref<8x8xf32, #tpu.memory_space<vmem>>, %arg4: memref<8x8xf32, #tpu.memory_space<vmem>>, %arg5: memref<32x96xf32, #tpu.memory_space<vmem>>, %arg6: memref<1x96xf32, #tpu.memory_space<vmem>>, %arg7: memref<32x32xf32, #tpu.memory_space<vmem>>, %arg8: memref<1x32xf32, #tpu.memory_space<vmem>>, %arg9: memref<1x32xf32, #tpu.memory_space<vmem>>, %arg10: memref<1x32xf32, #tpu.memory_space<vmem>>, %arg11: memref<32x32xf32, #tpu.memory_space<vmem>>, %arg12: memref<1x32xf32, #tpu.memory_space<vmem>>, %arg13: memref<32x64xf32, #tpu.memory_space<vmem>>, %arg14: memref<1x64xf32, #tpu.memory_space<vmem>>, %arg15: memref<32x32xf32, #tpu.memory_space<vmem>>, %arg16: memref<1x32xf32, #tpu.memory_space<vmem>>, %arg17: memref<1x32xf32, #tpu.memory_space<vmem>>, %arg18: memref<1x32xf32, #tpu.memory_space<vmem>>, %arg19: memref<32x128xf32, #tpu.memory_space<vmem>>, %arg20: memref<1x128xf32, #tpu.memory_space<vmem>>, %arg21: memref<128x32xf32, #tpu.memory_space<vmem>>, %arg22: memref<1x32xf32, #tpu.memory_space<vmem>>, %arg23: memref<1x32xf32, #tpu.memory_space<vmem>>, %arg24: memref<1x32xf32, #tpu.memory_space<vmem>>, %arg25: memref<1x8x32xf32, #tpu.memory_space<vmem>>) attributes {dimension_semantics = [#tpu.dimension_semantics<parallel>], iteration_bounds = array<i64: 2>, scalar_prefetch = 0 : i64, scratch_operands = 0 : i64, tpu.core_type = #tpu.core_type<tc>, window_params = [{transform_indices = @transform_0, window_bounds = array<i64: 1, 8, 32>}, {transform_indices = @transform_1, window_bounds = array<i64: 1, 8, 32>}, {pipeline_mode = #tpu.pipeline_mode<synchronous>, transform_indices = @transform_2, window_bounds = array<i64: 8, 8>}, {pipeline_mode = #tpu.pipeline_mode<synchronous>, transform_indices = @transform_3, window_bounds = array<i64: 8, 8>}, {pipeline_mode = #tpu.pipeline_mode<synchronous>, transform_indices = @transform_4, window_bounds = array<i64: 32, 96>}, {pipeline_mode = #tpu.pipeline_mode<synchronous>, transform_indices = @transform_5, window_bounds = array<i64: 1, 96>}, {pipeline_mode = #tpu.pipeline_mode<synchronous>, transform_indices = @transform_6, window_bounds = array<i64: 32, 32>}, {pipeline_mode = #tpu.pipeline_mode<synchronous>, transform_indices = @transform_7, window_bounds = array<i64: 1, 32>}, {pipeline_mode = #tpu.pipeline_mode<synchronous>, transform_indices = @transform_8, window_bounds = array<i64: 1, 32>}, {pipeline_mode = #tpu.pipeline_mode<synchronous>, transform_indices = @transform_9, window_bounds = array<i64: 1, 32>}, {pipeline_mode = #tpu.pipeline_mode<synchronous>, transform_indices = @transform_10, window_bounds = array<i64: 32, 32>}, {pipeline_mode = #tpu.pipeline_mode<synchronous>, transform_indices = @transform_11, window_bounds = array<i64: 1, 32>}, {pipeline_mode = #tpu.pipeline_mode<synchronous>, transform_indices = @transform_12, window_bounds = array<i64: 32, 64>}, {pipeline_mode = #tpu.pipeline_mode<synchronous>, transform_indices = @transform_13, window_bounds = array<i64: 1, 64>}, {pipeline_mode = #tpu.pipeline_mode<synchronous>, transform_indices = @transform_14, window_bounds = array<i64: 32, 32>}, {pipeline_mode = #tpu.pipeline_mode<synchronous>, transform_indices = @transform_15, window_bounds = array<i64: 1, 32>}, {pipeline_mode = #tpu.pipeline_mode<synchronous>, transform_indices = @transform_16, window_bounds = array<i64: 1, 32>}, {pipeline_mode = #tpu.pipeline_mode<synchronous>, transform_indices = @transform_17, window_bounds = array<i64: 1, 32>}, {pipeline_mode = #tpu.pipeline_mode<synchronous>, transform_indices = @transform_18, window_bounds = array<i64: 32, 128>}, {pipeline_mode = #tpu.pipeline_mode<synchronous>, transform_indices = @transform_19, window_bounds = array<i64: 1, 128>}, {pipeline_mode = #tpu.pipeline_mode<synchronous>, transform_indices = @transform_20, window_bounds = array<i64: 128, 32>}, {pipeline_mode = #tpu.pipeline_mode<synchronous>, transform_indices = @transform_21, window_bounds = array<i64: 1, 32>}, {pipeline_mode = #tpu.pipeline_mode<synchronous>, transform_indices = @transform_22, window_bounds = array<i64: 1, 32>}, {pipeline_mode = #tpu.pipeline_mode<synchronous>, transform_indices = @transform_23, window_bounds = array<i64: 1, 32>}, {transform_indices = @transform_24, window_bounds = array<i64: 1, 8, 32>}]} {
    %c0 = arith.constant 0 : index
    %c0_0 = arith.constant 0 : index
    %c0_1 = arith.constant 0 : index
    %0 = vector.load %arg1[%c0, %c0_0, %c0_1] : memref<1x8x32xf32, #tpu.memory_space<vmem>>, vector<1x8x32xf32>
    %1 = vector.shape_cast %0 : vector<1x8x32xf32> to vector<8x32xf32>
    %c0_2 = arith.constant 0 : index
    %c0_3 = arith.constant 0 : index
    %c0_4 = arith.constant 0 : index
    %2 = vector.load %arg2[%c0_2, %c0_3, %c0_4] : memref<1x8x32xf32, #tpu.memory_space<vmem>>, vector<1x8x32xf32>
    %3 = vector.shape_cast %2 : vector<1x8x32xf32> to vector<8x32xf32>
    %c0_5 = arith.constant 0 : index
    %c0_6 = arith.constant 0 : index
    %4 = vector.load %arg3[%c0_5, %c0_6] : memref<8x8xf32, #tpu.memory_space<vmem>>, vector<8x8xf32>
    %c0_7 = arith.constant 0 : index
    %c0_8 = arith.constant 0 : index
    %5 = vector.load %arg4[%c0_7, %c0_8] : memref<8x8xf32, #tpu.memory_space<vmem>>, vector<8x8xf32>
    %c0_9 = arith.constant 0 : index
    %c0_10 = arith.constant 0 : index
    %6 = vector.load %arg5[%c0_9, %c0_10] : memref<32x96xf32, #tpu.memory_space<vmem>>, vector<32x96xf32>
    %cst = arith.constant dense<0.000000e+00> : vector<8x96xf32>
    %7 = tpu.matmul %1, %6, %cst {dimension_numbers = #tpu.dot_dimension_numbers<[1], [0], [0], [1], [0, 0, 1, 1], [], []>} : vector<8x32xf32>, vector<32x96xf32>, vector<8x96xf32> -> vector<8x96xf32>
    %c0_11 = arith.constant 0 : index
    %c0_12 = arith.constant 0 : index
    %8 = vector.load %arg6[%c0_11, %c0_12] : memref<1x96xf32, #tpu.memory_space<vmem>>, vector<1x96xf32>
    %9 = vector.broadcast %8 : vector<1x96xf32> to vector<8x96xf32>
    %10 = arith.addf %7, %9 : vector<8x96xf32>
    %11 = vector.extract_strided_slice %10 {offsets = [0, 0], sizes = [8, 32], strides = [1, 1]} : vector<8x96xf32> to vector<8x32xf32>
    %12 = vector.extract_strided_slice %10 {offsets = [0, 32], sizes = [8, 32], strides = [1, 1]} : vector<8x96xf32> to vector<8x32xf32>
    %13 = vector.extract_strided_slice %10 {offsets = [0, 64], sizes = [8, 32], strides = [1, 1]} : vector<8x96xf32> to vector<8x32xf32>
    %c0_13 = arith.constant 0 : index
    %c0_14 = arith.constant 0 : index
    %14 = vector.load %arg7[%c0_13, %c0_14] : memref<32x32xf32, #tpu.memory_space<vmem>>, vector<32x32xf32>
    %c0_15 = arith.constant 0 : index
    %c0_16 = arith.constant 0 : index
    %15 = vector.load %arg8[%c0_15, %c0_16] : memref<1x32xf32, #tpu.memory_space<vmem>>, vector<1x32xf32>
    %cst_17 = arith.constant 0.000000e+00 : f32
    %16 = vector.broadcast %cst_17 : f32 to vector<8x32xf32>
    %17 = vector.extract_strided_slice %11 {offsets = [0, 0], sizes = [8, 8], strides = [1, 1]} : vector<8x32xf32> to vector<8x8xf32>
    %18 = vector.extract_strided_slice %12 {offsets = [0, 0], sizes = [8, 8], strides = [1, 1]} : vector<8x32xf32> to vector<8x8xf32>
    %19 = vector.extract_strided_slice %13 {offsets = [0, 0], sizes = [8, 8], strides = [1, 1]} : vector<8x32xf32> to vector<8x8xf32>
    %cst_18 = arith.constant dense<0.000000e+00> : vector<8x8xf32>
    %20 = tpu.matmul %17, %18, %cst_18 {dimension_numbers = #tpu.dot_dimension_numbers<[1], [1], [0], [0], [0, 0, 1, 0], [], []>} : vector<8x8xf32>, vector<8x8xf32>, vector<8x8xf32> -> vector<8x8xf32>
    %cst_19 = arith.constant 0.000000e+00 : f32
    %21 = vector.broadcast %cst_19 : f32 to vector<8x8xf32>
    %22 = arith.cmpf oeq, %4, %21 : vector<8x8xf32>
    %cst_20 = arith.constant -1.000000e+20 : f32
    %23 = vector.broadcast %cst_20 : f32 to vector<8x8xf32>
    %24 = arith.select %22, %23, %20 : vector<8x8xi1>, vector<8x8xf32>
    %cst_21 = arith.constant 0.176776692 : f32
    %25 = vector.broadcast %cst_21 : f32 to vector<8x8xf32>
    %26 = arith.mulf %24, %25 : vector<8x8xf32>
    %cst_22 = arith.constant dense<0xFF800000> : vector<8xf32>
    %27 = vector.multi_reduction <maximumf>, %26, %cst_22 [1] : vector<8x8xf32> to vector<8xf32>
    %28 = vector.shape_cast %27 : vector<8xf32> to vector<8x1xf32>
    %29 = vector.broadcast %28 : vector<8x1xf32> to vector<8x8xf32>
    %30 = arith.subf %26, %29 : vector<8x8xf32>
    %31 = math.exp %30 : vector<8x8xf32>
    %cst_23 = arith.constant dense<0.000000e+00> : vector<8xf32>
    %32 = vector.multi_reduction <add>, %31, %cst_23 [1] : vector<8x8xf32> to vector<8xf32>
    %33 = vector.shape_cast %32 : vector<8xf32> to vector<8x1xf32>
    %34 = tpu.reciprocal %33 {approx = true} : vector<8x1xf32> -> vector<8x1xf32>
    %35 = vector.broadcast %34 : vector<8x1xf32> to vector<8x8xf32>
    %36 = arith.mulf %31, %35 : vector<8x8xf32>
    %cst_24 = arith.constant dense<0.000000e+00> : vector<8x8xf32>
    %37 = tpu.matmul %36, %19, %cst_24 {dimension_numbers = #tpu.dot_dimension_numbers<[1], [0], [0], [1], [0, 0, 1, 1], [], []>} : vector<8x8xf32>, vector<8x8xf32>, vector<8x8xf32> -> vector<8x8xf32>
    %38 = vector.extract_strided_slice %14 {offsets = [0, 0], sizes = [8, 32], strides = [1, 1]} : vector<32x32xf32> to vector<8x32xf32>
    %cst_25 = arith.constant dense<0.000000e+00> : vector<8x32xf32>
    %39 = tpu.matmul %37, %38, %cst_25 {dimension_numbers = #tpu.dot_dimension_numbers<[1], [0], [0], [1], [0, 0, 1, 1], [], []>} : vector<8x8xf32>, vector<8x32xf32>, vector<8x32xf32> -> vector<8x32xf32>
    %40 = arith.addf %16, %39 : vector<8x32xf32>
    %41 = vector.extract_strided_slice %11 {offsets = [0, 8], sizes = [8, 8], strides = [1, 1]} : vector<8x32xf32> to vector<8x8xf32>
    %42 = vector.extract_strided_slice %12 {offsets = [0, 8], sizes = [8, 8], strides = [1, 1]} : vector<8x32xf32> to vector<8x8xf32>
    %43 = vector.extract_strided_slice %13 {offsets = [0, 8], sizes = [8, 8], strides = [1, 1]} : vector<8x32xf32> to vector<8x8xf32>
    %cst_26 = arith.constant dense<0.000000e+00> : vector<8x8xf32>
    %44 = tpu.matmul %41, %42, %cst_26 {dimension_numbers = #tpu.dot_dimension_numbers<[1], [1], [0], [0], [0, 0, 1, 0], [], []>} : vector<8x8xf32>, vector<8x8xf32>, vector<8x8xf32> -> vector<8x8xf32>
    %cst_27 = arith.constant 0.000000e+00 : f32
    %45 = vector.broadcast %cst_27 : f32 to vector<8x8xf32>
    %46 = arith.cmpf oeq, %4, %45 : vector<8x8xf32>
    %cst_28 = arith.constant -1.000000e+20 : f32
    %47 = vector.broadcast %cst_28 : f32 to vector<8x8xf32>
    %48 = arith.select %46, %47, %44 : vector<8x8xi1>, vector<8x8xf32>
    %cst_29 = arith.constant 0.176776692 : f32
    %49 = vector.broadcast %cst_29 : f32 to vector<8x8xf32>
    %50 = arith.mulf %48, %49 : vector<8x8xf32>
    %cst_30 = arith.constant dense<0xFF800000> : vector<8xf32>
    %51 = vector.multi_reduction <maximumf>, %50, %cst_30 [1] : vector<8x8xf32> to vector<8xf32>
    %52 = vector.shape_cast %51 : vector<8xf32> to vector<8x1xf32>
    %53 = vector.broadcast %52 : vector<8x1xf32> to vector<8x8xf32>
    %54 = arith.subf %50, %53 : vector<8x8xf32>
    %55 = math.exp %54 : vector<8x8xf32>
    %cst_31 = arith.constant dense<0.000000e+00> : vector<8xf32>
    %56 = vector.multi_reduction <add>, %55, %cst_31 [1] : vector<8x8xf32> to vector<8xf32>
    %57 = vector.shape_cast %56 : vector<8xf32> to vector<8x1xf32>
    %58 = tpu.reciprocal %57 {approx = true} : vector<8x1xf32> -> vector<8x1xf32>
    %59 = vector.broadcast %58 : vector<8x1xf32> to vector<8x8xf32>
    %60 = arith.mulf %55, %59 : vector<8x8xf32>
    %cst_32 = arith.constant dense<0.000000e+00> : vector<8x8xf32>
    %61 = tpu.matmul %60, %43, %cst_32 {dimension_numbers = #tpu.dot_dimension_numbers<[1], [0], [0], [1], [0, 0, 1, 1], [], []>} : vector<8x8xf32>, vector<8x8xf32>, vector<8x8xf32> -> vector<8x8xf32>
    %62 = vector.extract_strided_slice %14 {offsets = [8, 0], sizes = [8, 32], strides = [1, 1]} : vector<32x32xf32> to vector<8x32xf32>
    %cst_33 = arith.constant dense<0.000000e+00> : vector<8x32xf32>
    %63 = tpu.matmul %61, %62, %cst_33 {dimension_numbers = #tpu.dot_dimension_numbers<[1], [0], [0], [1], [0, 0, 1, 1], [], []>} : vector<8x8xf32>, vector<8x32xf32>, vector<8x32xf32> -> vector<8x32xf32>
    %64 = arith.addf %40, %63 : vector<8x32xf32>
    %65 = vector.extract_strided_slice %11 {offsets = [0, 16], sizes = [8, 8], strides = [1, 1]} : vector<8x32xf32> to vector<8x8xf32>
    %66 = vector.extract_strided_slice %12 {offsets = [0, 16], sizes = [8, 8], strides = [1, 1]} : vector<8x32xf32> to vector<8x8xf32>
    %67 = vector.extract_strided_slice %13 {offsets = [0, 16], sizes = [8, 8], strides = [1, 1]} : vector<8x32xf32> to vector<8x8xf32>
    %cst_34 = arith.constant dense<0.000000e+00> : vector<8x8xf32>
    %68 = tpu.matmul %65, %66, %cst_34 {dimension_numbers = #tpu.dot_dimension_numbers<[1], [1], [0], [0], [0, 0, 1, 0], [], []>} : vector<8x8xf32>, vector<8x8xf32>, vector<8x8xf32> -> vector<8x8xf32>
    %cst_35 = arith.constant 0.000000e+00 : f32
    %69 = vector.broadcast %cst_35 : f32 to vector<8x8xf32>
    %70 = arith.cmpf oeq, %4, %69 : vector<8x8xf32>
    %cst_36 = arith.constant -1.000000e+20 : f32
    %71 = vector.broadcast %cst_36 : f32 to vector<8x8xf32>
    %72 = arith.select %70, %71, %68 : vector<8x8xi1>, vector<8x8xf32>
    %cst_37 = arith.constant 0.176776692 : f32
    %73 = vector.broadcast %cst_37 : f32 to vector<8x8xf32>
    %74 = arith.mulf %72, %73 : vector<8x8xf32>
    %cst_38 = arith.constant dense<0xFF800000> : vector<8xf32>
    %75 = vector.multi_reduction <maximumf>, %74, %cst_38 [1] : vector<8x8xf32> to vector<8xf32>
    %76 = vector.shape_cast %75 : vector<8xf32> to vector<8x1xf32>
    %77 = vector.broadcast %76 : vector<8x1xf32> to vector<8x8xf32>
    %78 = arith.subf %74, %77 : vector<8x8xf32>
    %79 = math.exp %78 : vector<8x8xf32>
    %cst_39 = arith.constant dense<0.000000e+00> : vector<8xf32>
    %80 = vector.multi_reduction <add>, %79, %cst_39 [1] : vector<8x8xf32> to vector<8xf32>
    %81 = vector.shape_cast %80 : vector<8xf32> to vector<8x1xf32>
    %82 = tpu.reciprocal %81 {approx = true} : vector<8x1xf32> -> vector<8x1xf32>
    %83 = vector.broadcast %82 : vector<8x1xf32> to vector<8x8xf32>
    %84 = arith.mulf %79, %83 : vector<8x8xf32>
    %cst_40 = arith.constant dense<0.000000e+00> : vector<8x8xf32>
    %85 = tpu.matmul %84, %67, %cst_40 {dimension_numbers = #tpu.dot_dimension_numbers<[1], [0], [0], [1], [0, 0, 1, 1], [], []>} : vector<8x8xf32>, vector<8x8xf32>, vector<8x8xf32> -> vector<8x8xf32>
    %86 = vector.extract_strided_slice %14 {offsets = [16, 0], sizes = [8, 32], strides = [1, 1]} : vector<32x32xf32> to vector<8x32xf32>
    %cst_41 = arith.constant dense<0.000000e+00> : vector<8x32xf32>
    %87 = tpu.matmul %85, %86, %cst_41 {dimension_numbers = #tpu.dot_dimension_numbers<[1], [0], [0], [1], [0, 0, 1, 1], [], []>} : vector<8x8xf32>, vector<8x32xf32>, vector<8x32xf32> -> vector<8x32xf32>
    %88 = arith.addf %64, %87 : vector<8x32xf32>
    %89 = vector.extract_strided_slice %11 {offsets = [0, 24], sizes = [8, 8], strides = [1, 1]} : vector<8x32xf32> to vector<8x8xf32>
    %90 = vector.extract_strided_slice %12 {offsets = [0, 24], sizes = [8, 8], strides = [1, 1]} : vector<8x32xf32> to vector<8x8xf32>
    %91 = vector.extract_strided_slice %13 {offsets = [0, 24], sizes = [8, 8], strides = [1, 1]} : vector<8x32xf32> to vector<8x8xf32>
    %cst_42 = arith.constant dense<0.000000e+00> : vector<8x8xf32>
    %92 = tpu.matmul %89, %90, %cst_42 {dimension_numbers = #tpu.dot_dimension_numbers<[1], [1], [0], [0], [0, 0, 1, 0], [], []>} : vector<8x8xf32>, vector<8x8xf32>, vector<8x8xf32> -> vector<8x8xf32>
    %cst_43 = arith.constant 0.000000e+00 : f32
    %93 = vector.broadcast %cst_43 : f32 to vector<8x8xf32>
    %94 = arith.cmpf oeq, %4, %93 : vector<8x8xf32>
    %cst_44 = arith.constant -1.000000e+20 : f32
    %95 = vector.broadcast %cst_44 : f32 to vector<8x8xf32>
    %96 = arith.select %94, %95, %92 : vector<8x8xi1>, vector<8x8xf32>
    %cst_45 = arith.constant 0.176776692 : f32
    %97 = vector.broadcast %cst_45 : f32 to vector<8x8xf32>
    %98 = arith.mulf %96, %97 : vector<8x8xf32>
    %cst_46 = arith.constant dense<0xFF800000> : vector<8xf32>
    %99 = vector.multi_reduction <maximumf>, %98, %cst_46 [1] : vector<8x8xf32> to vector<8xf32>
    %100 = vector.shape_cast %99 : vector<8xf32> to vector<8x1xf32>
    %101 = vector.broadcast %100 : vector<8x1xf32> to vector<8x8xf32>
    %102 = arith.subf %98, %101 : vector<8x8xf32>
    %103 = math.exp %102 : vector<8x8xf32>
    %cst_47 = arith.constant dense<0.000000e+00> : vector<8xf32>
    %104 = vector.multi_reduction <add>, %103, %cst_47 [1] : vector<8x8xf32> to vector<8xf32>
    %105 = vector.shape_cast %104 : vector<8xf32> to vector<8x1xf32>
    %106 = tpu.reciprocal %105 {approx = true} : vector<8x1xf32> -> vector<8x1xf32>
    %107 = vector.broadcast %106 : vector<8x1xf32> to vector<8x8xf32>
    %108 = arith.mulf %103, %107 : vector<8x8xf32>
    %cst_48 = arith.constant dense<0.000000e+00> : vector<8x8xf32>
    %109 = tpu.matmul %108, %91, %cst_48 {dimension_numbers = #tpu.dot_dimension_numbers<[1], [0], [0], [1], [0, 0, 1, 1], [], []>} : vector<8x8xf32>, vector<8x8xf32>, vector<8x8xf32> -> vector<8x8xf32>
    %110 = vector.extract_strided_slice %14 {offsets = [24, 0], sizes = [8, 32], strides = [1, 1]} : vector<32x32xf32> to vector<8x32xf32>
    %cst_49 = arith.constant dense<0.000000e+00> : vector<8x32xf32>
    %111 = tpu.matmul %109, %110, %cst_49 {dimension_numbers = #tpu.dot_dimension_numbers<[1], [0], [0], [1], [0, 0, 1, 1], [], []>} : vector<8x8xf32>, vector<8x32xf32>, vector<8x32xf32> -> vector<8x32xf32>
    %112 = arith.addf %88, %111 : vector<8x32xf32>
    %113 = vector.broadcast %15 : vector<1x32xf32> to vector<8x32xf32>
    %114 = arith.addf %112, %113 : vector<8x32xf32>
    %115 = arith.addf %114, %1 : vector<8x32xf32>
    %c0_50 = arith.constant 0 : index
    %c0_51 = arith.constant 0 : index
    %116 = vector.load %arg9[%c0_50, %c0_51] : memref<1x32xf32, #tpu.memory_space<vmem>>, vector<1x32xf32>
    %c0_52 = arith.constant 0 : index
    %c0_53 = arith.constant 0 : index
    %117 = vector.load %arg10[%c0_52, %c0_53] : memref<1x32xf32, #tpu.memory_space<vmem>>, vector<1x32xf32>
    %cst_54 = arith.constant dense<0.000000e+00> : vector<8xf32>
    %118 = vector.multi_reduction <add>, %115, %cst_54 [1] : vector<8x32xf32> to vector<8xf32>
    %119 = vector.shape_cast %118 : vector<8xf32> to vector<8x1xf32>
    %cst_55 = arith.constant 3.200000e+01 : f32
    %120 = vector.broadcast %cst_55 : f32 to vector<8x1xf32>
    %121 = arith.divf %119, %120 : vector<8x1xf32>
    %122 = vector.broadcast %121 : vector<8x1xf32> to vector<8x32xf32>
    %123 = arith.subf %115, %122 : vector<8x32xf32>
    %124 = arith.mulf %123, %123 : vector<8x32xf32>
    %cst_56 = arith.constant dense<0.000000e+00> : vector<8xf32>
    %125 = vector.multi_reduction <add>, %124, %cst_56 [1] : vector<8x32xf32> to vector<8xf32>
    %126 = vector.shape_cast %125 : vector<8xf32> to vector<8x1xf32>
    %cst_57 = arith.constant 3.200000e+01 : f32
    %127 = vector.broadcast %cst_57 : f32 to vector<8x1xf32>
    %128 = arith.divf %126, %127 : vector<8x1xf32>
    %129 = vector.broadcast %121 : vector<8x1xf32> to vector<8x32xf32>
    %130 = arith.subf %115, %129 : vector<8x32xf32>
    %cst_58 = arith.constant 9.99999974E-6 : f32
    %131 = vector.broadcast %cst_58 : f32 to vector<8x1xf32>
    %132 = arith.addf %128, %131 : vector<8x1xf32>
    %133 = math.rsqrt %132 : vector<8x1xf32>
    %134 = vector.broadcast %133 : vector<8x1xf32> to vector<8x32xf32>
    %135 = arith.mulf %130, %134 : vector<8x32xf32>
    %136 = vector.broadcast %116 : vector<1x32xf32> to vector<8x32xf32>
    %137 = arith.mulf %135, %136 : vector<8x32xf32>
    %138 = vector.broadcast %117 : vector<1x32xf32> to vector<8x32xf32>
    %139 = arith.addf %137, %138 : vector<8x32xf32>
    %c0_59 = arith.constant 0 : index
    %c0_60 = arith.constant 0 : index
    %140 = vector.load %arg11[%c0_59, %c0_60] : memref<32x32xf32, #tpu.memory_space<vmem>>, vector<32x32xf32>
    %cst_61 = arith.constant dense<0.000000e+00> : vector<8x32xf32>
    %141 = tpu.matmul %139, %140, %cst_61 {dimension_numbers = #tpu.dot_dimension_numbers<[1], [0], [0], [1], [0, 0, 1, 1], [], []>} : vector<8x32xf32>, vector<32x32xf32>, vector<8x32xf32> -> vector<8x32xf32>
    %c0_62 = arith.constant 0 : index
    %c0_63 = arith.constant 0 : index
    %142 = vector.load %arg12[%c0_62, %c0_63] : memref<1x32xf32, #tpu.memory_space<vmem>>, vector<1x32xf32>
    %143 = vector.broadcast %142 : vector<1x32xf32> to vector<8x32xf32>
    %144 = arith.addf %141, %143 : vector<8x32xf32>
    %c0_64 = arith.constant 0 : index
    %c0_65 = arith.constant 0 : index
    %145 = vector.load %arg13[%c0_64, %c0_65] : memref<32x64xf32, #tpu.memory_space<vmem>>, vector<32x64xf32>
    %cst_66 = arith.constant dense<0.000000e+00> : vector<8x64xf32>
    %146 = tpu.matmul %3, %145, %cst_66 {dimension_numbers = #tpu.dot_dimension_numbers<[1], [0], [0], [1], [0, 0, 1, 1], [], []>} : vector<8x32xf32>, vector<32x64xf32>, vector<8x64xf32> -> vector<8x64xf32>
    %c0_67 = arith.constant 0 : index
    %c0_68 = arith.constant 0 : index
    %147 = vector.load %arg14[%c0_67, %c0_68] : memref<1x64xf32, #tpu.memory_space<vmem>>, vector<1x64xf32>
    %148 = vector.broadcast %147 : vector<1x64xf32> to vector<8x64xf32>
    %149 = arith.addf %146, %148 : vector<8x64xf32>
    %150 = vector.extract_strided_slice %149 {offsets = [0, 0], sizes = [8, 32], strides = [1, 1]} : vector<8x64xf32> to vector<8x32xf32>
    %151 = vector.extract_strided_slice %149 {offsets = [0, 32], sizes = [8, 32], strides = [1, 1]} : vector<8x64xf32> to vector<8x32xf32>
    %c0_69 = arith.constant 0 : index
    %c0_70 = arith.constant 0 : index
    %152 = vector.load %arg15[%c0_69, %c0_70] : memref<32x32xf32, #tpu.memory_space<vmem>>, vector<32x32xf32>
    %c0_71 = arith.constant 0 : index
    %c0_72 = arith.constant 0 : index
    %153 = vector.load %arg16[%c0_71, %c0_72] : memref<1x32xf32, #tpu.memory_space<vmem>>, vector<1x32xf32>
    %cst_73 = arith.constant 0.000000e+00 : f32
    %154 = vector.broadcast %cst_73 : f32 to vector<8x32xf32>
    %155 = vector.extract_strided_slice %144 {offsets = [0, 0], sizes = [8, 8], strides = [1, 1]} : vector<8x32xf32> to vector<8x8xf32>
    %156 = vector.extract_strided_slice %150 {offsets = [0, 0], sizes = [8, 8], strides = [1, 1]} : vector<8x32xf32> to vector<8x8xf32>
    %157 = vector.extract_strided_slice %151 {offsets = [0, 0], sizes = [8, 8], strides = [1, 1]} : vector<8x32xf32> to vector<8x8xf32>
    %cst_74 = arith.constant dense<0.000000e+00> : vector<8x8xf32>
    %158 = tpu.matmul %155, %156, %cst_74 {dimension_numbers = #tpu.dot_dimension_numbers<[1], [1], [0], [0], [0, 0, 1, 0], [], []>} : vector<8x8xf32>, vector<8x8xf32>, vector<8x8xf32> -> vector<8x8xf32>
    %cst_75 = arith.constant 0.000000e+00 : f32
    %159 = vector.broadcast %cst_75 : f32 to vector<8x8xf32>
    %160 = arith.cmpf oeq, %5, %159 : vector<8x8xf32>
    %cst_76 = arith.constant -1.000000e+20 : f32
    %161 = vector.broadcast %cst_76 : f32 to vector<8x8xf32>
    %162 = arith.select %160, %161, %158 : vector<8x8xi1>, vector<8x8xf32>
    %cst_77 = arith.constant 0.176776692 : f32
    %163 = vector.broadcast %cst_77 : f32 to vector<8x8xf32>
    %164 = arith.mulf %162, %163 : vector<8x8xf32>
    %cst_78 = arith.constant dense<0xFF800000> : vector<8xf32>
    %165 = vector.multi_reduction <maximumf>, %164, %cst_78 [1] : vector<8x8xf32> to vector<8xf32>
    %166 = vector.shape_cast %165 : vector<8xf32> to vector<8x1xf32>
    %167 = vector.broadcast %166 : vector<8x1xf32> to vector<8x8xf32>
    %168 = arith.subf %164, %167 : vector<8x8xf32>
    %169 = math.exp %168 : vector<8x8xf32>
    %cst_79 = arith.constant dense<0.000000e+00> : vector<8xf32>
    %170 = vector.multi_reduction <add>, %169, %cst_79 [1] : vector<8x8xf32> to vector<8xf32>
    %171 = vector.shape_cast %170 : vector<8xf32> to vector<8x1xf32>
    %172 = tpu.reciprocal %171 {approx = true} : vector<8x1xf32> -> vector<8x1xf32>
    %173 = vector.broadcast %172 : vector<8x1xf32> to vector<8x8xf32>
    %174 = arith.mulf %169, %173 : vector<8x8xf32>
    %cst_80 = arith.constant dense<0.000000e+00> : vector<8x8xf32>
    %175 = tpu.matmul %174, %157, %cst_80 {dimension_numbers = #tpu.dot_dimension_numbers<[1], [0], [0], [1], [0, 0, 1, 1], [], []>} : vector<8x8xf32>, vector<8x8xf32>, vector<8x8xf32> -> vector<8x8xf32>
    %176 = vector.extract_strided_slice %152 {offsets = [0, 0], sizes = [8, 32], strides = [1, 1]} : vector<32x32xf32> to vector<8x32xf32>
    %cst_81 = arith.constant dense<0.000000e+00> : vector<8x32xf32>
    %177 = tpu.matmul %175, %176, %cst_81 {dimension_numbers = #tpu.dot_dimension_numbers<[1], [0], [0], [1], [0, 0, 1, 1], [], []>} : vector<8x8xf32>, vector<8x32xf32>, vector<8x32xf32> -> vector<8x32xf32>
    %178 = arith.addf %154, %177 : vector<8x32xf32>
    %179 = vector.extract_strided_slice %144 {offsets = [0, 8], sizes = [8, 8], strides = [1, 1]} : vector<8x32xf32> to vector<8x8xf32>
    %180 = vector.extract_strided_slice %150 {offsets = [0, 8], sizes = [8, 8], strides = [1, 1]} : vector<8x32xf32> to vector<8x8xf32>
    %181 = vector.extract_strided_slice %151 {offsets = [0, 8], sizes = [8, 8], strides = [1, 1]} : vector<8x32xf32> to vector<8x8xf32>
    %cst_82 = arith.constant dense<0.000000e+00> : vector<8x8xf32>
    %182 = tpu.matmul %179, %180, %cst_82 {dimension_numbers = #tpu.dot_dimension_numbers<[1], [1], [0], [0], [0, 0, 1, 0], [], []>} : vector<8x8xf32>, vector<8x8xf32>, vector<8x8xf32> -> vector<8x8xf32>
    %cst_83 = arith.constant 0.000000e+00 : f32
    %183 = vector.broadcast %cst_83 : f32 to vector<8x8xf32>
    %184 = arith.cmpf oeq, %5, %183 : vector<8x8xf32>
    %cst_84 = arith.constant -1.000000e+20 : f32
    %185 = vector.broadcast %cst_84 : f32 to vector<8x8xf32>
    %186 = arith.select %184, %185, %182 : vector<8x8xi1>, vector<8x8xf32>
    %cst_85 = arith.constant 0.176776692 : f32
    %187 = vector.broadcast %cst_85 : f32 to vector<8x8xf32>
    %188 = arith.mulf %186, %187 : vector<8x8xf32>
    %cst_86 = arith.constant dense<0xFF800000> : vector<8xf32>
    %189 = vector.multi_reduction <maximumf>, %188, %cst_86 [1] : vector<8x8xf32> to vector<8xf32>
    %190 = vector.shape_cast %189 : vector<8xf32> to vector<8x1xf32>
    %191 = vector.broadcast %190 : vector<8x1xf32> to vector<8x8xf32>
    %192 = arith.subf %188, %191 : vector<8x8xf32>
    %193 = math.exp %192 : vector<8x8xf32>
    %cst_87 = arith.constant dense<0.000000e+00> : vector<8xf32>
    %194 = vector.multi_reduction <add>, %193, %cst_87 [1] : vector<8x8xf32> to vector<8xf32>
    %195 = vector.shape_cast %194 : vector<8xf32> to vector<8x1xf32>
    %196 = tpu.reciprocal %195 {approx = true} : vector<8x1xf32> -> vector<8x1xf32>
    %197 = vector.broadcast %196 : vector<8x1xf32> to vector<8x8xf32>
    %198 = arith.mulf %193, %197 : vector<8x8xf32>
    %cst_88 = arith.constant dense<0.000000e+00> : vector<8x8xf32>
    %199 = tpu.matmul %198, %181, %cst_88 {dimension_numbers = #tpu.dot_dimension_numbers<[1], [0], [0], [1], [0, 0, 1, 1], [], []>} : vector<8x8xf32>, vector<8x8xf32>, vector<8x8xf32> -> vector<8x8xf32>
    %200 = vector.extract_strided_slice %152 {offsets = [8, 0], sizes = [8, 32], strides = [1, 1]} : vector<32x32xf32> to vector<8x32xf32>
    %cst_89 = arith.constant dense<0.000000e+00> : vector<8x32xf32>
    %201 = tpu.matmul %199, %200, %cst_89 {dimension_numbers = #tpu.dot_dimension_numbers<[1], [0], [0], [1], [0, 0, 1, 1], [], []>} : vector<8x8xf32>, vector<8x32xf32>, vector<8x32xf32> -> vector<8x32xf32>
    %202 = arith.addf %178, %201 : vector<8x32xf32>
    %203 = vector.extract_strided_slice %144 {offsets = [0, 16], sizes = [8, 8], strides = [1, 1]} : vector<8x32xf32> to vector<8x8xf32>
    %204 = vector.extract_strided_slice %150 {offsets = [0, 16], sizes = [8, 8], strides = [1, 1]} : vector<8x32xf32> to vector<8x8xf32>
    %205 = vector.extract_strided_slice %151 {offsets = [0, 16], sizes = [8, 8], strides = [1, 1]} : vector<8x32xf32> to vector<8x8xf32>
    %cst_90 = arith.constant dense<0.000000e+00> : vector<8x8xf32>
    %206 = tpu.matmul %203, %204, %cst_90 {dimension_numbers = #tpu.dot_dimension_numbers<[1], [1], [0], [0], [0, 0, 1, 0], [], []>} : vector<8x8xf32>, vector<8x8xf32>, vector<8x8xf32> -> vector<8x8xf32>
    %cst_91 = arith.constant 0.000000e+00 : f32
    %207 = vector.broadcast %cst_91 : f32 to vector<8x8xf32>
    %208 = arith.cmpf oeq, %5, %207 : vector<8x8xf32>
    %cst_92 = arith.constant -1.000000e+20 : f32
    %209 = vector.broadcast %cst_92 : f32 to vector<8x8xf32>
    %210 = arith.select %208, %209, %206 : vector<8x8xi1>, vector<8x8xf32>
    %cst_93 = arith.constant 0.176776692 : f32
    %211 = vector.broadcast %cst_93 : f32 to vector<8x8xf32>
    %212 = arith.mulf %210, %211 : vector<8x8xf32>
    %cst_94 = arith.constant dense<0xFF800000> : vector<8xf32>
    %213 = vector.multi_reduction <maximumf>, %212, %cst_94 [1] : vector<8x8xf32> to vector<8xf32>
    %214 = vector.shape_cast %213 : vector<8xf32> to vector<8x1xf32>
    %215 = vector.broadcast %214 : vector<8x1xf32> to vector<8x8xf32>
    %216 = arith.subf %212, %215 : vector<8x8xf32>
    %217 = math.exp %216 : vector<8x8xf32>
    %cst_95 = arith.constant dense<0.000000e+00> : vector<8xf32>
    %218 = vector.multi_reduction <add>, %217, %cst_95 [1] : vector<8x8xf32> to vector<8xf32>
    %219 = vector.shape_cast %218 : vector<8xf32> to vector<8x1xf32>
    %220 = tpu.reciprocal %219 {approx = true} : vector<8x1xf32> -> vector<8x1xf32>
    %221 = vector.broadcast %220 : vector<8x1xf32> to vector<8x8xf32>
    %222 = arith.mulf %217, %221 : vector<8x8xf32>
    %cst_96 = arith.constant dense<0.000000e+00> : vector<8x8xf32>
    %223 = tpu.matmul %222, %205, %cst_96 {dimension_numbers = #tpu.dot_dimension_numbers<[1], [0], [0], [1], [0, 0, 1, 1], [], []>} : vector<8x8xf32>, vector<8x8xf32>, vector<8x8xf32> -> vector<8x8xf32>
    %224 = vector.extract_strided_slice %152 {offsets = [16, 0], sizes = [8, 32], strides = [1, 1]} : vector<32x32xf32> to vector<8x32xf32>
    %cst_97 = arith.constant dense<0.000000e+00> : vector<8x32xf32>
    %225 = tpu.matmul %223, %224, %cst_97 {dimension_numbers = #tpu.dot_dimension_numbers<[1], [0], [0], [1], [0, 0, 1, 1], [], []>} : vector<8x8xf32>, vector<8x32xf32>, vector<8x32xf32> -> vector<8x32xf32>
    %226 = arith.addf %202, %225 : vector<8x32xf32>
    %227 = vector.extract_strided_slice %144 {offsets = [0, 24], sizes = [8, 8], strides = [1, 1]} : vector<8x32xf32> to vector<8x8xf32>
    %228 = vector.extract_strided_slice %150 {offsets = [0, 24], sizes = [8, 8], strides = [1, 1]} : vector<8x32xf32> to vector<8x8xf32>
    %229 = vector.extract_strided_slice %151 {offsets = [0, 24], sizes = [8, 8], strides = [1, 1]} : vector<8x32xf32> to vector<8x8xf32>
    %cst_98 = arith.constant dense<0.000000e+00> : vector<8x8xf32>
    %230 = tpu.matmul %227, %228, %cst_98 {dimension_numbers = #tpu.dot_dimension_numbers<[1], [1], [0], [0], [0, 0, 1, 0], [], []>} : vector<8x8xf32>, vector<8x8xf32>, vector<8x8xf32> -> vector<8x8xf32>
    %cst_99 = arith.constant 0.000000e+00 : f32
    %231 = vector.broadcast %cst_99 : f32 to vector<8x8xf32>
    %232 = arith.cmpf oeq, %5, %231 : vector<8x8xf32>
    %cst_100 = arith.constant -1.000000e+20 : f32
    %233 = vector.broadcast %cst_100 : f32 to vector<8x8xf32>
    %234 = arith.select %232, %233, %230 : vector<8x8xi1>, vector<8x8xf32>
    %cst_101 = arith.constant 0.176776692 : f32
    %235 = vector.broadcast %cst_101 : f32 to vector<8x8xf32>
    %236 = arith.mulf %234, %235 : vector<8x8xf32>
    %cst_102 = arith.constant dense<0xFF800000> : vector<8xf32>
    %237 = vector.multi_reduction <maximumf>, %236, %cst_102 [1] : vector<8x8xf32> to vector<8xf32>
    %238 = vector.shape_cast %237 : vector<8xf32> to vector<8x1xf32>
    %239 = vector.broadcast %238 : vector<8x1xf32> to vector<8x8xf32>
    %240 = arith.subf %236, %239 : vector<8x8xf32>
    %241 = math.exp %240 : vector<8x8xf32>
    %cst_103 = arith.constant dense<0.000000e+00> : vector<8xf32>
    %242 = vector.multi_reduction <add>, %241, %cst_103 [1] : vector<8x8xf32> to vector<8xf32>
    %243 = vector.shape_cast %242 : vector<8xf32> to vector<8x1xf32>
    %244 = tpu.reciprocal %243 {approx = true} : vector<8x1xf32> -> vector<8x1xf32>
    %245 = vector.broadcast %244 : vector<8x1xf32> to vector<8x8xf32>
    %246 = arith.mulf %241, %245 : vector<8x8xf32>
    %cst_104 = arith.constant dense<0.000000e+00> : vector<8x8xf32>
    %247 = tpu.matmul %246, %229, %cst_104 {dimension_numbers = #tpu.dot_dimension_numbers<[1], [0], [0], [1], [0, 0, 1, 1], [], []>} : vector<8x8xf32>, vector<8x8xf32>, vector<8x8xf32> -> vector<8x8xf32>
    %248 = vector.extract_strided_slice %152 {offsets = [24, 0], sizes = [8, 32], strides = [1, 1]} : vector<32x32xf32> to vector<8x32xf32>
    %cst_105 = arith.constant dense<0.000000e+00> : vector<8x32xf32>
    %249 = tpu.matmul %247, %248, %cst_105 {dimension_numbers = #tpu.dot_dimension_numbers<[1], [0], [0], [1], [0, 0, 1, 1], [], []>} : vector<8x8xf32>, vector<8x32xf32>, vector<8x32xf32> -> vector<8x32xf32>
    %250 = arith.addf %226, %249 : vector<8x32xf32>
    %251 = vector.broadcast %153 : vector<1x32xf32> to vector<8x32xf32>
    %252 = arith.addf %250, %251 : vector<8x32xf32>
    %253 = arith.addf %252, %139 : vector<8x32xf32>
    %c0_106 = arith.constant 0 : index
    %c0_107 = arith.constant 0 : index
    %254 = vector.load %arg17[%c0_106, %c0_107] : memref<1x32xf32, #tpu.memory_space<vmem>>, vector<1x32xf32>
    %c0_108 = arith.constant 0 : index
    %c0_109 = arith.constant 0 : index
    %255 = vector.load %arg18[%c0_108, %c0_109] : memref<1x32xf32, #tpu.memory_space<vmem>>, vector<1x32xf32>
    %cst_110 = arith.constant dense<0.000000e+00> : vector<8xf32>
    %256 = vector.multi_reduction <add>, %253, %cst_110 [1] : vector<8x32xf32> to vector<8xf32>
    %257 = vector.shape_cast %256 : vector<8xf32> to vector<8x1xf32>
    %cst_111 = arith.constant 3.200000e+01 : f32
    %258 = vector.broadcast %cst_111 : f32 to vector<8x1xf32>
    %259 = arith.divf %257, %258 : vector<8x1xf32>
    %260 = vector.broadcast %259 : vector<8x1xf32> to vector<8x32xf32>
    %261 = arith.subf %253, %260 : vector<8x32xf32>
    %262 = arith.mulf %261, %261 : vector<8x32xf32>
    %cst_112 = arith.constant dense<0.000000e+00> : vector<8xf32>
    %263 = vector.multi_reduction <add>, %262, %cst_112 [1] : vector<8x32xf32> to vector<8xf32>
    %264 = vector.shape_cast %263 : vector<8xf32> to vector<8x1xf32>
    %cst_113 = arith.constant 3.200000e+01 : f32
    %265 = vector.broadcast %cst_113 : f32 to vector<8x1xf32>
    %266 = arith.divf %264, %265 : vector<8x1xf32>
    %267 = vector.broadcast %259 : vector<8x1xf32> to vector<8x32xf32>
    %268 = arith.subf %253, %267 : vector<8x32xf32>
    %cst_114 = arith.constant 9.99999974E-6 : f32
    %269 = vector.broadcast %cst_114 : f32 to vector<8x1xf32>
    %270 = arith.addf %266, %269 : vector<8x1xf32>
    %271 = math.rsqrt %270 : vector<8x1xf32>
    %272 = vector.broadcast %271 : vector<8x1xf32> to vector<8x32xf32>
    %273 = arith.mulf %268, %272 : vector<8x32xf32>
    %274 = vector.broadcast %254 : vector<1x32xf32> to vector<8x32xf32>
    %275 = arith.mulf %273, %274 : vector<8x32xf32>
    %276 = vector.broadcast %255 : vector<1x32xf32> to vector<8x32xf32>
    %277 = arith.addf %275, %276 : vector<8x32xf32>
    %c0_115 = arith.constant 0 : index
    %c0_116 = arith.constant 0 : index
    %278 = vector.load %arg19[%c0_115, %c0_116] : memref<32x128xf32, #tpu.memory_space<vmem>>, vector<32x128xf32>
    %cst_117 = arith.constant dense<0.000000e+00> : vector<8x128xf32>
    %279 = tpu.matmul %277, %278, %cst_117 {dimension_numbers = #tpu.dot_dimension_numbers<[1], [0], [0], [1], [0, 0, 1, 1], [], []>} : vector<8x32xf32>, vector<32x128xf32>, vector<8x128xf32> -> vector<8x128xf32>
    %c0_118 = arith.constant 0 : index
    %c0_119 = arith.constant 0 : index
    %280 = vector.load %arg20[%c0_118, %c0_119] : memref<1x128xf32, #tpu.memory_space<vmem>>, vector<1x128xf32>
    %281 = vector.broadcast %280 : vector<1x128xf32> to vector<8x128xf32>
    %282 = arith.addf %279, %281 : vector<8x128xf32>
    %cst_120 = arith.constant 0.000000e+00 : f32
    %283 = vector.broadcast %cst_120 : f32 to vector<8x128xf32>
    %284 = arith.maximumf %282, %283 : vector<8x128xf32>
    %c0_121 = arith.constant 0 : index
    %c0_122 = arith.constant 0 : index
    %285 = vector.load %arg21[%c0_121, %c0_122] : memref<128x32xf32, #tpu.memory_space<vmem>>, vector<128x32xf32>
    %cst_123 = arith.constant dense<0.000000e+00> : vector<8x32xf32>
    %286 = tpu.matmul %284, %285, %cst_123 {dimension_numbers = #tpu.dot_dimension_numbers<[1], [0], [0], [1], [0, 0, 1, 1], [], []>} : vector<8x128xf32>, vector<128x32xf32>, vector<8x32xf32> -> vector<8x32xf32>
    %c0_124 = arith.constant 0 : index
    %c0_125 = arith.constant 0 : index
    %287 = vector.load %arg22[%c0_124, %c0_125] : memref<1x32xf32, #tpu.memory_space<vmem>>, vector<1x32xf32>
    %288 = vector.broadcast %287 : vector<1x32xf32> to vector<8x32xf32>
    %289 = arith.addf %286, %288 : vector<8x32xf32>
    %290 = arith.addf %277, %289 : vector<8x32xf32>
    %c0_126 = arith.constant 0 : index
    %c0_127 = arith.constant 0 : index
    %291 = vector.load %arg23[%c0_126, %c0_127] : memref<1x32xf32, #tpu.memory_space<vmem>>, vector<1x32xf32>
    %c0_128 = arith.constant 0 : index
    %c0_129 = arith.constant 0 : index
    %292 = vector.load %arg24[%c0_128, %c0_129] : memref<1x32xf32, #tpu.memory_space<vmem>>, vector<1x32xf32>
    %cst_130 = arith.constant dense<0.000000e+00> : vector<8xf32>
    %293 = vector.multi_reduction <add>, %290, %cst_130 [1] : vector<8x32xf32> to vector<8xf32>
    %294 = vector.shape_cast %293 : vector<8xf32> to vector<8x1xf32>
    %cst_131 = arith.constant 3.200000e+01 : f32
    %295 = vector.broadcast %cst_131 : f32 to vector<8x1xf32>
    %296 = arith.divf %294, %295 : vector<8x1xf32>
    %297 = vector.broadcast %296 : vector<8x1xf32> to vector<8x32xf32>
    %298 = arith.subf %290, %297 : vector<8x32xf32>
    %299 = arith.mulf %298, %298 : vector<8x32xf32>
    %cst_132 = arith.constant dense<0.000000e+00> : vector<8xf32>
    %300 = vector.multi_reduction <add>, %299, %cst_132 [1] : vector<8x32xf32> to vector<8xf32>
    %301 = vector.shape_cast %300 : vector<8xf32> to vector<8x1xf32>
    %cst_133 = arith.constant 3.200000e+01 : f32
    %302 = vector.broadcast %cst_133 : f32 to vector<8x1xf32>
    %303 = arith.divf %301, %302 : vector<8x1xf32>
    %304 = vector.broadcast %296 : vector<8x1xf32> to vector<8x32xf32>
    %305 = arith.subf %290, %304 : vector<8x32xf32>
    %cst_134 = arith.constant 9.99999974E-6 : f32
    %306 = vector.broadcast %cst_134 : f32 to vector<8x1xf32>
    %307 = arith.addf %303, %306 : vector<8x1xf32>
    %308 = math.rsqrt %307 : vector<8x1xf32>
    %309 = vector.broadcast %308 : vector<8x1xf32> to vector<8x32xf32>
    %310 = arith.mulf %305, %309 : vector<8x32xf32>
    %311 = vector.broadcast %291 : vector<1x32xf32> to vector<8x32xf32>
    %312 = arith.mulf %310, %311 : vector<8x32xf32>
    %313 = vector.broadcast %292 : vector<1x32xf32> to vector<8x32xf32>
    %314 = arith.addf %312, %313 : vector<8x32xf32>
    %c0_135 = arith.constant 0 : index
    %c0_136 = arith.constant 0 : index
    %c0_137 = arith.constant 0 : index
    %315 = vector.load %arg25[%c0_135, %c0_136, %c0_137] : memref<1x8x32xf32, #tpu.memory_space<vmem>>, vector<1x8x32xf32>
    %316 = vector.shape_cast %315 : vector<1x8x32xf32> to vector<8x32xf32>
    %317 = vector.shape_cast %314 : vector<8x32xf32> to vector<1x8x32xf32>
    tpu.vector_store %arg25[%c0_135, %c0_136, %c0_137], %317 {strides = array<i32>} : memref<1x8x32xf32, #tpu.memory_space<vmem>>, vector<1x8x32xf32>,
    return
  }
  func.func @transform_0(%arg0: i32) -> (i32, i32, i32) {
    %c0_i32 = arith.constant 0 : i32
    %c0_i32_0 = arith.constant 0 : i32
    %c0_i32_1 = arith.constant 0 : i32
    return %arg0, %c0_i32, %c0_i32_0 : i32, i32, i32
  }
  func.func @transform_1(%arg0: i32) -> (i32, i32, i32) {
    %c0_i32 = arith.constant 0 : i32
    %c0_i32_0 = arith.constant 0 : i32
    %c0_i32_1 = arith.constant 0 : i32
    return %arg0, %c0_i32, %c0_i32_0 : i32, i32, i32
  }
  func.func @transform_2(%arg0: i32) -> (i32, i32) {
    %c0_i32 = arith.constant 0 : i32
    %c0_i32_0 = arith.constant 0 : i32
    %c0_i32_1 = arith.constant 0 : i32
    return %c0_i32, %c0_i32_0 : i32, i32
  }
  func.func @transform_3(%arg0: i32) -> (i32, i32) {
    %c0_i32 = arith.constant 0 : i32
    %c0_i32_0 = arith.constant 0 : i32
    %c0_i32_1 = arith.constant 0 : i32
    return %c0_i32, %c0_i32_0 : i32, i32
  }
  func.func @transform_4(%arg0: i32) -> (i32, i32) {
    %c0_i32 = arith.constant 0 : i32
    %c0_i32_0 = arith.constant 0 : i32
    %c0_i32_1 = arith.constant 0 : i32
    return %c0_i32, %c0_i32_0 : i32, i32
  }
  func.func @transform_5(%arg0: i32) -> (i32, i32) {
    %c0_i32 = arith.constant 0 : i32
    %c0_i32_0 = arith.constant 0 : i32
    %c0_i32_1 = arith.constant 0 : i32
    return %c0_i32, %c0_i32_0 : i32, i32
  }
  func.func @transform_6(%arg0: i32) -> (i32, i32) {
    %c0_i32 = arith.constant 0 : i32
    %c0_i32_0 = arith.constant 0 : i32
    %c0_i32_1 = arith.constant 0 : i32
    return %c0_i32, %c0_i32_0 : i32, i32
  }
  func.func @transform_7(%arg0: i32) -> (i32, i32) {
    %c0_i32 = arith.constant 0 : i32
    %c0_i32_0 = arith.constant 0 : i32
    %c0_i32_1 = arith.constant 0 : i32
    return %c0_i32, %c0_i32_0 : i32, i32
  }
  func.func @transform_8(%arg0: i32) -> (i32, i32) {
    %c0_i32 = arith.constant 0 : i32
    %c0_i32_0 = arith.constant 0 : i32
    %c0_i32_1 = arith.constant 0 : i32
    return %c0_i32, %c0_i32_0 : i32, i32
  }
  func.func @transform_9(%arg0: i32) -> (i32, i32) {
    %c0_i32 = arith.constant 0 : i32
    %c0_i32_0 = arith.constant 0 : i32
    %c0_i32_1 = arith.constant 0 : i32
    return %c0_i32, %c0_i32_0 : i32, i32
  }
  func.func @transform_10(%arg0: i32) -> (i32, i32) {
    %c0_i32 = arith.constant 0 : i32
    %c0_i32_0 = arith.constant 0 : i32
    %c0_i32_1 = arith.constant 0 : i32
    return %c0_i32, %c0_i32_0 : i32, i32
  }
  func.func @transform_11(%arg0: i32) -> (i32, i32) {
    %c0_i32 = arith.constant 0 : i32
    %c0_i32_0 = arith.constant 0 : i32
    %c0_i32_1 = arith.constant 0 : i32
    return %c0_i32, %c0_i32_0 : i32, i32
  }
  func.func @transform_12(%arg0: i32) -> (i32, i32) {
    %c0_i32 = arith.constant 0 : i32
    %c0_i32_0 = arith.constant 0 : i32
    %c0_i32_1 = arith.constant 0 : i32
    return %c0_i32, %c0_i32_0 : i32, i32
  }
  func.func @transform_13(%arg0: i32) -> (i32, i32) {
    %c0_i32 = arith.constant 0 : i32
    %c0_i32_0 = arith.constant 0 : i32
    %c0_i32_1 = arith.constant 0 : i32
    return %c0_i32, %c0_i32_0 : i32, i32
  }
  func.func @transform_14(%arg0: i32) -> (i32, i32) {
    %c0_i32 = arith.constant 0 : i32
    %c0_i32_0 = arith.constant 0 : i32
    %c0_i32_1 = arith.constant 0 : i32
    return %c0_i32, %c0_i32_0 : i32, i32
  }
  func.func @transform_15(%arg0: i32) -> (i32, i32) {
    %c0_i32 = arith.constant 0 : i32
    %c0_i32_0 = arith.constant 0 : i32
    %c0_i32_1 = arith.constant 0 : i32
    return %c0_i32, %c0_i32_0 : i32, i32
  }
  func.func @transform_16(%arg0: i32) -> (i32, i32) {
    %c0_i32 = arith.constant 0 : i32
    %c0_i32_0 = arith.constant 0 : i32
    %c0_i32_1 = arith.constant 0 : i32
    return %c0_i32, %c0_i32_0 : i32, i32
  }
  func.func @transform_17(%arg0: i32) -> (i32, i32) {
    %c0_i32 = arith.constant 0 : i32
    %c0_i32_0 = arith.constant 0 : i32
    %c0_i32_1 = arith.constant 0 : i32
    return %c0_i32, %c0_i32_0 : i32, i32
  }
  func.func @transform_18(%arg0: i32) -> (i32, i32) {
    %c0_i32 = arith.constant 0 : i32
    %c0_i32_0 = arith.constant 0 : i32
    %c0_i32_1 = arith.constant 0 : i32
    return %c0_i32, %c0_i32_0 : i32, i32
  }
  func.func @transform_19(%arg0: i32) -> (i32, i32) {
    %c0_i32 = arith.constant 0 : i32
    %c0_i32_0 = arith.constant 0 : i32
    %c0_i32_1 = arith.constant 0 : i32
    return %c0_i32, %c0_i32_0 : i32, i32
  }
  func.func @transform_20(%arg0: i32) -> (i32, i32) {
    %c0_i32 = arith.constant 0 : i32
    %c0_i32_0 = arith.constant 0 : i32
    %c0_i32_1 = arith.constant 0 : i32
    return %c0_i32, %c0_i32_0 : i32, i32
  }
  func.func @transform_21(%arg0: i32) -> (i32, i32) {
    %c0_i32 = arith.constant 0 : i32
    %c0_i32_0 = arith.constant 0 : i32
    %c0_i32_1 = arith.constant 0 : i32
    return %c0_i32, %c0_i32_0 : i32, i32
  }
  func.func @transform_22(%arg0: i32) -> (i32, i32) {
    %c0_i32 = arith.constant 0 : i32
    %c0_i32_0 = arith.constant 0 : i32
    %c0_i32_1 = arith.constant 0 : i32
    return %c0_i32, %c0_i32_0 : i32, i32
  }
  func.func @transform_23(%arg0: i32) -> (i32, i32) {
    %c0_i32 = arith.constant 0 : i32
    %c0_i32_0 = arith.constant 0 : i32
    %c0_i32_1 = arith.constant 0 : i32
    return %c0_i32, %c0_i32_0 : i32, i32
  }
  func.func @transform_24(%arg0: i32) -> (i32, i32, i32) {
    %c0_i32 = arith.constant 0 : i32
    %c0_i32_0 = arith.constant 0 : i32
    %c0_i32_1 = arith.constant 0 : i32
    return %arg0, %c0_i32, %c0_i32_0 : i32, i32, i32
  }
}

module attributes {stable_mosaic.version = 11 : i64} {
  func.func @_linear_kernel(%arg0: i32, %arg1: memref<16x32xf32, #tpu.memory_space<vmem>>, %arg2: memref<32x8xf32, #tpu.memory_space<vmem>>, %arg3: memref<1x8xf32, #tpu.memory_space<vmem>>, %arg4: memref<16x8xf32, #tpu.memory_space<vmem>>) attributes {dimension_semantics = [#tpu.dimension_semantics<parallel>], iteration_bounds = array<i64: 1>, scalar_prefetch = 0 : i64, scratch_operands = 0 : i64, tpu.core_type = #tpu.core_type<tc>, window_params = [{transform_indices = @transform_0, window_bounds = array<i64: 16, 32>}, {pipeline_mode = #tpu.pipeline_mode<synchronous>, transform_indices = @transform_1, window_bounds = array<i64: 32, 8>}, {pipeline_mode = #tpu.pipeline_mode<synchronous>, transform_indices = @transform_2, window_bounds = array<i64: 1, 8>}, {transform_indices = @transform_3, window_bounds = array<i64: 16, 8>}]} {
    %c0 = arith.constant 0 : index
    %c0_0 = arith.constant 0 : index
    %0 = vector.load %arg1[%c0, %c0_0] : memref<16x32xf32, #tpu.memory_space<vmem>>, vector<16x32xf32>
    %c0_1 = arith.constant 0 : index
    %c0_2 = arith.constant 0 : index
    %1 = vector.load %arg2[%c0_1, %c0_2] : memref<32x8xf32, #tpu.memory_space<vmem>>, vector<32x8xf32>
    %cst = arith.constant dense<0.000000e+00> : vector<16x8xf32>
    %2 = tpu.matmul %0, %1, %cst {dimension_numbers = #tpu.dot_dimension_numbers<[1], [0], [0], [1], [0, 0, 1, 1], [], []>} : vector<16x32xf32>, vector<32x8xf32>, vector<16x8xf32> -> vector<16x8xf32>
    %c0_3 = arith.constant 0 : index
    %c0_4 = arith.constant 0 : index
    %3 = vector.load %arg3[%c0_3, %c0_4] : memref<1x8xf32, #tpu.memory_space<vmem>>, vector<1x8xf32>
    %4 = vector.broadcast %3 : vector<1x8xf32> to vector<16x8xf32>
    %5 = arith.addf %2, %4 : vector<16x8xf32>
    %c0_5 = arith.constant 0 : index
    %c0_6 = arith.constant 0 : index
    %6 = vector.load %arg4[%c0_5, %c0_6] : memref<16x8xf32, #tpu.memory_space<vmem>>, vector<16x8xf32>
    tpu.vector_store %arg4[%c0_5, %c0_6], %5 {strides = array<i32>} : memref<16x8xf32, #tpu.memory_space<vmem>>, vector<16x8xf32>,
    return
  }
  func.func @transform_0(%arg0: i32) -> (i32, i32) {
    %c0_i32 = arith.constant 0 : i32
    %c0_i32_0 = arith.constant 0 : i32
    return %arg0, %c0_i32 : i32, i32
  }
  func.func @transform_1(%arg0: i32) -> (i32, i32) {
    %c0_i32 = arith.constant 0 : i32
    %c0_i32_0 = arith.constant 0 : i32
    %c0_i32_1 = arith.constant 0 : i32
    return %c0_i32, %c0_i32_0 : i32, i32
  }
  func.func @transform_2(%arg0: i32) -> (i32, i32) {
    %c0_i32 = arith.constant 0 : i32
    %c0_i32_0 = arith.constant 0 : i32
    %c0_i32_1 = arith.constant 0 : i32
    return %c0_i32, %c0_i32_0 : i32, i32
  }
  func.func @transform_3(%arg0: i32) -> (i32, i32) {
    %c0_i32 = arith.constant 0 : i32
    %c0_i32_0 = arith.constant 0 : i32
    return %arg0, %c0_i32 : i32, i32
  }
}

</mosaic_0001>

<bundles_post_ra>
// kernel: decoder_forward.4
= control target key start
LH: loop header
LB: loop body
LE: loop exit
PB: predicated region body
PF: predicated region fallthrough
CT: control target
= control target key end

     0   :  { %s396_s15 = smov 0   ;;  %s422_s0 = inlined_call_operand.vmem [shape: f32[2,8,8], index: 0, kind: input, shape index: {}]   ;;  %s423_s1 = inlined_call_operand.vmem [shape: f32[8,32], index: 1, kind: input, shape index: {}]   ;;  %s424_s2 = inlined_call_operand.vmem [shape: f32[1,32], index: 2, kind: input, shape index: {}]   ;;  %s425_s3 = inlined_call_operand.vmem [shape: f32[8,32], index: 3, kind: input, shape index: {}]   ;;  %s426_s4 = inlined_call_operand.vmem [shape: f32[2,8,32], index: 4, kind: output, shape index: {}]  }
   0x1 LB: > { %s333_s16 = sadd.s32 4294967295, %s367_s15   ;;  %p337_p0 = scmp.ge.s32.totalorder %s367_s15, 1  ;;  %s367_s15 = sphi %s396_s15, %s14_s15  }
   0x2   : > { %p161_p1 = scmp.lt.s32.totalorder %s367_s15, 3 }
   0x4   : > { %p162_p2 = pnand %p337_p0, %p161_p1 }
   0x5   : > { %p185_p3 = scmp.lt.s32.totalorder (!%p162_p2), %s333_s16, 1 }
   0x6   : > { %165 = sbr.rel (%p162_p2) target bundleno = 213 (0xd5), region = 36 }
   0xb   : > { %v194_v0 = vld [vmem:[%s423_s1] sm:$0xff]  ;;  %v369_v1 = vmov 0.0   ;;  %vm370_vm0 = vmmov 0   ;;  %s428_s16 = smov (!%p185_p3, %s333_s16), 1  ;;  %vm202_vm1 = vcmask 64512   ;;  %vm278_vm2 = vcmask 261120  }
   0xc   : > { %346 = vmatprep.subr.mxu0 %v369_v1  ;;  %348 = vmatprep.mubr.msk.f32.mxu0 %vm370_vm0, %v369_v1  ;;  %s338_s19 = sshll.u32 %s428_s16, 3  ;;  %v340_v3 = vld [vmem:[%s424_s2] ss:$0 sm:$0xff] }
   0xd   : > { %347 = vmatpush3.msra.mxu0 %v194_v0  ;;  %s188_s22 = scalar_lea.vmem %s422_s0, %s338_s19  ;;  %v276_v5 = vld [vmem:[%s425_s3] sm:$0xff]  ;;  %s192_s29 = scalar_lea.vmem %s426_s4, %s338_s19 }
   0xe   : > { %v193_v2 = vld [vmem:[%s188_s22] sm:$0xff] }
   0xf   : > { %349 = vmatmul.mubr.msk.f32.vlgmr.msra.gmra.mxu0 %vm202_vm1, %v193_v2 }
  0xcf   : > { %v272_v4 = vpop.f32.mrf.mxu0 }
  0xd0   : > { %v273_v6 = vadd.f32 %v340_v3, %v272_v4 }
  0xd1   : > { %v350_v7 = vpop.f32.mrf.mxu0 }
  0xd2   : > { %v277_v8 = vadd.f32 %v276_v5, %v273_v6 }
  0xd4   : > { %279 = vst.msk [vmem:[%s192_s29] sm:$0xff] %vm278_vm2, %v277_v8 }
  0xd5 PF: > { %s14_s15 = sadd.s32 1, %s367_s15  }
  0xd6   : > { %p11_p4 = scmp.ge.s32.totalorder %s14_s15, 4  }
  0xd8   :  { %13 = sbr.rel (!%p11_p4) target bundleno = 1 (0x1), region = 66 }

// kernel: decoder_forward.7
= control target key start
LH: loop header
LB: loop body
LE: loop exit
PB: predicated region body
PF: predicated region fallthrough
CT: control target
= control target key end

     0   :  { %vm28_vm0 = vcmask 261120   ;;  %s221_s0 = inlined_call_operand.vmem [shape: f32[16,32], index: 0, kind: input, shape index: {}]   ;;  %s222_s1 = inlined_call_operand.vmem [shape: f32[32,8], index: 1, kind: input, shape index: {}]   ;;  %s223_s2 = inlined_call_operand.vmem [shape: f32[1,8], index: 2, kind: input, shape index: {}]   ;;  %s224_s3 = inlined_call_operand.hbm [shape: f32[16,8], index: 3, kind: output, shape index: {}]  }
   0x1   :  { %v20_v0 = vld [vmem:[%s222_s1 + $0x18] sm:$0xff]  ;;  %v19_v1 = vld [vmem:[%s222_s1 + $0x10] sm:$0xff]  ;;  %v15_v2 = vld [vmem:[%s221_s0] sm:$0xff] }
   0x2   :  { %138 = vmatprep.subr.mxu0 %v20_v0  ;;  %v18_v3 = vld [vmem:[%s222_s1 + $0x8] sm:$0xff]  ;;  %146 = vmatprep.mubr.msk.f32.mxu0 %vm28_vm0, %v15_v2 }
   0x3   :  { %139 = vmatpush3.msra.mxu0 %v20_v0 }
   0x4   :  { %8 = vsyncpa [#allocation3], 0  ;;  %140 = vmatprep.subr.mxu0 %v19_v1  ;;  %v17_v4 = vld [vmem:[%s222_s1] sm:$0xff]  ;;  %v16_v5 = vld [vmem:[%s221_s0 + $0x8] sm:$0xff]  ;;  %s174_s26 = smov [#allocation2]   ;;  %vm110_vm1 = vcmask 64512  }
   0x5   :  { %141 = vmatpush3.msra.mxu0 %v19_v1  ;;  %v129_v6 = vld [vmem:[%s223_s2] ss:$0 sm:$0xff]  ;;  %s118_s27 = sshll.u32 %s174_s26, 4  ;;  %s119_s27 = int_to_ptr.vmem [resolvable:$true] %s118_s27 }
   0x6   :  { %142 = vmatprep.subr.mxu0 %v18_v3  ;;  %s152_s1 = scalar_lea.vmem %s119_s27, 256  ;;  %p157_p1 = scmp.lt.s32.totalorder %s119_s27, %s119_s27 }
   0x7   :  { %143 = vmatpush3.msra.mxu0 %v18_v3  ;;  %p153_p0 = scmp.ne.s32.totalorder %s119_s27, %s152_s1  ;;  %p158_p2 = scmp.lt.s32.totalorder %s152_s1, %s152_s1 }
   0x8   :  { %144 = vmatprep.subr.mxu0 %v17_v4 }
   0x9   :  { %145 = vmatpush3.msra.mxu0 %v17_v4  ;;  %p159_p3 = por %p158_p2, %p157_p1 }
   0xa   :  { %147 = vmatmul.mubr.msk.f32.vlgmr.msra.gmra.mxu0 %vm28_vm0, %v16_v5 }
   0xb   :  { %p160_p4 = pnand %p159_p3, %p153_p0 }
  0xca   :  { %v148_v7 = vpop.f32.mrf.mxu0 }
  0xcb   :  { %v107_v8 = vadd.f32 %v148_v7, %v129_v6 }
  0xcc   :  { %v101_v9 = vpop.f32.mrf.mxu0 }
  0xcd   :  { %112 = vst.msk [vmem:[#allocation2 + $0x8] sm:$0xff] %vm110_vm1, %v107_v8  ;;  %v102_v10 = vadd.f32 %v129_v6, %v101_v9 }
  0xcf   :  { %111 = vst.msk [vmem:[#allocation2] sm:$0xff] %vm110_vm1, %v102_v10 }
  0xd0   :  { %163 = shalt.err (!%p160_p4)
}
  0xd1   :  { %s175_s0 = smov 128   ;;  %s176_s28 = smov 8  }
  0xd2   :  { %124 = dma.vmem_to_hbm [thread:$0]  %s119_s27, 256, %s224_s3, [#allocation3], %s175_s0, %s175_s0, %s176_s28  }
  0xd3   :  { %172 = dma.done.wait [#allocation3], 256  }
  0xd4   :  { %173 = vsyncadd [#allocation3], 4294967040 }
  0xd5   :  { %128 = vsyncpa [#allocation3], 1 }

// kernel: decoder_forward.6
= control target key start
LH: loop header
LB: loop body
LE: loop exit
PB: predicated region body
PF: predicated region fallthrough
CT: control target
= control target key end

     0   :  { %s4281_s0 = inlined_call_operand.vmem [shape: f32[2,8,32], index: 0, kind: input, shape index: {}]   ;;  %s4282_s1 = inlined_call_operand.vmem [shape: f32[2,8,32], index: 1, kind: input, shape index: {}]   ;;  %s4283_s2 = inlined_call_operand.vmem [shape: f32[8,8], index: 2, kind: input, shape index: {}]   ;;  %s4284_s3 = inlined_call_operand.vmem [shape: f32[8,8], index: 3, kind: input, shape index: {}]   ;;  %s4285_s4 = inlined_call_operand.vmem [shape: f32[32,96], index: 4, kind: input, shape index: {}]   ;;  %s4286_s5 = inlined_call_operand.vmem [shape: f32[1,96], index: 5, kind: input, shape index: {}]   ;;  %s4287_s6 = inlined_call_operand.vmem [shape: f32[32,32], index: 6, kind: input, shape index: {}]   ;;  %s4288_s7 = inlined_call_operand.vmem [shape: f32[1,32], index: 7, kind: input, shape index: {}]   ;;  %s4289_s8 = inlined_call_operand.vmem [shape: f32[1,32], index: 8, kind: input, shape index: {}]   ;;  %s4290_s9 = inlined_call_operand.vmem [shape: f32[1,32], index: 9, kind: input, shape index: {}]   ;;  %s4291_s10 = inlined_call_operand.vmem [shape: f32[32,32], index: 10, kind: input, shape index: {}]   ;;  %s4292_s11 = inlined_call_operand.vmem [shape: f32[1,32], index: 11, kind: input, shape index: {}]   ;;  %s4293_s12 = inlined_call_operand.vmem [shape: f32[32,64], index: 12, kind: input, shape index: {}]   ;;  %s4294_s13 = inlined_call_operand.vmem [shape: f32[1,64], index: 13, kind: input, shape index: {}]   ;;  %s4295_s14 = inlined_call_operand.vmem [shape: f32[32,32], index: 14, kind: input, shape index: {}]   ;;  %s4296_s15 = inlined_call_operand.vmem [shape: f32[1,32], index: 15, kind: input, shape index: {}]   ;;  %s4297_s16 = inlined_call_operand.vmem [shape: f32[1,32], index: 16, kind: input, shape index: {}]   ;;  %s4298_s17 = inlined_call_operand.vmem [shape: f32[1,32], index: 17, kind: input, shape index: {}]   ;;  %s4299_s18 = inlined_call_operand.vmem [shape: f32[32,128], index: 18, kind: input, shape index: {}]   ;;  %s4300_s19 = inlined_call_operand.vmem [shape: f32[1,128], index: 19, kind: input, shape index: {}]   ;;  %s4301_s20 = inlined_call_operand.vmem [shape: f32[128,32], index: 20, kind: input, shape index: {}]   ;;  %s4302_s21 = inlined_call_operand.vmem [shape: f32[1,32], index: 21, kind: input, shape index: {}]   ;;  %s4303_s22 = inlined_call_operand.vmem [shape: f32[1,32], index: 22, kind: input, shape index: {}]   ;;  %s4304_s23 = inlined_call_operand.vmem [shape: f32[1,32], index: 23, kind: input, shape index: {}]   ;;  %s4305_s24 = inlined_call_operand.vmem [shape: f32[2,8,32], index: 24, kind: output, shape index: {}]  }
   0x1   :  { %4315 = sst [smem:[#allocation2_spill]] %s4281_s0 }
   0x2   :  { %4316 = sst [smem:[#allocation3_spill]] %s4282_s1 }
   0x3   :  { %4317 = sst [smem:[#allocation4_spill]] %s4283_s2 }
   0x4   :  { %4318 = sst [smem:[#allocation5_spill]] %s4284_s3 }
   0x5   :  { %4319 = sst [smem:[#allocation6_spill]] %s4285_s4 }
   0x6   :  { %4320 = sst [smem:[#allocation7_spill]] %s4286_s5  ;;  %s3838_s5 = smov 0  }
   0x7   :  { %4321 = sst [smem:[#allocation8_spill]] %s4287_s6 }
   0x8   :  { %4322 = sst [smem:[#allocation9_spill]] %s4288_s7 }
   0x9   :  { %4323 = sst [smem:[#allocation10_spill]] %s4289_s8 }
   0xa LB: > { %s3290_s26 = sadd.s32 4294967295, %s3698_s5   ;;  %p3294_p0 = scmp.ge.s32.totalorder %s3698_s5, 1  ;;  %s3698_s5 = sphi %s3838_s5, %s34_s5  }
   0xb   : > { %p670_p1 = scmp.lt.s32.totalorder %s3698_s5, 3 }
   0xd   : > { %p671_p2 = pnand %p3294_p0, %p670_p1 }
   0xe   : > { %s4324_s6 = sld [smem:[#allocation6_spill]] (!%p671_p2)  ;;  %p738_p3 = scmp.lt.s32.totalorder (!%p671_p2), %s3290_s26, 1 }
   0xf   : > { %674 = sbr.rel (%p671_p2) target bundleno = 6220 (0x184c), region = 116  ;;  %s4325_s1 = sld [smem:[#allocation2_spill]] (!%p671_p2) }
  0x10   : > { %s4326_s2 = sld [smem:[#allocation7_spill]] (!%p671_p2)  ;;  %s3702_s29 = smov (!%p671_p2), 120  }
  0x11   : > { %s4312_s0 = smov (!%p671_p2), 96   ;;  %s3704_s7 = smov (!%p671_p2), 88  }
  0x12   : > { %s4327_s8 = sld [smem:[#allocation4_spill]] (!%p671_p2)  ;;  %s3705_s4 = smov (!%p671_p2), 56  }
  0x13   : > { %s4328_s3 = sld [smem:[#allocation8_spill]] (!%p671_p2)  ;;  %s3711_s28 = smov (!%p671_p2), 48  }
  0x14   : > { %v757_v0 = vld [vmem:[%s4324_s6 + $0x18] sm:$0xff]  ;;  %v3700_v1 = vmov 0.0   ;;  %v756_v2 = vld [vmem:[%s4324_s6 + $0x10] sm:$0xff]  ;;  %vm3701_vm0 = vmmov 0   ;;  %s4339_s26 = smov (!%p738_p3, %s3290_s26), 1  ;;  %v755_v3 = vld [vmem:[%s4324_s6 + $0x8] sm:$0xff] }
  0x15   : > { %3434 = vmatprep.subr.mxu0 %v3700_v1  ;;  %3442 = vmatprep.mubr.msk.f32.mxu0 %vm3701_vm0, %v3700_v1  ;;  %s3862_s30 = sshll.u32 %s4339_s26, 3  ;;  %v754_v4 = vld [vmem:[%s4324_s6] sm:$0xff]  ;;  %vm765_vm1 = vcmask 261120   ;;  %vm847_vm2 = vcmask 64512   ;;  %s4313_s26 = smov 112  }
  0x16   : > { %3435 = vmatpush3.msra.mxu0 %v757_v0  ;;  %3450 = vmatprep.subr.mxu1 %v3700_v1  ;;  %s741_s27 = scalar_lea.vmem %s4325_s1, %s3862_s30  ;;  %v3298_v6 = vld [vmem:[%s4326_s2] ss:$0 sm:$0xff]  ;;  %s3706_s1 = smov 64  }
  0x17   : > { %3436 = vmatprep.subr.mxu0 %v3700_v1  ;;  %3452 = vmatprep.mubr.msk.f32.mxu1 %vm3701_vm0, %v3700_v1  ;;  %v3872_v5 = vld [vmem:[%s741_s27] sm:$0xff]  ;;  %s4309_s27 = smov 80   ;;  %s4330_s2 = sld [smem:[#allocation10_spill]] }
  0x18   : > { %3437 = vmatpush3.msra.mxu0 %v756_v2  ;;  %v3905_v13 = vld [vmem:[%s4327_s8] sm:$0xff]  ;;  %s3712_s8 = smov 40  }
  0x19   : > { %3438 = vmatprep.subr.mxu0 %v3700_v1  ;;  %vm922_vm3 = vcmp.eq.f32.partialorder %v3905_v13, 0.0  ;;  %v839_v42 = vld [vmem:[%s4328_s3] sm:$0xff]  ;;  %v840_v43 = vld [vmem:[%s4328_s3 + $0x8] sm:$0xff] }
  0x1a   : > { %3439 = vmatpush3.msra.mxu0 %v755_v3 }
  0x1b   : > { %3440 = vmatprep.subr.mxu0 %v3700_v1 }
  0x1c   : > { %3441 = vmatpush3.msra.mxu0 %v754_v4 }
  0x1d   : > { %3443 = vmatmul.mubr.msk.f32.vlgmr.msra.gmra.mxu0 %vm765_vm1, %v3872_v5  ;;  %3445 = vmatprep.subr.mxu0 %v3700_v1 }
  0x1e   : > { %3447 = vmatprep.mubr.msk.f32.mxu0 %vm3701_vm0, %v3700_v1 }
  0xdd   : > { %v835_v7 = vpop.f32.mrf.mxu0 }
  0xde   : > { %v3883_v8 = vadd.f32 %v3298_v6, %v835_v7 }
  0xdf   : > { %v3444_v9 = vpop.f32.mrf.mxu0 }
  0xe0   : > { %1012 = vrot.lane.b32.xlu1 %v3883_v8, %s3702_s29  ;;  %845 = vrot.lane.b32.xlu0 %v3883_v8, %s4312_s0  ;;  %s4331_s0 = sld [smem:[#allocation3_spill]] }
  0xe4   : > { %1014 = vrot.lane.b32.xlu0 %v3883_v8, %s3704_s7 }
 0x152   : > { %v846_v10 = vpop.permute.xlu0 %845  ;;  %v1013_v12 = vpop.permute.xlu1 %1012 }
 0x153   : > { %3446 = vmatpush3.xpose.msk.msra.mxu0 %vm847_vm2, %v846_v10  ;;  %v841_v10 = vld [vmem:[%s4328_s3 + $0x10] sm:$0xff] }
 0x154   : > { %3455 = vmatprep.subr.mxu0 %v3700_v1 }
 0x156   : > { %3448 = vmatmul.mubr.msk.f32.vlgmr.msra.gmra.mxu0 %vm847_vm2, %v3883_v8  ;;  %v1015_v11 = vpop.permute.xlu0 %1014 }
 0x157   : > { %3456 = vmatpush3.xpose.msk.msra.mxu0 %vm847_vm2, %v1015_v11  ;;  %3457 = vmatprep.mubr.msk.f32.mxu0 %vm3701_vm0, %v3700_v1 }
 0x158   : > { %3465 = vmatprep.subr.mxu0 %v3700_v1 }
 0x15a   : > { %3458 = vmatmul.mubr.msk.f32.vlgmr.msra.gmra.mxu0 %vm847_vm2, %v1013_v12 }
 0x15b   : > { %3467 = vmatprep.mubr.msk.f32.mxu0 %vm3701_vm0, %v3700_v1  ;;  %3466 = vmatpush3.msra.mxu0 %v840_v43 }
 0x15c   : > { %3475 = vmatprep.subr.mxu0 %v3700_v1 }
 0x216   : > { %v918_v14 = vpop.f32.mrf.mxu0 }
 0x217   : > { %v923_v15 = vsel %vm922_vm3, -1e+20, %v918_v14 }
 0x218   : > { %v924_v16 = vmul.f32 0.17677669, %v923_v15  ;;  %v3449_v17 = vpop.f32.mrf.mxu0 }
 0x21a   : > { %v1086_v18 = vpop.f32.mrf.mxu0  ;;  %v925_v19 = vsel %vm847_vm2, %v924_v16, -inf }
 0x21b   : > { %v1090_v20 = vsel %vm922_vm3, -1e+20, %v1086_v18  ;;  %926 = vmax.xlane.f32.xlu1 %v925_v19 }
 0x21c   : > { %v1091_v21 = vmul.f32 0.17677669, %v1090_v20  ;;  %v3459_v22 = vpop.f32.mrf.mxu0 }
 0x21e   : > { %v1092_v23 = vsel %vm847_vm2, %v1091_v21, -inf }
 0x21f   : > { %1093 = vmax.xlane.f32.xlu0 %v1092_v23 }
 0x2a4   : > { %v927_v24 = vpop.xlane.xlu1 %926 }
 0x2a5   : > { %v928_v25 = vsub.f32 %v924_v16, %v927_v24  ;;  %v842_v24 = vld [vmem:[%s4328_s3 + $0x18] sm:$0xff] }
 0x2a7   : > { %v929_v26 = vmul.f32 1.442695, %v928_v25 }
 0x2a8   : > { %v1094_v27 = vpop.xlane.xlu0 %1093 }
 0x2a9   : > { %3654 = vpow2.f32 %v929_v26  ;;  %v1095_v28 = vsub.f32 %v1091_v21, %v1094_v27 }
 0x2ab   : > { %v1096_v29 = vmul.f32 1.442695, %v1095_v28 }
 0x2ad   : > { %3656 = vpow2.f32 %v1096_v29 }
 0x2b6   : > { %v3655_v30 = vpop.eup %3654 }
 0x2b7   : > { %v931_v31 = vsel %vm847_vm2, %v3655_v30, 0.0 }
 0x2b8   : > { %932 = vadd.xlane.f32.xlu0 %v931_v31 }
 0x2ba   : > { %v3657_v32 = vpop.eup %3656 }
 0x2bb   : > { %v1098_v33 = vsel %vm847_vm2, %v3657_v32, 0.0 }
 0x2bc   : > { %1099 = vadd.xlane.f32.xlu1 %v1098_v33 }
 0x2cd   : > { %1103 = vrot.lane.b32.xlu1 %v3883_v8, %s3705_s4  ;;  %s4308_s4 = smov 72  }
 0x2ce   : > { %936 = vrot.lane.b32.xlu0 %v3883_v8, %s3706_s1  ;;  %s4310_s1 = smov 104  }
 0x2d1   : > { %1327 = vrot.lane.b32.xlu1 %v3883_v8, %s4309_s27 }
 0x2d2   : > { %1325 = vrot.lane.b32.xlu0 %v3883_v8, %s4313_s26  ;;  %s749_s26 = scalar_lea.vmem %s4305_s24, %s3862_s30 }
 0x341   : > { %v933_v34 = vpop.xlane.xlu0 %932 }
 0x342   : > { %3658 = vrcp.f32 %v933_v34 }
 0x345   : > { %v1100_v35 = vpop.xlane.xlu1 %1099  ;;  %v937_v36 = vpop.permute.xlu0 %936 }
 0x346   : > { %3660 = vrcp.f32 %v1100_v35  ;;  %3451 = vmatpush3.msra.mxu1 %v937_v36 }
 0x347   : > { %3460 = vmatprep.subr.mxu1 %v3700_v1 }
 0x349   : > { %v1104_v39 = vpop.permute.xlu1 %1103  ;;  %v1326_v49 = vpop.permute.xlu0 %1325 }
 0x34d   : > { %v1328_v47 = vpop.permute.xlu1 %1327 }
 0x34f   : > { %v3659_v37 = vpop.eup %3658 }
 0x350   : > { %v935_v38 = vmul.f32 %v3659_v37, %v3655_v30 }
 0x352   : > { %3453 = vmatmul.mubr.msk.f32.vlgmr.msra.gmra.mxu1 %vm847_vm2, %v935_v38 }
 0x353   : > { %v3661_v40 = vpop.eup %3660  ;;  %3461 = vmatpush3.msra.mxu1 %v1104_v39  ;;  %3462 = vmatprep.mubr.msk.f32.mxu1 %vm3701_vm0, %v3700_v1 }
 0x354   : > { %v1102_v41 = vmul.f32 %v3661_v40, %v3657_v32  ;;  %3470 = vmatprep.subr.mxu1 %v3700_v1 }
 0x356   : > { %3463 = vmatmul.mubr.msk.f32.vlgmr.msra.gmra.mxu1 %vm847_vm2, %v1102_v41 }
 0x357   : > { %3472 = vmatprep.mubr.msk.f32.mxu1 %vm3701_vm0, %v3700_v1  ;;  %3471 = vmatpush3.msra.mxu1 %v839_v42 }
 0x358   : > { %3480 = vmatprep.subr.mxu1 %v3700_v1 }
 0x412   : > { %v1008_v44 = vpop.f32.mrf.mxu1 }
 0x413   : > { %3473 = vmatmul.mubr.msk.f32.vlgmr.msra.gmra.mxu1 %vm847_vm2, %v1008_v44  ;;  %v1848_v44 = vld [vmem:[%s4291_s10 + $0x18] sm:$0xff] }
 0x414   : > { %v3454_v45 = vpop.f32.mrf.mxu1  ;;  %3482 = vmatprep.mubr.msk.f32.mxu1 %vm3701_vm0, %v3700_v1 }
 0x415   : > { %v1846_v45 = vld [vmem:[%s4291_s10 + $0x8] sm:$0xff] }
 0x416   : > { %v1175_v46 = vpop.f32.mrf.mxu1 }
 0x417   : > { %3468 = vmatmul.mubr.msk.f32.vlgmr.msra.gmra.mxu0 %vm847_vm2, %v1175_v46  ;;  %v1845_v46 = vld [vmem:[%s4291_s10] sm:$0xff] }
 0x418   : > { %3476 = vmatpush3.xpose.msk.msra.mxu0 %vm847_vm2, %v1328_v47  ;;  %v3464_v48 = vpop.f32.mrf.mxu1  ;;  %3477 = vmatprep.mubr.msk.f32.mxu0 %vm3701_vm0, %v3700_v1 }
 0x419   : > { %3485 = vmatprep.subr.mxu0 %v3700_v1 }
 0x41b   : > { %3478 = vmatmul.mubr.msk.f32.vlgmr.msra.gmra.mxu0 %vm847_vm2, %v1326_v49 }
 0x41c   : > { %3487 = vmatprep.mubr.msk.f32.mxu0 %vm3701_vm0, %v3700_v1  ;;  %3486 = vmatpush3.msra.mxu0 %v841_v10 }
 0x41d   : > { %3495 = vmatprep.subr.mxu0 %v3700_v1 }
 0x4d3   : > { %v1321_v50 = vpop.f32.mrf.mxu1 }
 0x4d5   : > { %v3474_v51 = vpop.f32.mrf.mxu1 }
 0x4d6   : > { %v3317_v51 = vld [vmem:[%s4330_s2] ss:$0 sm:$0xff]  ;;  %s4336_s2 = smov 80  }
 0x4d7   : > { %v1248_v52 = vpop.f32.mrf.mxu0 }
 0x4d8   : > { %v3949_v53 = vadd.f32 %v1321_v50, %v1248_v52 }
 0x4d9   : > { %v3469_v54 = vpop.f32.mrf.mxu0 }
 0x4db   : > { %v1399_v55 = vpop.f32.mrf.mxu0 }
 0x4dc   : > { %v1403_v56 = vsel %vm922_vm3, -1e+20, %v1399_v55 }
 0x4dd   : > { %v1404_v57 = vmul.f32 0.17677669, %v1403_v56  ;;  %v3479_v58 = vpop.f32.mrf.mxu0  ;;  %v1932_v56 = vld [vmem:[%s4293_s12 + $0x18] sm:$0xff] }
 0x4de   : > { %v1930_v58 = vld [vmem:[%s4293_s12 + $0x8] sm:$0xff] }
 0x4df   : > { %v1405_v59 = vsel %vm847_vm2, %v1404_v57, -inf }
 0x4e0   : > { %1406 = vmax.xlane.f32.xlu1 %v1405_v59  ;;  %v1929_v59 = vld [vmem:[%s4293_s12] sm:$0xff] }
 0x4f1   : > { %1568 = vrot.lane.b32.xlu1 %v3883_v8, %s4308_s4  ;;  %s4335_s4 = smov 104  }
 0x4f5   : > { %1566 = vrot.lane.b32.xlu1 %v3883_v8, %s4310_s1  ;;  %s745_s1 = scalar_lea.vmem %s4331_s0, %s3862_s30  ;;  %s4332_s0 = sld [smem:[#allocation5_spill]] }
 0x4fb   : > { %v4079_v10 = vld [vmem:[%s4332_s0] sm:$0xff]  ;;  %s4337_s0 = smov 72  }
 0x4fc   : > { %vm2094_vm4 = vcmp.eq.f32.partialorder %v4079_v10, 0.0 }
 0x569   : > { %v1407_v60 = vpop.xlane.xlu1 %1406 }
 0x56a   : > { %v1408_v61 = vsub.f32 %v1404_v57, %v1407_v60  ;;  %v1931_v57 = vld [vmem:[%s4293_s12 + $0x10] sm:$0xff]  ;;  %v751_v60 = vld [vmem:[%s745_s1] sm:$0xff]  ;;  %s4333_s1 = smov 112  }
 0x56c   : > { %v1409_v62 = vmul.f32 1.442695, %v1408_v61  ;;  %v3319_v61 = vld [vmem:[%s4292_s11] ss:$0 sm:$0xff] }
 0x56d   : > { %v1569_v6 = vpop.permute.xlu1 %1568 }
 0x56e   : > { %3662 = vpow2.f32 %v1409_v62 }
 0x571   : > { %v1567_v9 = vpop.permute.xlu1 %1566 }
 0x57b   : > { %v3663_v63 = vpop.eup %3662 }
 0x57c   : > { %v1411_v0 = vsel %vm847_vm2, %v3663_v63, 0.0 }
 0x57d   : > { %1412 = vadd.xlane.f32.xlu0 %v1411_v0 }
 0x593   : > { %1416 = vrot.lane.b32.xlu0 %v3883_v8, %s3711_s28  ;;  %s4329_s28 = sld [smem:[#allocation9_spill]] }
 0x599   : > { %v3316_v32 = vld [vmem:[%s4329_s28] ss:$0 sm:$0xff] }
 0x606   : > { %v1413_v2 = vpop.xlane.xlu0 %1412 }
 0x607   : > { %3664 = vrcp.f32 %v1413_v2  ;;  %v3321_v2 = vld [vmem:[%s4294_s13] ss:$0 sm:$0xff] }
 0x60a   : > { %v1417_v3 = vpop.permute.xlu0 %1416 }
 0x60b   : > { %3481 = vmatpush3.msra.mxu1 %v1417_v3 }
 0x60c   : > { %3490 = vmatprep.subr.mxu1 %v3700_v1 }
 0x614   : > { %v3665_v4 = vpop.eup %3664 }
 0x615   : > { %v1415_v7 = vmul.f32 %v3665_v4, %v3663_v63 }
 0x617   : > { %3483 = vmatmul.mubr.msk.f32.vlgmr.msra.gmra.mxu1 %vm847_vm2, %v1415_v7 }
 0x618   : > { %3491 = vmatpush3.xpose.msk.msra.mxu1 %vm847_vm2, %v1569_v6  ;;  %3492 = vmatprep.mubr.msk.f32.mxu1 %vm3701_vm0, %v3700_v1 }
 0x619   : > { %3500 = vmatprep.subr.mxu1 %v3700_v1 }
 0x61b   : > { %3493 = vmatmul.mubr.msk.f32.vlgmr.msra.gmra.mxu1 %vm847_vm2, %v1567_v9 }
 0x61c   : > { %3502 = vmatprep.mubr.msk.f32.mxu1 %vm3701_vm0, %v3700_v1  ;;  %3501 = vmatpush3.msra.mxu1 %v842_v24 }
 0x61d   : > { %3532 = vmatprep.subr.mxu1 %v3700_v1 }
 0x6d7   : > { %v1488_v11 = vpop.f32.mrf.mxu1 }
 0x6d8   : > { %3488 = vmatmul.mubr.msk.f32.vlgmr.msra.gmra.mxu0 %vm847_vm2, %v1488_v11 }
 0x6d9   : > { %v3484_v12 = vpop.f32.mrf.mxu1  ;;  %3497 = vmatprep.mubr.msk.f32.mxu0 %vm3701_vm0, %v3700_v1 }
 0x6db   : > { %v1640_v14 = vpop.f32.mrf.mxu1 }
 0x6dc   : > { %v1644_v15 = vsel %vm922_vm3, -1e+20, %v1640_v14 }
 0x6dd   : > { %v1645_v16 = vmul.f32 0.17677669, %v1644_v15  ;;  %v3494_v17 = vpop.f32.mrf.mxu1 }
 0x6df   : > { %v1646_v18 = vsel %vm847_vm2, %v1645_v16, -inf }
 0x6e0   : > { %1647 = vmax.xlane.f32.xlu0 %v1646_v18 }
 0x6f6   : > { %1657 = vrot.lane.b32.xlu0 %v3883_v8, %s3712_s8 }
 0x769   : > { %v1648_v19 = vpop.xlane.xlu0 %1647 }
 0x76a   : > { %v1649_v20 = vsub.f32 %v1645_v16, %v1648_v19 }
 0x76c   : > { %v1650_v21 = vmul.f32 1.442695, %v1649_v20 }
 0x76d   : > { %v1658_v22 = vpop.permute.xlu0 %1657 }
 0x76e   : > { %3666 = vpow2.f32 %v1650_v21  ;;  %3496 = vmatpush3.msra.mxu0 %v1658_v22 }
 0x76f   : > { %3505 = vmatprep.subr.mxu0 %v3700_v1 }
 0x77b   : > { %v3667_v23 = vpop.eup %3666 }
 0x77c   : > { %v1652_v13 = vsel %vm847_vm2, %v3667_v23, 0.0 }
 0x77d   : > { %1653 = vadd.xlane.f32.xlu1 %v1652_v13 }
 0x798   : > { %v1561_v25 = vpop.f32.mrf.mxu0 }
 0x799   : > { %v1565_v8 = vadd.f32 %v1561_v25, %v3949_v53  ;;  %v3318_v53 = vld [vmem:[%s4290_s9] ss:$0 sm:$0xff] }
 0x79a   : > { %v3489_v26 = vpop.f32.mrf.mxu0 }
 0x806   : > { %v1654_v27 = vpop.xlane.xlu1 %1653 }
 0x807   : > { %3668 = vrcp.f32 %v1654_v27 }
 0x814   : > { %v3669_v28 = vpop.eup %3668 }
 0x815   : > { %v1656_v29 = vmul.f32 %v3669_v28, %v3667_v23 }
 0x817   : > { %3498 = vmatmul.mubr.msk.f32.vlgmr.msra.gmra.mxu0 %vm847_vm2, %v1656_v29 }
 0x818   : > { %3513 = vmatprep.mubr.msk.f32.mxu0 %vm3701_vm0, %v3700_v1  ;;  %3506 = vmatpush3.msra.mxu0 %v1848_v44 }
 0x819   : > { %3507 = vmatprep.subr.mxu0 %v3700_v1 }
 0x8d7   : > { %v1729_v30 = vpop.f32.mrf.mxu0 }
 0x8d8   : > { %3503 = vmatmul.mubr.msk.f32.vlgmr.msra.gmra.mxu1 %vm847_vm2, %v1729_v30 }
 0x8d9   : > { %v3499_v31 = vpop.f32.mrf.mxu0  ;;  %3534 = vmatprep.mubr.msk.f32.mxu1 %vm3701_vm0, %v3700_v1 }
 0x998   : > { %v1802_v33 = vpop.f32.mrf.mxu1 }
 0x999   : > { %v1806_v34 = vadd.f32 %v1802_v33, %v1565_v8 }
 0x99a   : > { %v3504_v35 = vpop.f32.mrf.mxu1 }
 0x99b   : > { %v1813_v36 = vadd.f32 %v3316_v32, %v1806_v34 }
 0x99d   : > { %v1814_v37 = vadd.f32 %v1813_v36, %v3872_v5  ;;  %v1847_v5 = vld [vmem:[%s4291_s10 + $0x10] sm:$0xff] }
 0x99e   : > { %3508 = vmatpush3.msra.mxu0 %v1847_v5 }
 0x99f   : > { %v1817_v38 = vsel %vm765_vm1, %v1814_v37, 0.0  ;;  %3509 = vmatprep.subr.mxu0 %v3700_v1 }
 0x9a0   : > { %1818 = vadd.xlane.f32.xlu1 %v1817_v38  ;;  %3510 = vmatpush3.msra.mxu0 %v1846_v45  ;;  %v2013_v38 = vld [vmem:[%s4295_s14] sm:$0xff] }
 0x9a1   : > { %3511 = vmatprep.subr.mxu0 %v3700_v1 }
 0x9a2   : > { %3512 = vmatpush3.msra.mxu0 %v1845_v46 }
 0x9a3   : > { %3516 = vmatprep.subr.mxu0 %v3700_v1 }
 0xa29   : > { %v1819_v39 = vpop.xlane.xlu1 %1818 }
 0xa2a   : > { %v1821_v40 = vmul.f32 0.03125, %v1819_v39  ;;  %v2014_v39 = vld [vmem:[%s4295_s14 + $0x8] sm:$0xff] }
 0xa2c   : > { %v1822_v41 = vsub.f32 %v1814_v37, %v1821_v40 }
 0xa2e   : > { %v1823_v42 = vmul.f32 %v1822_v41, %v1822_v41 }
 0xa30   : > { %v1824_v43 = vsel %vm765_vm1, %v1823_v42, 0.0 }
 0xa31   : > { %1825 = vadd.xlane.f32.xlu1 %v1824_v43 }
 0xaba   : > { %v1826_v47 = vpop.xlane.xlu1 %1825 }
 0xabb   : > { %v1827_v48 = vmul.f32 0.03125, %v1826_v47 }
 0xabd   : > { %v1828_v49 = vadd.f32 1e-05, %v1827_v48 }
 0xabf   : > { %3670 = vrsqrt.f32 %v1828_v49 }
 0xacc   : > { %v3671_v50 = vpop.eup %3670 }
 0xacd   : > { %v1830_v52 = vmul.f32 %v3671_v50, %v1822_v41 }
 0xacf   : > { %v1837_v54 = vmul.f32 %v3317_v51, %v1830_v52 }
 0xad1   : > { %v4021_v55 = vadd.f32 %v3318_v53, %v1837_v54 }
 0xad3   : > { %3514 = vmatmul.mubr.msk.f32.vlgmr.msra.gmra.mxu0 %vm765_vm1, %v4021_v55 }
 0xad4   : > { %3517 = vmatpush3.msra.mxu0 %v1932_v56  ;;  %3524 = vmatprep.mubr.msk.f32.mxu0 %vm3701_vm0, %v3700_v1 }
 0xad5   : > { %3518 = vmatprep.subr.mxu0 %v3700_v1 }
 0xad6   : > { %3519 = vmatpush3.msra.mxu0 %v1931_v57 }
 0xad7   : > { %3520 = vmatprep.subr.mxu0 %v3700_v1 }
 0xad8   : > { %3521 = vmatpush3.msra.mxu0 %v1930_v58 }
 0xad9   : > { %3522 = vmatprep.subr.mxu0 %v3700_v1 }
 0xada   : > { %3523 = vmatpush3.msra.mxu0 %v1929_v59 }
 0xadb   : > { %3525 = vmatmul.mubr.msk.f32.vlgmr.msra.gmra.mxu0 %vm765_vm1, %v751_v60  ;;  %3527 = vmatprep.subr.mxu0 %v3700_v1 }
 0xadc   : > { %3529 = vmatprep.mubr.msk.f32.mxu0 %vm3701_vm0, %v3700_v1 }
 0xb93   : > { %v1925_v62 = vpop.f32.mrf.mxu0 }
 0xb94   : > { %v4053_v63 = vadd.f32 %v3319_v61, %v1925_v62 }
 0xb95   : > { %v3515_v0 = vpop.f32.mrf.mxu0 }
 0xb96   : > { %2184 = vrot.lane.b32.xlu0 %v4053_v63, %s3702_s29 }
 0xb9b   : > { %v2009_v3 = vpop.f32.mrf.mxu0 }
 0xb9c   : > { %v4060_v4 = vadd.f32 %v3321_v2, %v2009_v3 }
 0xb9d   : > { %v3526_v6 = vpop.f32.mrf.mxu0 }
 0xb9e   : > { %2186 = vrot.lane.b32.xlu1 %v4060_v4, %s3702_s29  ;;  %3528 = vmatpush3.xpose.msk.msra.mxu0 %vm847_vm2, %v4060_v4  ;;  %v2015_v6 = vld [vmem:[%s4295_s14 + $0x10] sm:$0xff] }
 0xb9f   : > { %3537 = vmatprep.subr.mxu0 %v3700_v1 }
 0xba1   : > { %3530 = vmatmul.mubr.msk.f32.vlgmr.msra.gmra.mxu0 %vm847_vm2, %v4053_v63 }
 0xba2   : > { %3539 = vmatprep.mubr.msk.f32.mxu0 %vm3701_vm0, %v3700_v1 }
 0xc08   : > { %v2185_v9 = vpop.permute.xlu0 %2184 }
 0xc10   : > { %v2187_v7 = vpop.permute.xlu1 %2186 }
 0xc11   : > { %3538 = vmatpush3.xpose.msk.msra.mxu0 %vm847_vm2, %v2187_v7 }
 0xc12   : > { %3547 = vmatprep.subr.mxu0 %v3700_v1 }
 0xc14   : > { %3540 = vmatmul.mubr.msk.f32.vlgmr.msra.gmra.mxu0 %vm847_vm2, %v2185_v9 }
 0xc15   : > { %3549 = vmatprep.mubr.msk.f32.mxu0 %vm3701_vm0, %v3700_v1  ;;  %3548 = vmatpush3.msra.mxu0 %v2014_v39 }
 0xc16   : > { %3557 = vmatprep.subr.mxu0 %v3700_v1 }
 0xc61   : > { %v2090_v11 = vpop.f32.mrf.mxu0 }
 0xc62   : > { %v2095_v12 = vsel %vm2094_vm4, -1e+20, %v2090_v11 }
 0xc63   : > { %v2096_v14 = vmul.f32 0.17677669, %v2095_v12  ;;  %v3531_v15 = vpop.f32.mrf.mxu0 }
 0xc65   : > { %v2097_v16 = vsel %vm847_vm2, %v2096_v14, -inf }
 0xc66   : > { %2098 = vmax.xlane.f32.xlu0 %v2097_v16 }
 0xcd4   : > { %v2258_v17 = vpop.f32.mrf.mxu0 }
 0xcd5   : > { %v2262_v18 = vsel %vm2094_vm4, -1e+20, %v2258_v17 }
 0xcd6   : > { %v2263_v19 = vmul.f32 0.17677669, %v2262_v18  ;;  %v3541_v20 = vpop.f32.mrf.mxu0 }
 0xcd8   : > { %v2264_v21 = vsel %vm847_vm2, %v2263_v19, -inf }
 0xcd9   : > { %2265 = vmax.xlane.f32.xlu1 %v2264_v21 }
 0xcea   : > { %2275 = vrot.lane.b32.xlu1 %v4060_v4, %s3704_s7  ;;  %s4334_s7 = smov 96  }
 0xcee   : > { %2499 = vrot.lane.b32.xlu1 %v4060_v4, %s4333_s1 }
 0xcef   : > { %v2099_v22 = vpop.xlane.xlu0 %2098 }
 0xcf0   : > { %v2100_v23 = vsub.f32 %v2096_v14, %v2099_v22  ;;  %v2016_v22 = vld [vmem:[%s4295_s14 + $0x18] sm:$0xff] }
 0xcf2   : > { %v2101_v13 = vmul.f32 1.442695, %v2100_v23 }
 0xcf4   : > { %3672 = vpow2.f32 %v2101_v13 }
 0xd01   : > { %v3673_v24 = vpop.eup %3672 }
 0xd02   : > { %v2103_v25 = vsel %vm847_vm2, %v3673_v24, 0.0 }
 0xd03   : > { %2104 = vadd.xlane.f32.xlu0 %v2103_v25 }
 0xd62   : > { %v2266_v8 = vpop.xlane.xlu1 %2265 }
 0xd63   : > { %v2267_v26 = vsub.f32 %v2263_v19, %v2266_v8 }
 0xd65   : > { %v2268_v27 = vmul.f32 1.442695, %v2267_v26 }
 0xd66   : > { %v2276_v35 = vpop.permute.xlu1 %2275 }
 0xd67   : > { %3674 = vpow2.f32 %v2268_v27 }
 0xd6a   : > { %v2500_v43 = vpop.permute.xlu1 %2499 }
 0xd74   : > { %v3675_v28 = vpop.eup %3674 }
 0xd75   : > { %v2270_v29 = vsel %vm847_vm2, %v3675_v28, 0.0 }
 0xd76   : > { %2271 = vadd.xlane.f32.xlu0 %v2270_v29 }
 0xd8c   : > { %2108 = vrot.lane.b32.xlu0 %v4060_v4, %s4334_s7  ;;  %v2105_v30 = vpop.xlane.xlu0 %2104 }
 0xd8d   : > { %3676 = vrcp.f32 %v2105_v30 }
 0xd90   : > { %2497 = vrot.lane.b32.xlu0 %v4053_v63, %s4333_s1 }
 0xd9a   : > { %v3677_v32 = vpop.eup %3676 }
 0xd9b   : > { %v2107_v34 = vmul.f32 %v3677_v32, %v3673_v24 }
 0xdff   : > { %v2272_v31 = vpop.xlane.xlu0 %2271 }
 0xe00   : > { %3678 = vrcp.f32 %v2272_v31 }
 0xe03   : > { %v2109_v33 = vpop.permute.xlu0 %2108 }
 0xe04   : > { %3533 = vmatpush3.msra.mxu1 %v2109_v33 }
 0xe05   : > { %3535 = vmatmul.mubr.msk.f32.vlgmr.msra.gmra.mxu1 %vm847_vm2, %v2107_v34  ;;  %3542 = vmatprep.subr.mxu1 %v3700_v1 }
 0xe06   : > { %3543 = vmatpush3.msra.mxu1 %v2276_v35  ;;  %3544 = vmatprep.mubr.msk.f32.mxu1 %vm3701_vm0, %v3700_v1 }
 0xe07   : > { %3552 = vmatprep.subr.mxu1 %v3700_v1  ;;  %v2498_v5 = vpop.permute.xlu0 %2497 }
 0xe0d   : > { %v3679_v36 = vpop.eup %3678 }
 0xe0e   : > { %v2274_v37 = vmul.f32 %v3679_v36, %v3675_v28  ;;  %v3339_v28 = vld [vmem:[%s4296_s15] ss:$0 sm:$0xff] }
 0xe10   : > { %3545 = vmatmul.mubr.msk.f32.vlgmr.msra.gmra.mxu1 %vm847_vm2, %v2274_v37 }
 0xe11   : > { %3554 = vmatprep.mubr.msk.f32.mxu1 %vm3701_vm0, %v3700_v1  ;;  %3553 = vmatpush3.msra.mxu1 %v2013_v38 }
 0xe12   : > { %3562 = vmatprep.subr.mxu1 %v3700_v1 }
 0xec5   : > { %v2180_v40 = vpop.f32.mrf.mxu1 }
 0xec6   : > { %3555 = vmatmul.mubr.msk.f32.vlgmr.msra.gmra.mxu1 %vm847_vm2, %v2180_v40  ;;  %v3019_v40 = vld [vmem:[%s4299_s18 + $0x18] sm:$0xff] }
 0xec7   : > { %v3536_v41 = vpop.f32.mrf.mxu1  ;;  %3564 = vmatprep.mubr.msk.f32.mxu1 %vm3701_vm0, %v3700_v1 }
 0xec8   : > { %v3018_v41 = vld [vmem:[%s4299_s18 + $0x10] sm:$0xff] }
 0xed0   : > { %v2347_v42 = vpop.f32.mrf.mxu1 }
 0xed1   : > { %3550 = vmatmul.mubr.msk.f32.vlgmr.msra.gmra.mxu0 %vm847_vm2, %v2347_v42  ;;  %v3016_v42 = vld [vmem:[%s4299_s18] sm:$0xff] }
 0xed2   : > { %3558 = vmatpush3.xpose.msk.msra.mxu0 %vm847_vm2, %v2500_v43  ;;  %v3546_v44 = vpop.f32.mrf.mxu1  ;;  %3559 = vmatprep.mubr.msk.f32.mxu0 %vm3701_vm0, %v3700_v1  ;;  %v3116_v43 = vld [vmem:[%s4301_s20 + $0x78] sm:$0xff] }
 0xed3   : > { %3567 = vmatprep.subr.mxu0 %v3700_v1  ;;  %v3115_v44 = vld [vmem:[%s4301_s20 + $0x70] sm:$0xff] }
 0xed5   : > { %3560 = vmatmul.mubr.msk.f32.vlgmr.msra.gmra.mxu0 %vm847_vm2, %v2498_v5  ;;  %v3114_v5 = vld [vmem:[%s4301_s20 + $0x68] sm:$0xff] }
 0xed6   : > { %3569 = vmatprep.mubr.msk.f32.mxu0 %vm3701_vm0, %v3700_v1  ;;  %3568 = vmatpush3.msra.mxu0 %v2015_v6  ;;  %v3101_v6 = vld [vmem:[%s4301_s20] sm:$0xff] }
 0xed7   : > { %3577 = vmatprep.subr.mxu0 %v3700_v1 }
 0xf86   : > { %v2493_v45 = vpop.f32.mrf.mxu1 }
 0xf88   : > { %v3556_v46 = vpop.f32.mrf.mxu1 }
 0xf89   : > { %v3112_v46 = vld [vmem:[%s4301_s20 + $0x58] sm:$0xff] }
 0xf91   : > { %v2420_v47 = vpop.f32.mrf.mxu0 }
 0xf92   : > { %v2494_v48 = vadd.f32 %v2493_v45, %v2420_v47  ;;  %v3113_v45 = vld [vmem:[%s4301_s20 + $0x60] sm:$0xff]  ;;  %v3111_v47 = vld [vmem:[%s4301_s20 + $0x50] sm:$0xff] }
 0xf93   : > { %v3551_v49 = vpop.f32.mrf.mxu0 }
 0xf94   : > { %v3109_v49 = vld [vmem:[%s4301_s20 + $0x40] sm:$0xff] }
 0xf95   : > { %v2571_v50 = vpop.f32.mrf.mxu0 }
 0xf96   : > { %v2575_v51 = vsel %vm2094_vm4, -1e+20, %v2571_v50  ;;  %v3108_v50 = vld [vmem:[%s4301_s20 + $0x38] sm:$0xff] }
 0xf97   : > { %v2576_v52 = vmul.f32 0.17677669, %v2575_v51  ;;  %v3561_v53 = vpop.f32.mrf.mxu0  ;;  %v3107_v51 = vld [vmem:[%s4301_s20 + $0x30] sm:$0xff] }
 0xf98   : > { %v3105_v53 = vld [vmem:[%s4301_s20 + $0x20] sm:$0xff] }
 0xf99   : > { %v2577_v54 = vsel %vm847_vm2, %v2576_v52, -inf }
 0xf9a   : > { %2578 = vmax.xlane.f32.xlu1 %v2577_v54  ;;  %v3104_v54 = vld [vmem:[%s4301_s20 + $0x18] sm:$0xff] }
 0xfab   : > { %2740 = vrot.lane.b32.xlu1 %v4060_v4, %s4335_s4 }
 0xfaf   : > { %2738 = vrot.lane.b32.xlu1 %v4053_v63, %s4335_s4 }
0x1023   : > { %v2579_v56 = vpop.xlane.xlu1 %2578 }
0x1024   : > { %v2580_v57 = vsub.f32 %v2576_v52, %v2579_v56  ;;  %v3106_v52 = vld [vmem:[%s4301_s20 + $0x28] sm:$0xff] }
0x1026   : > { %v2581_v58 = vmul.f32 1.442695, %v2580_v57 }
0x1027   : > { %v2741_v2 = vpop.permute.xlu1 %2740 }
0x1028   : > { %3680 = vpow2.f32 %v2581_v58 }
0x102b   : > { %v2739_v3 = vpop.permute.xlu1 %2738 }
0x1035   : > { %v3681_v59 = vpop.eup %3680 }
0x1036   : > { %v2583_v60 = vsel %vm847_vm2, %v3681_v59, 0.0 }
0x1037   : > { %2584 = vadd.xlane.f32.xlu0 %v2583_v60  ;;  %v3340_v60 = vld [vmem:[%s4297_s16] ss:$0 sm:$0xff] }
0x104d   : > { %2588 = vrot.lane.b32.xlu0 %v4060_v4, %s4336_s2 }
0x10c0   : > { %v2585_v61 = vpop.xlane.xlu0 %2584 }
0x10c1   : > { %3682 = vrcp.f32 %v2585_v61 }
0x10c4   : > { %v2589_v62 = vpop.permute.xlu0 %2588 }
0x10c5   : > { %3563 = vmatpush3.msra.mxu1 %v2589_v62  ;;  %v3341_v62 = vld [vmem:[%s4298_s17] ss:$0 sm:$0xff] }
0x10c6   : > { %3572 = vmatprep.subr.mxu1 %v3700_v1 }
0x10ce   : > { %v3683_v0 = vpop.eup %3682 }
0x10cf   : > { %v2587_v63 = vmul.f32 %v3683_v0, %v3681_v59 }
0x10d1   : > { %3565 = vmatmul.mubr.msk.f32.vlgmr.msra.gmra.mxu1 %vm847_vm2, %v2587_v63  ;;  %v3103_v63 = vld [vmem:[%s4301_s20 + $0x10] sm:$0xff] }
0x10d2   : > { %3573 = vmatpush3.xpose.msk.msra.mxu1 %vm847_vm2, %v2741_v2  ;;  %3574 = vmatprep.mubr.msk.f32.mxu1 %vm3701_vm0, %v3700_v1 }
0x10d3   : > { %3582 = vmatprep.subr.mxu1 %v3700_v1 }
0x10d5   : > { %3575 = vmatmul.mubr.msk.f32.vlgmr.msra.gmra.mxu1 %vm847_vm2, %v2739_v3  ;;  %v3102_v3 = vld [vmem:[%s4301_s20 + $0x8] sm:$0xff] }
0x10d6   : > { %3584 = vmatprep.mubr.msk.f32.mxu1 %vm3701_vm0, %v3700_v1  ;;  %3583 = vmatpush3.msra.mxu1 %v2016_v22 }
0x10d7   : > { %3598 = vmatprep.subr.mxu1 %v3700_v1 }
0x1191   : > { %v2660_v7 = vpop.f32.mrf.mxu1 }
0x1192   : > { %3570 = vmatmul.mubr.msk.f32.vlgmr.msra.gmra.mxu0 %vm847_vm2, %v2660_v7  ;;  %v3342_v7 = vld [vmem:[%s4300_s19] ss:$0 sm:$0xff] }
0x1193   : > { %v3566_v9 = vpop.f32.mrf.mxu1  ;;  %3579 = vmatprep.mubr.msk.f32.mxu0 %vm3701_vm0, %v3700_v1 }
0x1195   : > { %v2812_v11 = vpop.f32.mrf.mxu1 }
0x1196   : > { %v2816_v12 = vsel %vm2094_vm4, -1e+20, %v2812_v11 }
0x1197   : > { %v2817_v14 = vmul.f32 0.17677669, %v2816_v12  ;;  %v3576_v15 = vpop.f32.mrf.mxu1 }
0x1198   : > { %v3344_v15 = vld [vmem:[%s4302_s21] ss:$0 sm:$0xff] }
0x1199   : > { %v2818_v16 = vsel %vm847_vm2, %v2817_v14, -inf }
0x119a   : > { %2819 = vmax.xlane.f32.xlu0 %v2818_v16 }
0x11b0   : > { %2829 = vrot.lane.b32.xlu0 %v4060_v4, %s4337_s0 }
0x1223   : > { %v2820_v17 = vpop.xlane.xlu0 %2819 }
0x1224   : > { %v2821_v18 = vsub.f32 %v2817_v14, %v2820_v17 }
0x1226   : > { %v2822_v19 = vmul.f32 1.442695, %v2821_v18 }
0x1227   : > { %v2830_v20 = vpop.permute.xlu0 %2829 }
0x1228   : > { %3684 = vpow2.f32 %v2822_v19  ;;  %3578 = vmatpush3.msra.mxu0 %v2830_v20 }
0x1229   : > { %3587 = vmatprep.subr.mxu0 %v3700_v1 }
0x1235   : > { %v3685_v21 = vpop.eup %3684 }
0x1236   : > { %v2824_v10 = vsel %vm847_vm2, %v3685_v21, 0.0 }
0x1237   : > { %2825 = vadd.xlane.f32.xlu1 %v2824_v10 }
0x1252   : > { %v2733_v23 = vpop.f32.mrf.mxu0 }
0x1253   : > { %v2737_v13 = vadd.f32 %v2733_v23, %v2494_v48  ;;  %v3110_v48 = vld [vmem:[%s4301_s20 + $0x48] sm:$0xff] }
0x1254   : > { %v3571_v4 = vpop.f32.mrf.mxu0 }
0x12c0   : > { %v2826_v24 = vpop.xlane.xlu1 %2825 }
0x12c1   : > { %3686 = vrcp.f32 %v2826_v24 }
0x12ce   : > { %v3687_v25 = vpop.eup %3686 }
0x12cf   : > { %v2828_v8 = vmul.f32 %v3687_v25, %v3685_v21 }
0x12d1   : > { %3580 = vmatmul.mubr.msk.f32.vlgmr.msra.gmra.mxu0 %vm847_vm2, %v2828_v8  ;;  %v3345_v8 = vld [vmem:[%s4303_s22] ss:$0 sm:$0xff] }
0x12d2   : > { %3595 = vmatprep.mubr.msk.f32.mxu0 %vm3701_vm0, %v3700_v1  ;;  %3588 = vmatpush3.msra.mxu0 %v3019_v40 }
0x12d3   : > { %3589 = vmatprep.subr.mxu0 %v3700_v1 }
0x12d4   : > { %3590 = vmatpush3.msra.mxu0 %v3018_v41 }
0x12d5   : > { %3591 = vmatprep.subr.mxu0 %v3700_v1 }
0x1391   : > { %v2901_v26 = vpop.f32.mrf.mxu0 }
0x1392   : > { %3585 = vmatmul.mubr.msk.f32.vlgmr.msra.gmra.mxu1 %vm847_vm2, %v2901_v26 }
0x1393   : > { %v3581_v27 = vpop.f32.mrf.mxu0  ;;  %3630 = vmatprep.mubr.msk.f32.mxu1 %vm3701_vm0, %v3700_v1  ;;  %3599 = vmatpush3.msra.mxu1 %v3116_v43 }
0x1394   : > { %3600 = vmatprep.subr.mxu1 %v3700_v1  ;;  %v3346_v27 = vld [vmem:[%s4304_s23] ss:$0 sm:$0xff] }
0x1395   : > { %3601 = vmatpush3.msra.mxu1 %v3115_v44 }
0x1396   : > { %3602 = vmatprep.subr.mxu1 %v3700_v1 }
0x1397   : > { %3603 = vmatpush3.msra.mxu1 %v3114_v5 }
0x1398   : > { %3604 = vmatprep.subr.mxu1 %v3700_v1 }
0x1399   : > { %3605 = vmatpush3.msra.mxu1 %v3113_v45 }
0x139a   : > { %3606 = vmatprep.subr.mxu1 %v3700_v1 }
0x139b   : > { %3607 = vmatpush3.msra.mxu1 %v3112_v46 }
0x139c   : > { %3608 = vmatprep.subr.mxu1 %v3700_v1 }
0x139d   : > { %3609 = vmatpush3.msra.mxu1 %v3111_v47 }
0x139e   : > { %3610 = vmatprep.subr.mxu1 %v3700_v1 }
0x139f   : > { %3611 = vmatpush3.msra.mxu1 %v3110_v48 }
0x13a0   : > { %3612 = vmatprep.subr.mxu1 %v3700_v1 }
0x13a1   : > { %3613 = vmatpush3.msra.mxu1 %v3109_v49 }
0x13a2   : > { %3614 = vmatprep.subr.mxu1 %v3700_v1 }
0x13a3   : > { %3615 = vmatpush3.msra.mxu1 %v3108_v50 }
0x13a4   : > { %3616 = vmatprep.subr.mxu1 %v3700_v1 }
0x13a5   : > { %3617 = vmatpush3.msra.mxu1 %v3107_v51 }
0x13a6   : > { %3618 = vmatprep.subr.mxu1 %v3700_v1 }
0x13a7   : > { %3619 = vmatpush3.msra.mxu1 %v3106_v52 }
0x13a8   : > { %3620 = vmatprep.subr.mxu1 %v3700_v1 }
0x13a9   : > { %3621 = vmatpush3.msra.mxu1 %v3105_v53 }
0x13aa   : > { %3622 = vmatprep.subr.mxu1 %v3700_v1 }
0x13ab   : > { %3623 = vmatpush3.msra.mxu1 %v3104_v54 }
0x13ac   : > { %3624 = vmatprep.subr.mxu1 %v3700_v1 }
0x13ad   : > { %3625 = vmatpush3.msra.mxu1 %v3103_v63 }
0x13ae   : > { %3626 = vmatprep.subr.mxu1 %v3700_v1 }
0x13af   : > { %3627 = vmatpush3.msra.mxu1 %v3102_v3 }
0x13b0   : > { %3628 = vmatprep.subr.mxu1 %v3700_v1 }
0x13b1   : > { %3629 = vmatpush3.msra.mxu1 %v3101_v6 }
0x1452   : > { %v2974_v29 = vpop.f32.mrf.mxu1 }
0x1453   : > { %v2978_v30 = vadd.f32 %v2974_v29, %v2737_v13 }
0x1454   : > { %v3586_v31 = vpop.f32.mrf.mxu1 }
0x1455   : > { %v2985_v32 = vadd.f32 %v3339_v28, %v2978_v30 }
0x1457   : > { %v2986_v33 = vadd.f32 %v2985_v32, %v4021_v55  ;;  %v3017_v55 = vld [vmem:[%s4299_s18 + $0x8] sm:$0xff] }
0x1458   : > { %3592 = vmatpush3.msra.mxu0 %v3017_v55 }
0x1459   : > { %v2989_v34 = vsel %vm765_vm1, %v2986_v33, 0.0  ;;  %3593 = vmatprep.subr.mxu0 %v3700_v1 }
0x145a   : > { %2990 = vadd.xlane.f32.xlu1 %v2989_v34  ;;  %3594 = vmatpush3.msra.mxu0 %v3016_v42 }
0x14e3   : > { %v2991_v35 = vpop.xlane.xlu1 %2990 }
0x14e4   : > { %v2992_v36 = vmul.f32 0.03125, %v2991_v35 }
0x14e6   : > { %v2993_v37 = vsub.f32 %v2986_v33, %v2992_v36 }
0x14e8   : > { %v2994_v38 = vmul.f32 %v2993_v37, %v2993_v37 }
0x14ea   : > { %v2995_v39 = vsel %vm765_vm1, %v2994_v38, 0.0 }
0x14eb   : > { %2996 = vadd.xlane.f32.xlu1 %v2995_v39 }
0x1574   : > { %v2997_v56 = vpop.xlane.xlu1 %2996 }
0x1575   : > { %v2998_v57 = vmul.f32 0.03125, %v2997_v56 }
0x1577   : > { %v2999_v58 = vadd.f32 1e-05, %v2998_v57 }
0x1579   : > { %3688 = vrsqrt.f32 %v2999_v58 }
0x1586   : > { %v3689_v59 = vpop.eup %3688 }
0x1587   : > { %v3001_v61 = vmul.f32 %v3689_v59, %v2993_v37 }
0x1589   : > { %v3008_v0 = vmul.f32 %v3340_v60, %v3001_v61 }
0x158b   : > { %v3015_v2 = vadd.f32 %v3341_v62, %v3008_v0 }
0x158d   : > { %3596 = vmatmul.mubr.msk.f32.vlgmr.msra.gmra.mxu0 %vm765_vm1, %v3015_v2 }
0x164d   : > { %v3096_v9 = vpop.f32.mrf.mxu0 }
0x164e   : > { %v3097_v11 = vadd.f32 %v3342_v7, %v3096_v9 }
0x164f   : > { %v3597_v12 = vpop.f32.mrf.mxu0 }
0x1650   : > { %v3100_v14 = vmax.f32 %v3097_v11, 0.0 }
0x1652   : > { %3631 = vmatmul.mubr.f32.vlgmr.msra.gmra.mxu1 %v3100_v14 }
0x1712   : > { %v3190_v16 = vpop.f32.mrf.mxu1 }
0x1713   : > { %v3191_v17 = vadd.f32 %v3344_v15, %v3190_v16 }
0x1714   : > { %v3632_v18 = vpop.f32.mrf.mxu1 }
0x1715   : > { %v3194_v19 = vadd.f32 %v3191_v17, %v3015_v2 }
0x1717   : > { %v3197_v1 = vsel %vm765_vm1, %v3194_v19, 0.0 }
0x1718   : > { %3198 = vadd.xlane.f32.xlu1 %v3197_v1 }
0x17a1   : > { %v3199_v20 = vpop.xlane.xlu1 %3198 }
0x17a2   : > { %v3200_v21 = vmul.f32 0.03125, %v3199_v20 }
0x17a4   : > { %v3201_v10 = vsub.f32 %v3194_v19, %v3200_v21 }
0x17a6   : > { %v3202_v22 = vmul.f32 %v3201_v10, %v3201_v10 }
0x17a8   : > { %v3203_v23 = vsel %vm765_vm1, %v3202_v22, 0.0 }
0x17a9   : > { %3204 = vadd.xlane.f32.xlu1 %v3203_v23 }
0x1832   : > { %v3205_v13 = vpop.xlane.xlu1 %3204 }
0x1833   : > { %v3206_v4 = vmul.f32 0.03125, %v3205_v13 }
0x1835   : > { %v3207_v24 = vadd.f32 1e-05, %v3206_v4 }
0x1837   : > { %3690 = vrsqrt.f32 %v3207_v24 }
0x1844   : > { %v3691_v25 = vpop.eup %3690 }
0x1845   : > { %v3209_v26 = vmul.f32 %v3691_v25, %v3201_v10 }
0x1847   : > { %v3216_v28 = vmul.f32 %v3345_v8, %v3209_v26 }
0x1849   : > { %v3223_v29 = vadd.f32 %v3346_v27, %v3216_v28 }
0x184b   : > { %3224 = vst.msk [vmem:[%s749_s26] sm:$0xff] %vm765_vm1, %v3223_v29 }
0x184c PF: > { %s34_s5 = sadd.s32 1, %s3698_s5  }
0x184d   : > { %p31_p4 = scmp.ge.s32.totalorder %s34_s5, 4  }
0x184f   :  { %33 = sbr.rel (!%p31_p4) target bundleno = 10 (0xa), region = 149 }

// kernel: decoder_forward.5
= control target key start
LH: loop header
LB: loop body
LE: loop exit
PB: predicated region body
PF: predicated region fallthrough
CT: control target
= control target key end

     0   :  { %s5235_s0 = inlined_call_operand.vmem [shape: f32[2,8,32], index: 0, kind: input, shape index: {}]   ;;  %s5236_s1 = inlined_call_operand.vmem [shape: f32[2,8,32], index: 1, kind: input, shape index: {}]   ;;  %s5237_s2 = inlined_call_operand.vmem [shape: f32[8,8], index: 2, kind: input, shape index: {}]   ;;  %s5238_s3 = inlined_call_operand.vmem [shape: f32[8,8], index: 3, kind: input, shape index: {}]   ;;  %s5239_s4 = inlined_call_operand.vmem [shape: f32[32,96], index: 4, kind: input, shape index: {}]   ;;  %s5240_s5 = inlined_call_operand.hbm [shape: f32[1,96], index: 5, kind: input, shape index: {}]   ;;  %s5241_s6 = inlined_call_operand.vmem [shape: f32[32,32], index: 6, kind: input, shape index: {}]   ;;  %s5242_s7 = inlined_call_operand.hbm [shape: f32[1,32], index: 7, kind: input, shape index: {}]   ;;  %s5243_s8 = inlined_call_operand.hbm [shape: f32[1,32], index: 8, kind: input, shape index: {}]   ;;  %s5244_s9 = inlined_call_operand.hbm [shape: f32[1,32], index: 9, kind: input, shape index: {}]   ;;  %s5245_s10 = inlined_call_operand.vmem [shape: f32[32,32], index: 10, kind: input, shape index: {}]   ;;  %s5246_s11 = inlined_call_operand.hbm [shape: f32[1,32], index: 11, kind: input, shape index: {}]   ;;  %s5247_s12 = inlined_call_operand.vmem [shape: f32[32,64], index: 12, kind: input, shape index: {}]   ;;  %s5248_s13 = inlined_call_operand.hbm [shape: f32[1,64], index: 13, kind: input, shape index: {}]   ;;  %s5249_s14 = inlined_call_operand.vmem [shape: f32[32,32], index: 14, kind: input, shape index: {}]   ;;  %s5250_s15 = inlined_call_operand.hbm [shape: f32[1,32], index: 15, kind: input, shape index: {}]   ;;  %s5251_s16 = inlined_call_operand.hbm [shape: f32[1,32], index: 16, kind: input, shape index: {}]   ;;  %s5252_s17 = inlined_call_operand.hbm [shape: f32[1,32], index: 17, kind: input, shape index: {}]   ;;  %s5253_s18 = inlined_call_operand.vmem [shape: f32[32,128], index: 18, kind: input, shape index: {}]   ;;  %s5254_s19 = inlined_call_operand.hbm [shape: f32[1,128], index: 19, kind: input, shape index: {}]   ;;  %s5255_s20 = inlined_call_operand.vmem [shape: f32[128,32], index: 20, kind: input, shape index: {}]   ;;  %s5256_s21 = inlined_call_operand.hbm [shape: f32[1,32], index: 21, kind: input, shape index: {}]   ;;  %s5257_s22 = inlined_call_operand.hbm [shape: f32[1,32], index: 22, kind: input, shape index: {}]   ;;  %s5258_s23 = inlined_call_operand.hbm [shape: f32[1,32], index: 23, kind: input, shape index: {}]   ;;  %s5259_s24 = inlined_call_operand.vmem [shape: f32[2,8,32], index: 24, kind: output, shape index: {}]  }
   0x1   :  { %5268 = sst [smem:[#allocation29_spill]] %s5235_s0 }
   0x2   :  { %5269 = sst [smem:[#allocation30_spill]] %s5236_s1 }
   0x3   :  { %5270 = sst [smem:[#allocation31_spill]] %s5237_s2 }
   0x4   :  { %5271 = sst [smem:[#allocation32_spill]] %s5238_s3 }
   0x5   :  { %5272 = sst [smem:[#allocation33_spill]] %s5239_s4 }
   0x6   :  { %5273 = sst [smem:[#allocation34_spill]] %s5240_s5 }
   0x7   :  { %5274 = sst [smem:[#allocation35_spill]] %s5241_s6 }
   0x8   :  { %5275 = sst [smem:[#allocation36_spill]] %s5242_s7 }
   0x9   :  { %5276 = sst [smem:[#allocation37_spill]] %s5243_s8 }
   0xa   :  { %5277 = sst [smem:[#allocation38_spill]] %s5244_s9 }
   0xb   :  { %29 = vsyncpa [#allocation3], 0 }
   0xc   :  { %30 = vsyncpa [#allocation5], 0 }
   0xd   :  { %31 = vsyncpa [#allocation8], 0 }
   0xe   :  { %32 = vsyncpa [#allocation11], 0 }
   0xf   :  { %33 = vsyncpa [#allocation14], 0 }
  0x10   :  { %34 = vsyncpa [#allocation17], 0 }
  0x11   :  { %35 = vsyncpa [#allocation20], 0  ;;  %s4663_s5 = smov 0  }
  0x12 LB: > { %s4512_s26 = smov [#allocation4]   ;;  %s4669_s28 = sadd.s32 4294967295, %s4510_s5   ;;  %s4510_s5 = sphi %s4663_s5, %s41_s5  }
  0x13   : > { %s622_s27 = sshll.u32 %s4512_s26, 4  ;;  %p3581_p0 = scmp.ge.s32.totalorder %s4510_s5, 1  ;;  %s623_s27 = int_to_ptr.vmem [resolvable:$true] %s622_s27 }
  0x14   : > { %p586_p1 = scmp.lt.s32.totalorder %s4510_s5, 3  ;;  %p5262_p2 = scmp.eq.s32.totalorder %s4669_s28, 0 }
  0x15   : > { %s4513_s2 = smov [#allocation7]   ;;  %s4514_s0 = smov [#allocation10]  }
  0x16   : > { %p4674_p3 = pnand %p3581_p0, %p586_p1  ;;  %s644_s29 = sshll.u32 %s4513_s2, 4  ;;  %s4680_s29 = int_to_ptr.vmem [resolvable:$true] %s644_s29 }
  0x17   : > { %s672_s7 = sshll.u32 %s4514_s0, 4  ;;  %s4515_s3 = smov [#allocation13]   ;;  %s4688_s7 = int_to_ptr.vmem [resolvable:$true] %s672_s7 }
  0x18   : > { %p4000_p4 = pneg %p4674_p3  ;;  %s697_s25 = sshll.u32 %s4515_s3, 4  ;;  %s4690_s25 = int_to_ptr.vmem [resolvable:$true] %s697_s25 }
  0x19   : > { %s4149_s4 = scalar_lea.vmem %s623_s27, 16  ;;  %s4156_s1 = scalar_lea.vmem %s623_s27, 32 }
  0x1a   : > { %p4684_p5 = pnand %p5262_p2, %p4000_p4  ;;  %p4150_p7 = scmp.ne.s32.totalorder %s623_s27, %s4149_s4 }
  0x1b   : > { %p4157_p10 = scmp.lt.s32.totalorder %s623_s27, %s623_s27  ;;  %p4158_p11 = scmp.lt.s32.totalorder %s4156_s1, %s4149_s4 }
  0x1c   : > { %p4694_p6 = pneg %p4684_p5 }
  0x1d   : > { %p4159_p12 = por %p4158_p11, %p4157_p10 }
  0x1e   : > { %p4152_p8 = pnand %p4150_p7, %p4694_p6 }
  0x20   : > { %p4153_p9 = pneg %p4152_p8 }
  0x22   : > { %p4160_p13 = pnand %p4159_p12, %p4153_p9 }
  0x24   : > { %4163 = shalt.err (!%p4160_p13)
}
  0x25   : > { %s5281_s0 = sld [smem:[#allocation36_spill]]  ;;  %s4175_s3 = scalar_lea.vmem %s4680_s29, 16 }
  0x26   : > { %p4176_p0 = scmp.ne.s32.totalorder %s4680_s29, %s4175_s3  ;;  %s4182_s4 = scalar_lea.vmem %s4680_s29, 32 }
  0x27   : > { %p4183_p7 = scmp.lt.s32.totalorder %s4680_s29, %s4680_s29  ;;  %p4184_p8 = scmp.lt.s32.totalorder %s4182_s4, %s4175_s3 }
  0x28   : > { %p4178_p1 = pnand %p4176_p0, %p4694_p6 }
  0x29   : > { %p4185_p9 = por %p4184_p8, %p4183_p7 }
  0x2a   : > { %p4179_p4 = pneg %p4178_p1 }
  0x2b   : > { %4006 = dma.hbm_to_vmem [thread:$0]  (!%p4684_p5), %s5281_s0, 16, %s623_s27, [#allocation5]  }
  0x2c   : > { %p4186_p10 = pnand %p4185_p9, %p4179_p4 }
  0x2e   : > { %4189 = shalt.err (!%p4186_p10)
}
  0x2f   : > { %s5282_s9 = sld [smem:[#allocation38_spill]]  ;;  %s4201_s27 = scalar_lea.vmem %s4688_s7, 16 }
  0x30   : > { %p4202_p11 = scmp.ne.s32.totalorder %s4688_s7, %s4201_s27  ;;  %s4208_s2 = scalar_lea.vmem %s4688_s7, 32 }
  0x31   : > { %p4209_p0 = scmp.lt.s32.totalorder %s4688_s7, %s4688_s7  ;;  %p4210_p1 = scmp.lt.s32.totalorder %s4208_s2, %s4201_s27 }
  0x32   : > { %p4204_p12 = pnand %p4202_p11, %p4694_p6 }
  0x33   : > { %p4211_p4 = por %p4210_p1, %p4209_p0 }
  0x34   : > { %p4205_p13 = pneg %p4204_p12 }
  0x35   : > { %4012 = dma.hbm_to_vmem [thread:$0]  (!%p4684_p5), %s5282_s9, 16, %s4680_s29, [#allocation8]  }
  0x36   : > { %p4212_p7 = pnand %p4211_p4, %p4205_p13 }
  0x38   : > { %4215 = shalt.err (!%p4212_p7)
}
  0x39   : > { %4018 = dma.hbm_to_vmem [thread:$0]  (!%p4684_p5), %s5248_s13, 16, %s4688_s7, [#allocation11]  }
  0x3a   : > { %s4227_s29 = scalar_lea.vmem %s4690_s25, 16  ;;  %s4234_s4 = scalar_lea.vmem %s4690_s25, 32 }
  0x3b   : > { %p4228_p8 = scmp.ne.s32.totalorder %s4690_s25, %s4227_s29  ;;  %p4235_p11 = scmp.lt.s32.totalorder %s4690_s25, %s4690_s25 }
  0x3c   : > { %p4236_p12 = scmp.lt.s32.totalorder %s4234_s4, %s4227_s29 }
  0x3d   : > { %p4230_p9 = pnand %p4228_p8, %p4694_p6 }
  0x3e   : > { %p4237_p13 = por %p4236_p12, %p4235_p11 }
  0x3f   : > { %p4231_p10 = pneg %p4230_p9 }
  0x41   : > { %p4238_p0 = pnand %p4237_p13, %p4231_p10 }
  0x43   : > { %4241 = shalt.err (!%p4238_p0)
}
  0x44   : > { %4024 = dma.hbm_to_vmem [thread:$0]  (!%p4684_p5), %s5251_s16, 16, %s4690_s25, [#allocation14]  }
  0x45   : > { %s4516_s7 = smov [#allocation16]   ;;  %s4517_s2 = smov [#allocation19]  }
  0x46   : > { %s722_s27 = sshll.u32 %s4516_s7, 4  ;;  %s747_s0 = sshll.u32 %s4517_s2, 4  ;;  %s723_s27 = int_to_ptr.vmem [resolvable:$true] %s722_s27  ;;  %s748_s0 = int_to_ptr.vmem [resolvable:$true] %s747_s0 }
  0x47   : > { %s4253_s3 = scalar_lea.vmem %s723_s27, 16  ;;  %s4260_s29 = scalar_lea.vmem %s723_s27, 32 }
  0x48   : > { %p4254_p1 = scmp.ne.s32.totalorder %s723_s27, %s4253_s3  ;;  %p4261_p8 = scmp.lt.s32.totalorder %s723_s27, %s723_s27 }
  0x49   : > { %p4262_p9 = scmp.lt.s32.totalorder %s4260_s29, %s4253_s3 }
  0x4a   : > { %p4256_p4 = pnand %p4254_p1, %p4694_p6 }
  0x4b   : > { %p4263_p10 = por %p4262_p9, %p4261_p8 }
  0x4c   : > { %p4257_p7 = pneg %p4256_p4 }
  0x4e   : > { %p4264_p11 = pnand %p4263_p10, %p4257_p7 }
  0x50   : > { %4267 = shalt.err (!%p4264_p11)
}
  0x51   : > { %4030 = dma.hbm_to_vmem [thread:$0]  (!%p4684_p5), %s5254_s19, 16, %s723_s27, [#allocation17]  }
  0x52   : > { %s4279_s1 = scalar_lea.vmem %s748_s0, 16  ;;  %s4286_s26 = scalar_lea.vmem %s748_s0, 32 }
  0x53   : > { %p4280_p12 = scmp.ne.s32.totalorder %s748_s0, %s4279_s1  ;;  %p4287_p1 = scmp.lt.s32.totalorder %s748_s0, %s748_s0 }
  0x54   : > { %p4288_p4 = scmp.lt.s32.totalorder %s4286_s26, %s4279_s1 }
  0x55   : > { %p4282_p13 = pnand %p4280_p12, %p4694_p6 }
  0x56   : > { %p4289_p2 = por %p4288_p4, %p4287_p1 }
  0x57   : > { %p4283_p0 = pneg %p4282_p13 }
  0x59   : > { %p4290_p8 = pnand %p4289_p2, %p4283_p0 }
  0x5b   : > { %4293 = shalt.err (!%p4290_p8)
}
  0x5c   : > { %4036 = dma.hbm_to_vmem [thread:$0]  (!%p4684_p5), %s5257_s22, 16, %s748_s0, [#allocation20]  }
  0x5d   : > { %s4518_s27 = smov [#allocation2]   ;;  %s4519_s29 = smov [#allocation6]  }
  0x5e   : > { %s608_s3 = sshll.u32 %s4518_s27, 4  ;;  %s633_s4 = sshll.u32 %s4519_s29, 4  ;;  %s609_s3 = int_to_ptr.vmem [resolvable:$true] %s608_s3  ;;  %s634_s4 = int_to_ptr.vmem [resolvable:$true] %s633_s4 }
  0x5f   : > { %s4305_s25 = scalar_lea.vmem %s609_s3, 16  ;;  %s4312_s1 = scalar_lea.vmem %s609_s3, 32 }
  0x60   : > { %p4306_p7 = scmp.ne.s32.totalorder %s609_s3, %s4305_s25  ;;  %p4313_p2 = scmp.lt.s32.totalorder %s609_s3, %s609_s3 }
  0x61   : > { %p4314_p11 = scmp.lt.s32.totalorder %s4312_s1, %s4305_s25 }
  0x62   : > { %p4308_p9 = pnand %p4306_p7, %p4694_p6 }
  0x63   : > { %p4315_p12 = por %p4314_p11, %p4313_p2 }
  0x64   : > { %p4309_p10 = pneg %p4308_p9 }
  0x66   : > { %p4316_p13 = pnand %p4315_p12, %p4309_p10 }
  0x68   : > { %4319 = shalt.err (!%p4316_p13)
}
  0x69   : > { %s5283_s7 = sld [smem:[#allocation34_spill]]  ;;  %s4331_s2 = scalar_lea.vmem %s634_s4, 16 }
  0x6a   : > { %p4332_p0 = scmp.ne.s32.totalorder %s634_s4, %s4331_s2  ;;  %s4338_s27 = scalar_lea.vmem %s634_s4, 32 }
  0x6b   : > { %p4339_p8 = scmp.lt.s32.totalorder %s634_s4, %s634_s4  ;;  %p4340_p7 = scmp.lt.s32.totalorder %s4338_s27, %s4331_s2 }
  0x6c   : > { %p4334_p1 = pnand %p4332_p0, %p4694_p6 }
  0x6d   : > { %p4341_p9 = por %p4340_p7, %p4339_p8 }
  0x6e   : > { %p4335_p4 = pneg %p4334_p1 }
  0x6f   : > { %4003 = dma.hbm_to_vmem [thread:$0]  (!%p4684_p5), %s5283_s7, 16, %s609_s3, [#allocation3]  }
  0x70   : > { %p4342_p2 = pnand %p4341_p9, %p4335_p4 }
  0x72   : > { %4345 = shalt.err (!%p4342_p2)
}
  0x73   : > { %s5284_s1 = sld [smem:[#allocation37_spill]]  ;;  %s4520_s3 = smov [#allocation9]  }
  0x74   : > { %s658_s26 = sshll.u32 %s4520_s3, 4  ;;  %s4521_s0 = smov [#allocation12]   ;;  %s659_s26 = int_to_ptr.vmem [resolvable:$true] %s658_s26 }
  0x75   : > { %s686_s7 = sshll.u32 %s4521_s0, 4  ;;  %s4357_s9 = scalar_lea.vmem %s659_s26, 16  ;;  %s687_s7 = int_to_ptr.vmem [resolvable:$true] %s686_s7 }
  0x76   : > { %p4358_p10 = scmp.ne.s32.totalorder %s659_s26, %s4357_s9  ;;  %s4364_s2 = scalar_lea.vmem %s659_s26, 32 }
  0x77   : > { %p4365_p13 = scmp.lt.s32.totalorder %s659_s26, %s659_s26  ;;  %p4366_p0 = scmp.lt.s32.totalorder %s4364_s2, %s4357_s9 }
  0x78   : > { %p4360_p11 = pnand %p4358_p10, %p4694_p6 }
  0x79   : > { %4009 = dma.hbm_to_vmem [thread:$0]  (!%p4684_p5), %s5284_s1, 16, %s634_s4, [#allocation5]  }
  0x7a   : > { %p4361_p12 = pneg %p4360_p11  ;;  %p4367_p1 = por %p4366_p0, %p4365_p13 }
  0x7c   : > { %p4368_p4 = pnand %p4367_p1, %p4361_p12 }
  0x7e   : > { %4371 = shalt.err (!%p4368_p4)
}
  0x7f   : > { %4015 = dma.hbm_to_vmem [thread:$0]  (!%p4684_p5), %s5246_s11, 16, %s659_s26, [#allocation8]  }
  0x80   : > { %s4383_s29 = scalar_lea.vmem %s687_s7, 16  ;;  %s4390_s25 = scalar_lea.vmem %s687_s7, 32 }
  0x81   : > { %p4384_p8 = scmp.ne.s32.totalorder %s687_s7, %s4383_s29  ;;  %p4391_p2 = scmp.lt.s32.totalorder %s687_s7, %s687_s7 }
  0x82   : > { %p4392_p10 = scmp.lt.s32.totalorder %s4390_s25, %s4383_s29 }
  0x83   : > { %p4386_p7 = pnand %p4384_p8, %p4694_p6 }
  0x84   : > { %p4393_p11 = por %p4392_p10, %p4391_p2 }
  0x85   : > { %p4387_p9 = pneg %p4386_p7 }
  0x87   : > { %p4394_p13 = pnand %p4393_p11, %p4387_p9 }
  0x89   : > { %4397 = shalt.err (!%p4394_p13)
}
  0x8a   : > { %4021 = dma.hbm_to_vmem [thread:$0]  (!%p4684_p5), %s5250_s15, 16, %s687_s7, [#allocation11]  }
  0x8b   : > { %s4522_s3 = smov [#allocation15]   ;;  %s4523_s0 = smov [#allocation18]  }
  0x8c   : > { %s708_s26 = sshll.u32 %s4522_s3, 4  ;;  %s736_s2 = sshll.u32 %s4523_s0, 4  ;;  %s709_s26 = int_to_ptr.vmem [resolvable:$true] %s708_s26  ;;  %s737_s2 = int_to_ptr.vmem [resolvable:$true] %s736_s2 }
  0x8d   : > { %s4409_s27 = scalar_lea.vmem %s709_s26, 16  ;;  %s4416_s4 = scalar_lea.vmem %s709_s26, 32 }
  0x8e   : > { %p4410_p12 = scmp.ne.s32.totalorder %s709_s26, %s4409_s27  ;;  %p4417_p4 = scmp.lt.s32.totalorder %s709_s26, %s709_s26 }
  0x8f   : > { %p4418_p8 = scmp.lt.s32.totalorder %s4416_s4, %s4409_s27 }
  0x90   : > { %p4412_p0 = pnand %p4410_p12, %p4694_p6 }
  0x91   : > { %p4419_p7 = por %p4418_p8, %p4417_p4 }
  0x92   : > { %p4413_p1 = pneg %p4412_p0 }
  0x94   : > { %p4420_p9 = pnand %p4419_p7, %p4413_p1 }
  0x96   : > { %4423 = shalt.err (!%p4420_p9)
}
  0x97   : > { %4027 = dma.hbm_to_vmem [thread:$0]  (!%p4684_p5), %s5252_s17, 16, %s709_s26, [#allocation14]  }
  0x98   : > { %s4435_s25 = scalar_lea.vmem %s737_s2, 16  ;;  %s4442_s9 = scalar_lea.vmem %s737_s2, 32 }
  0x99   : > { %p4436_p2 = scmp.ne.s32.totalorder %s737_s2, %s4435_s25  ;;  %p4443_p13 = scmp.lt.s32.totalorder %s737_s2, %s737_s2 }
  0x9a   : > { %p4444_p12 = scmp.lt.s32.totalorder %s4442_s9, %s4435_s25 }
  0x9b   : > { %p4438_p10 = pnand %p4436_p2, %p4694_p6 }
  0x9c   : > { %p4445_p0 = por %p4444_p12, %p4443_p13 }
  0x9d   : > { %p4439_p11 = pneg %p4438_p10 }
  0x9f   : > { %p4446_p4 = pnand %p4445_p0, %p4439_p11 }
  0xa1   : > { %4449 = shalt.err (!%p4446_p4)
}
  0xa2   : > { %4033 = dma.hbm_to_vmem [thread:$0]  (!%p4684_p5), %s5256_s21, 16, %s737_s2, [#allocation17]  }
  0xa3   : > { %s4524_s26 = smov [#allocation21]  }
  0xa4   : > { %s758_s0 = sshll.u32 %s4524_s26, 4  ;;  %s759_s0 = int_to_ptr.vmem [resolvable:$true] %s758_s0 }
  0xa5   : > { %s4461_s27 = scalar_lea.vmem %s759_s0, 16  ;;  %s4468_s4 = scalar_lea.vmem %s759_s0, 32 }
  0xa6   : > { %p4462_p1 = scmp.ne.s32.totalorder %s759_s0, %s4461_s27  ;;  %p4469_p9 = scmp.lt.s32.totalorder %s759_s0, %s759_s0 }
  0xa7   : > { %p4470_p2 = scmp.lt.s32.totalorder %s4468_s4, %s4461_s27 }
  0xa8   : > { %p4464_p8 = pnand %p4462_p1, %p4694_p6 }
  0xa9   : > { %p4471_p10 = por %p4470_p2, %p4469_p9 }
  0xaa   : > { %p4465_p7 = pneg %p4464_p8 }
  0xac   : > { %p4472_p11 = pnand %p4471_p10, %p4465_p7 }
  0xae   : > { %4475 = shalt.err (!%p4472_p11)
}
  0xaf   : > { %4039 = dma.hbm_to_vmem [thread:$0]  (!%p4684_p5), %s5258_s23, 16, %s759_s0, [#allocation20]  }
  0xb0   : > { %785 = sbr.rel (%p4674_p3) target bundleno = 6406 (0x1906), region = 116  ;;  %p5285_p13 = scmp.eq.s32.totalorder (!%p4674_p3), %s4669_s28, 0 }
  0xb5   : > { %4481 = dma.done.wait (%p5285_p13), [#allocation3], 16   ;;  %p5286_p6 = pmov %p5285_p13 }
  0xb7   : > { %4483 = vsyncadd (%p5286_p6), [#allocation3], 4294967280  ;;  %p5287_p12 = pmov %p5286_p6 }
  0xb8   : > { %p5288_p0 = pmov %p5286_p6 }
  0xb9   : > { %4485 = dma.done.wait (%p5287_p12), [#allocation5], 32  }
  0xba   : > { %4487 = vsyncadd (%p5288_p0), [#allocation5], 4294967264  ;;  %p5289_p4 = pmov %p5288_p0 }
  0xbb   : > { %p5290_p5 = pmov %p5288_p0 }
  0xbc   : > { %4489 = dma.done.wait (%p5289_p4), [#allocation8], 32  }
  0xbd   : > { %4491 = vsyncadd (%p5290_p5), [#allocation8], 4294967264  ;;  %p5291_p3 = pmov %p5288_p0 }
  0xbe   : > { %p5292_p1 = pmov %p5288_p0 }
  0xbf   : > { %4493 = dma.done.wait (%p5291_p3), [#allocation11], 32  }
  0xc0   : > { %4495 = vsyncadd (%p5292_p1), [#allocation11], 4294967264  ;;  %p5293_p8 = pmov %p5288_p0 }
  0xc1   : > { %p5294_p7 = pmov %p5288_p0 }
  0xc2   : > { %4497 = dma.done.wait (%p5293_p8), [#allocation14], 32  }
  0xc3   : > { %4499 = vsyncadd (%p5294_p7), [#allocation14], 4294967264  ;;  %p5295_p9 = pmov %p5288_p0 }
  0xc4   : > { %p5296_p2 = pmov %p5288_p0 }
  0xc5   : > { %4501 = dma.done.wait (%p5295_p9), [#allocation17], 32  }
  0xc6   : > { %4503 = vsyncadd (%p5296_p2), [#allocation17], 4294967264  ;;  %p5297_p10 = pmov %p5288_p0 }
  0xc7   : > { %p5298_p11 = pmov %p5288_p0 }
  0xc8   : > { %4505 = dma.done.wait (%p5297_p10), [#allocation20], 32  }
  0xc9   : > { %4507 = vsyncadd (%p5298_p11), [#allocation20], 4294967264  ;;  %p901_p13 = scmp.lt.s32.totalorder %s4669_s28, 1  ;;  %v4525_v0 = vmov 0.0   ;;  %vm4526_vm0 = vmmov 0   ;;  %s5299_s2 = sld [smem:[#allocation33_spill]] }
  0xca   : > { %3749 = vmatprep.subr.mxu0 %v4525_v0  ;;  %3757 = vmatprep.mubr.msk.f32.mxu0 %vm4526_vm0, %v4525_v0  ;;  %vm928_vm1 = vcmask 261120   ;;  %v3613_v6 = vld [vmem:[#allocation2] ss:$0 sm:$0xff]  ;;  %s4527_s7 = smov 120   ;;  %s5267_s30 = smov 96   ;;  %vm1010_vm2 = vcmask 64512  }
  0xcb   : > { %s5310_s28 = smov (!%p901_p13, %s4669_s28), 1  ;;  %3765 = vmatprep.subr.mxu1 %v4525_v0  ;;  %3767 = vmatprep.mubr.msk.f32.mxu1 %vm4526_vm0, %v4525_v0  ;;  %s4529_s8 = smov 88  }
  0xcc   : > { %s4845_s6 = sshll.u32 %s5310_s28, 3  ;;  %s5300_s28 = sld [smem:[#allocation29_spill]] }
  0xcd   : > { %s5301_s1 = sld [smem:[#allocation31_spill]]  ;;  %s4530_s3 = smov 56  }
  0xce   : > { %s4531_s26 = smov 64   ;;  %s5264_s0 = smov 80  }
  0xcf   : > { %v920_v1 = vld [vmem:[%s5299_s2 + $0x18] sm:$0xff]  ;;  %v919_v2 = vld [vmem:[%s5299_s2 + $0x10] sm:$0xff]  ;;  %v918_v3 = vld [vmem:[%s5299_s2 + $0x8] sm:$0xff]  ;;  %s5302_s29 = sld [smem:[#allocation35_spill]]  ;;  %s4537_s25 = smov 40  }
  0xd0   : > { %3750 = vmatpush3.msra.mxu0 %v920_v1  ;;  %v917_v4 = vld [vmem:[%s5299_s2] sm:$0xff] }
  0xd1   : > { %3751 = vmatprep.subr.mxu0 %v4525_v0 }
  0xd2   : > { %s904_s27 = scalar_lea.vmem %s5300_s28, %s4845_s6  ;;  %3752 = vmatpush3.msra.mxu0 %v919_v2  ;;  %s4533_s28 = smov 112  }
  0xd3   : > { %3753 = vmatprep.subr.mxu0 %v4525_v0  ;;  %v4865_v5 = vld [vmem:[%s904_s27] sm:$0xff]  ;;  %s5304_s27 = sld [smem:[#allocation32_spill]] }
  0xd4   : > { %3754 = vmatpush3.msra.mxu0 %v918_v3  ;;  %v4895_v13 = vld [vmem:[%s5301_s1] sm:$0xff]  ;;  %s5263_s1 = smov 72  }
  0xd5   : > { %3755 = vmatprep.subr.mxu0 %v4525_v0  ;;  %vm1085_vm3 = vcmp.eq.f32.partialorder %v4895_v13, 0.0  ;;  %v1002_v42 = vld [vmem:[%s5302_s29] sm:$0xff]  ;;  %v1003_v43 = vld [vmem:[%s5302_s29 + $0x8] sm:$0xff] }
  0xd6   : > { %3756 = vmatpush3.msra.mxu0 %v917_v4 }
  0xd7   : > { %3758 = vmatmul.mubr.msk.f32.vlgmr.msra.gmra.mxu0 %vm928_vm1, %v4865_v5  ;;  %3760 = vmatprep.subr.mxu0 %v4525_v0 }
  0xd8   : > { %3762 = vmatprep.mubr.msk.f32.mxu0 %vm4526_vm0, %v4525_v0 }
 0x197   : > { %v998_v7 = vpop.f32.mrf.mxu0 }
 0x198   : > { %v4873_v8 = vadd.f32 %v3613_v6, %v998_v7 }
 0x199   : > { %v3759_v9 = vpop.f32.mrf.mxu0 }
 0x19a   : > { %1175 = vrot.lane.b32.xlu1 %v4873_v8, %s4527_s7  ;;  %1008 = vrot.lane.b32.xlu0 %v4873_v8, %s5267_s30 }
 0x19e   : > { %1177 = vrot.lane.b32.xlu0 %v4873_v8, %s4529_s8 }
 0x20c   : > { %v1009_v10 = vpop.permute.xlu0 %1008  ;;  %v1176_v12 = vpop.permute.xlu1 %1175 }
 0x20d   : > { %3761 = vmatpush3.xpose.msk.msra.mxu0 %vm1010_vm2, %v1009_v10  ;;  %v1004_v10 = vld [vmem:[%s5302_s29 + $0x10] sm:$0xff] }
 0x20e   : > { %3770 = vmatprep.subr.mxu0 %v4525_v0 }
 0x210   : > { %3763 = vmatmul.mubr.msk.f32.vlgmr.msra.gmra.mxu0 %vm1010_vm2, %v4873_v8  ;;  %v1178_v11 = vpop.permute.xlu0 %1177 }
 0x211   : > { %3771 = vmatpush3.xpose.msk.msra.mxu0 %vm1010_vm2, %v1178_v11  ;;  %3772 = vmatprep.mubr.msk.f32.mxu0 %vm4526_vm0, %v4525_v0 }
 0x212   : > { %3780 = vmatprep.subr.mxu0 %v4525_v0 }
 0x214   : > { %3773 = vmatmul.mubr.msk.f32.vlgmr.msra.gmra.mxu0 %vm1010_vm2, %v1176_v12 }
 0x215   : > { %3782 = vmatprep.mubr.msk.f32.mxu0 %vm4526_vm0, %v4525_v0  ;;  %3781 = vmatpush3.msra.mxu0 %v1003_v43 }
 0x216   : > { %3790 = vmatprep.subr.mxu0 %v4525_v0 }
 0x2d0   : > { %v1081_v14 = vpop.f32.mrf.mxu0 }
 0x2d1   : > { %v1086_v15 = vsel %vm1085_vm3, -1e+20, %v1081_v14 }
 0x2d2   : > { %v1087_v16 = vmul.f32 0.17677669, %v1086_v15  ;;  %v3764_v17 = vpop.f32.mrf.mxu0 }
 0x2d4   : > { %v1249_v18 = vpop.f32.mrf.mxu0  ;;  %v1088_v19 = vsel %vm1010_vm2, %v1087_v16, -inf }
 0x2d5   : > { %v1253_v20 = vsel %vm1085_vm3, -1e+20, %v1249_v18  ;;  %1089 = vmax.xlane.f32.xlu1 %v1088_v19 }
 0x2d6   : > { %v1254_v21 = vmul.f32 0.17677669, %v1253_v20  ;;  %v3774_v22 = vpop.f32.mrf.mxu0 }
 0x2d8   : > { %v1255_v23 = vsel %vm1010_vm2, %v1254_v21, -inf }
 0x2d9   : > { %1256 = vmax.xlane.f32.xlu0 %v1255_v23 }
 0x35e   : > { %v1090_v24 = vpop.xlane.xlu1 %1089 }
 0x35f   : > { %v1091_v25 = vsub.f32 %v1087_v16, %v1090_v24  ;;  %v1005_v24 = vld [vmem:[%s5302_s29 + $0x18] sm:$0xff] }
 0x361   : > { %v1092_v26 = vmul.f32 1.442695, %v1091_v25 }
 0x362   : > { %v1257_v27 = vpop.xlane.xlu0 %1256 }
 0x363   : > { %4100 = vpow2.f32 %v1092_v26  ;;  %v1258_v28 = vsub.f32 %v1254_v21, %v1257_v27 }
 0x365   : > { %v1259_v29 = vmul.f32 1.442695, %v1258_v28 }
 0x367   : > { %4102 = vpow2.f32 %v1259_v29 }
 0x370   : > { %v4101_v30 = vpop.eup %4100 }
 0x371   : > { %v1094_v31 = vsel %vm1010_vm2, %v4101_v30, 0.0 }
 0x372   : > { %1095 = vadd.xlane.f32.xlu0 %v1094_v31 }
 0x374   : > { %v4103_v32 = vpop.eup %4102 }
 0x375   : > { %v1261_v33 = vsel %vm1010_vm2, %v4103_v32, 0.0 }
 0x376   : > { %1262 = vadd.xlane.f32.xlu1 %v1261_v33 }
 0x387   : > { %1266 = vrot.lane.b32.xlu1 %v4873_v8, %s4530_s3  ;;  %s5265_s3 = smov 104  }
 0x388   : > { %1099 = vrot.lane.b32.xlu0 %v4873_v8, %s4531_s26  ;;  %s4536_s26 = smov 48  }
 0x38b   : > { %1490 = vrot.lane.b32.xlu1 %v4873_v8, %s5264_s0  ;;  %s5303_s0 = sld [smem:[#allocation30_spill]] }
 0x38c   : > { %1488 = vrot.lane.b32.xlu0 %v4873_v8, %s4533_s28 }
 0x3fb   : > { %v1096_v34 = vpop.xlane.xlu0 %1095 }
 0x3fc   : > { %4104 = vrcp.f32 %v1096_v34 }
 0x3ff   : > { %v1263_v35 = vpop.xlane.xlu1 %1262  ;;  %v1100_v36 = vpop.permute.xlu0 %1099 }
 0x400   : > { %4106 = vrcp.f32 %v1263_v35  ;;  %3766 = vmatpush3.msra.mxu1 %v1100_v36 }
 0x401   : > { %3775 = vmatprep.subr.mxu1 %v4525_v0 }
 0x403   : > { %v1267_v39 = vpop.permute.xlu1 %1266  ;;  %v1489_v49 = vpop.permute.xlu0 %1488 }
 0x407   : > { %v1491_v47 = vpop.permute.xlu1 %1490 }
 0x409   : > { %v4105_v37 = vpop.eup %4104 }
 0x40a   : > { %v1098_v38 = vmul.f32 %v4105_v37, %v4101_v30 }
 0x40c   : > { %3768 = vmatmul.mubr.msk.f32.vlgmr.msra.gmra.mxu1 %vm1010_vm2, %v1098_v38 }
 0x40d   : > { %v4107_v40 = vpop.eup %4106  ;;  %3776 = vmatpush3.msra.mxu1 %v1267_v39  ;;  %3777 = vmatprep.mubr.msk.f32.mxu1 %vm4526_vm0, %v4525_v0 }
 0x40e   : > { %v1265_v41 = vmul.f32 %v4107_v40, %v4103_v32  ;;  %3785 = vmatprep.subr.mxu1 %v4525_v0  ;;  %v3631_v32 = vld [vmem:[#allocation4] ss:$0 sm:$0xff] }
 0x410   : > { %3778 = vmatmul.mubr.msk.f32.vlgmr.msra.gmra.mxu1 %vm1010_vm2, %v1265_v41 }
 0x411   : > { %3787 = vmatprep.mubr.msk.f32.mxu1 %vm4526_vm0, %v4525_v0  ;;  %3786 = vmatpush3.msra.mxu1 %v1002_v42 }
 0x412   : > { %3795 = vmatprep.subr.mxu1 %v4525_v0 }
 0x4cc   : > { %v1171_v44 = vpop.f32.mrf.mxu1 }
 0x4cd   : > { %3788 = vmatmul.mubr.msk.f32.vlgmr.msra.gmra.mxu1 %vm1010_vm2, %v1171_v44  ;;  %v2011_v44 = vld [vmem:[%s5245_s10 + $0x18] sm:$0xff] }
 0x4ce   : > { %v3769_v45 = vpop.f32.mrf.mxu1  ;;  %3797 = vmatprep.mubr.msk.f32.mxu1 %vm4526_vm0, %v4525_v0 }
 0x4cf   : > { %v2009_v45 = vld [vmem:[%s5245_s10 + $0x8] sm:$0xff] }
 0x4d0   : > { %v1338_v46 = vpop.f32.mrf.mxu1 }
 0x4d1   : > { %3783 = vmatmul.mubr.msk.f32.vlgmr.msra.gmra.mxu0 %vm1010_vm2, %v1338_v46  ;;  %v2008_v46 = vld [vmem:[%s5245_s10] sm:$0xff] }
 0x4d2   : > { %3791 = vmatpush3.xpose.msk.msra.mxu0 %vm1010_vm2, %v1491_v47  ;;  %v3779_v48 = vpop.f32.mrf.mxu1  ;;  %3792 = vmatprep.mubr.msk.f32.mxu0 %vm4526_vm0, %v4525_v0 }
 0x4d3   : > { %3800 = vmatprep.subr.mxu0 %v4525_v0 }
 0x4d5   : > { %3793 = vmatmul.mubr.msk.f32.vlgmr.msra.gmra.mxu0 %vm1010_vm2, %v1489_v49 }
 0x4d6   : > { %3802 = vmatprep.mubr.msk.f32.mxu0 %vm4526_vm0, %v4525_v0  ;;  %3801 = vmatpush3.msra.mxu0 %v1004_v10  ;;  %v5054_v10 = vld [vmem:[%s5304_s27] sm:$0xff] }
 0x4d7   : > { %3810 = vmatprep.subr.mxu0 %v4525_v0  ;;  %vm2257_vm4 = vcmp.eq.f32.partialorder %v5054_v10, 0.0 }
 0x58d   : > { %v1484_v50 = vpop.f32.mrf.mxu1 }
 0x58f   : > { %v3789_v51 = vpop.f32.mrf.mxu1 }
 0x590   : > { %v3632_v51 = vld [vmem:[#allocation6] ss:$0 sm:$0xff] }
 0x591   : > { %v1411_v52 = vpop.f32.mrf.mxu0 }
 0x592   : > { %v4939_v53 = vadd.f32 %v1484_v50, %v1411_v52 }
 0x593   : > { %v3784_v54 = vpop.f32.mrf.mxu0 }
 0x595   : > { %v1562_v55 = vpop.f32.mrf.mxu0 }
 0x596   : > { %v1566_v56 = vsel %vm1085_vm3, -1e+20, %v1562_v55 }
 0x597   : > { %v1567_v57 = vmul.f32 0.17677669, %v1566_v56  ;;  %v3794_v58 = vpop.f32.mrf.mxu0  ;;  %v2095_v56 = vld [vmem:[%s5247_s12 + $0x18] sm:$0xff] }
 0x598   : > { %v2093_v58 = vld [vmem:[%s5247_s12 + $0x8] sm:$0xff] }
 0x599   : > { %v1568_v59 = vsel %vm1010_vm2, %v1567_v57, -inf }
 0x59a   : > { %1569 = vmax.xlane.f32.xlu1 %v1568_v59  ;;  %v2092_v59 = vld [vmem:[%s5247_s12] sm:$0xff] }
 0x5ab   : > { %1731 = vrot.lane.b32.xlu1 %v4873_v8, %s5263_s1  ;;  %s908_s1 = scalar_lea.vmem %s5303_s0, %s4845_s6  ;;  %s5307_s0 = smov 80  }
 0x5af   : > { %1729 = vrot.lane.b32.xlu1 %v4873_v8, %s5265_s3 }
 0x623   : > { %v1570_v60 = vpop.xlane.xlu1 %1569 }
 0x624   : > { %v1571_v61 = vsub.f32 %v1567_v57, %v1570_v60  ;;  %v2094_v57 = vld [vmem:[%s5247_s12 + $0x10] sm:$0xff]  ;;  %v914_v60 = vld [vmem:[%s908_s1] sm:$0xff] }
 0x626   : > { %v1572_v62 = vmul.f32 1.442695, %v1571_v61  ;;  %v3634_v61 = vld [vmem:[#allocation9] ss:$0 sm:$0xff] }
 0x627   : > { %v1732_v6 = vpop.permute.xlu1 %1731 }
 0x628   : > { %4108 = vpow2.f32 %v1572_v62 }
 0x62b   : > { %v1730_v9 = vpop.permute.xlu1 %1729 }
 0x635   : > { %v4109_v63 = vpop.eup %4108 }
 0x636   : > { %v1574_v1 = vsel %vm1010_vm2, %v4109_v63, 0.0 }
 0x637   : > { %1575 = vadd.xlane.f32.xlu0 %v1574_v1 }
 0x64d   : > { %1579 = vrot.lane.b32.xlu0 %v4873_v8, %s4536_s26  ;;  %s5306_s26 = smov 104  }
 0x6c0   : > { %v1576_v2 = vpop.xlane.xlu0 %1575 }
 0x6c1   : > { %4110 = vrcp.f32 %v1576_v2  ;;  %v3636_v2 = vld [vmem:[#allocation10] ss:$0 sm:$0xff] }
 0x6c4   : > { %v1580_v3 = vpop.permute.xlu0 %1579 }
 0x6c5   : > { %3796 = vmatpush3.msra.mxu1 %v1580_v3 }
 0x6c6   : > { %3805 = vmatprep.subr.mxu1 %v4525_v0 }
 0x6ce   : > { %v4111_v4 = vpop.eup %4110 }
 0x6cf   : > { %v1578_v7 = vmul.f32 %v4111_v4, %v4109_v63 }
 0x6d1   : > { %3798 = vmatmul.mubr.msk.f32.vlgmr.msra.gmra.mxu1 %vm1010_vm2, %v1578_v7 }
 0x6d2   : > { %3806 = vmatpush3.xpose.msk.msra.mxu1 %vm1010_vm2, %v1732_v6  ;;  %3807 = vmatprep.mubr.msk.f32.mxu1 %vm4526_vm0, %v4525_v0 }
 0x6d3   : > { %3815 = vmatprep.subr.mxu1 %v4525_v0 }
 0x6d5   : > { %3808 = vmatmul.mubr.msk.f32.vlgmr.msra.gmra.mxu1 %vm1010_vm2, %v1730_v9 }
 0x6d6   : > { %3817 = vmatprep.mubr.msk.f32.mxu1 %vm4526_vm0, %v4525_v0  ;;  %3816 = vmatpush3.msra.mxu1 %v1005_v24 }
 0x6d7   : > { %3847 = vmatprep.subr.mxu1 %v4525_v0 }
 0x791   : > { %v1651_v11 = vpop.f32.mrf.mxu1 }
 0x792   : > { %3803 = vmatmul.mubr.msk.f32.vlgmr.msra.gmra.mxu0 %vm1010_vm2, %v1651_v11 }
 0x793   : > { %v3799_v12 = vpop.f32.mrf.mxu1  ;;  %3812 = vmatprep.mubr.msk.f32.mxu0 %vm4526_vm0, %v4525_v0 }
 0x795   : > { %v1803_v14 = vpop.f32.mrf.mxu1 }
 0x796   : > { %v1807_v15 = vsel %vm1085_vm3, -1e+20, %v1803_v14 }
 0x797   : > { %v1808_v16 = vmul.f32 0.17677669, %v1807_v15  ;;  %v3809_v17 = vpop.f32.mrf.mxu1 }
 0x799   : > { %v1809_v18 = vsel %vm1010_vm2, %v1808_v16, -inf }
 0x79a   : > { %1810 = vmax.xlane.f32.xlu0 %v1809_v18 }
 0x7b0   : > { %1820 = vrot.lane.b32.xlu0 %v4873_v8, %s4537_s25 }
 0x823   : > { %v1811_v19 = vpop.xlane.xlu0 %1810 }
 0x824   : > { %v1812_v20 = vsub.f32 %v1808_v16, %v1811_v19 }
 0x826   : > { %v1813_v21 = vmul.f32 1.442695, %v1812_v20 }
 0x827   : > { %v1821_v22 = vpop.permute.xlu0 %1820 }
 0x828   : > { %4112 = vpow2.f32 %v1813_v21  ;;  %3811 = vmatpush3.msra.mxu0 %v1821_v22 }
 0x829   : > { %3820 = vmatprep.subr.mxu0 %v4525_v0 }
 0x835   : > { %v4113_v23 = vpop.eup %4112 }
 0x836   : > { %v1815_v13 = vsel %vm1010_vm2, %v4113_v23, 0.0 }
 0x837   : > { %1816 = vadd.xlane.f32.xlu1 %v1815_v13 }
 0x852   : > { %v1724_v25 = vpop.f32.mrf.mxu0 }
 0x853   : > { %v1728_v8 = vadd.f32 %v1724_v25, %v4939_v53  ;;  %v3633_v53 = vld [vmem:[#allocation7] ss:$0 sm:$0xff] }
 0x854   : > { %v3804_v26 = vpop.f32.mrf.mxu0 }
 0x8c0   : > { %v1817_v27 = vpop.xlane.xlu1 %1816 }
 0x8c1   : > { %4114 = vrcp.f32 %v1817_v27 }
 0x8ce   : > { %v4115_v28 = vpop.eup %4114 }
 0x8cf   : > { %v1819_v29 = vmul.f32 %v4115_v28, %v4113_v23 }
 0x8d1   : > { %3813 = vmatmul.mubr.msk.f32.vlgmr.msra.gmra.mxu0 %vm1010_vm2, %v1819_v29 }
 0x8d2   : > { %3828 = vmatprep.mubr.msk.f32.mxu0 %vm4526_vm0, %v4525_v0  ;;  %3821 = vmatpush3.msra.mxu0 %v2011_v44 }
 0x8d3   : > { %3822 = vmatprep.subr.mxu0 %v4525_v0 }
 0x991   : > { %v1892_v30 = vpop.f32.mrf.mxu0 }
 0x992   : > { %3818 = vmatmul.mubr.msk.f32.vlgmr.msra.gmra.mxu1 %vm1010_vm2, %v1892_v30 }
 0x993   : > { %v3814_v31 = vpop.f32.mrf.mxu0  ;;  %3849 = vmatprep.mubr.msk.f32.mxu1 %vm4526_vm0, %v4525_v0 }
 0xa52   : > { %v1965_v33 = vpop.f32.mrf.mxu1 }
 0xa53   : > { %v1969_v34 = vadd.f32 %v1965_v33, %v1728_v8 }
 0xa54   : > { %v3819_v35 = vpop.f32.mrf.mxu1 }
 0xa55   : > { %v1976_v36 = vadd.f32 %v3631_v32, %v1969_v34 }
 0xa57   : > { %v1977_v37 = vadd.f32 %v1976_v36, %v4865_v5  ;;  %v2010_v5 = vld [vmem:[%s5245_s10 + $0x10] sm:$0xff] }
 0xa58   : > { %3823 = vmatpush3.msra.mxu0 %v2010_v5 }
 0xa59   : > { %v1980_v38 = vsel %vm928_vm1, %v1977_v37, 0.0  ;;  %3824 = vmatprep.subr.mxu0 %v4525_v0 }
 0xa5a   : > { %1981 = vadd.xlane.f32.xlu1 %v1980_v38  ;;  %3825 = vmatpush3.msra.mxu0 %v2009_v45  ;;  %v2176_v38 = vld [vmem:[%s5249_s14] sm:$0xff] }
 0xa5b   : > { %3826 = vmatprep.subr.mxu0 %v4525_v0 }
 0xa5c   : > { %3827 = vmatpush3.msra.mxu0 %v2008_v46 }
 0xa5d   : > { %3831 = vmatprep.subr.mxu0 %v4525_v0 }
 0xae3   : > { %v1982_v39 = vpop.xlane.xlu1 %1981 }
 0xae4   : > { %v1984_v40 = vmul.f32 0.03125, %v1982_v39  ;;  %v2177_v39 = vld [vmem:[%s5249_s14 + $0x8] sm:$0xff] }
 0xae6   : > { %v1985_v41 = vsub.f32 %v1977_v37, %v1984_v40 }
 0xae8   : > { %v1986_v42 = vmul.f32 %v1985_v41, %v1985_v41 }
 0xaea   : > { %v1987_v43 = vsel %vm928_vm1, %v1986_v42, 0.0 }
 0xaeb   : > { %1988 = vadd.xlane.f32.xlu1 %v1987_v43 }
 0xb74   : > { %v1989_v47 = vpop.xlane.xlu1 %1988 }
 0xb75   : > { %v1990_v48 = vmul.f32 0.03125, %v1989_v47 }
 0xb77   : > { %v1991_v49 = vadd.f32 1e-05, %v1990_v48 }
 0xb79   : > { %4116 = vrsqrt.f32 %v1991_v49 }
 0xb86   : > { %v4117_v50 = vpop.eup %4116 }
 0xb87   : > { %v1993_v52 = vmul.f32 %v4117_v50, %v1985_v41 }
 0xb89   : > { %v2000_v54 = vmul.f32 %v3632_v51, %v1993_v52 }
 0xb8b   : > { %v5002_v55 = vadd.f32 %v3633_v53, %v2000_v54 }
 0xb8d   : > { %3829 = vmatmul.mubr.msk.f32.vlgmr.msra.gmra.mxu0 %vm928_vm1, %v5002_v55 }
 0xb8e   : > { %3832 = vmatpush3.msra.mxu0 %v2095_v56  ;;  %3839 = vmatprep.mubr.msk.f32.mxu0 %vm4526_vm0, %v4525_v0 }
 0xb8f   : > { %3833 = vmatprep.subr.mxu0 %v4525_v0 }
 0xb90   : > { %3834 = vmatpush3.msra.mxu0 %v2094_v57 }
 0xb91   : > { %3835 = vmatprep.subr.mxu0 %v4525_v0 }
 0xb92   : > { %3836 = vmatpush3.msra.mxu0 %v2093_v58 }
 0xb93   : > { %3837 = vmatprep.subr.mxu0 %v4525_v0 }
 0xb94   : > { %3838 = vmatpush3.msra.mxu0 %v2092_v59 }
 0xb95   : > { %3840 = vmatmul.mubr.msk.f32.vlgmr.msra.gmra.mxu0 %vm928_vm1, %v914_v60  ;;  %3842 = vmatprep.subr.mxu0 %v4525_v0 }
 0xb96   : > { %3844 = vmatprep.mubr.msk.f32.mxu0 %vm4526_vm0, %v4525_v0 }
 0xc4d   : > { %v2088_v62 = vpop.f32.mrf.mxu0 }
 0xc4e   : > { %v5031_v63 = vadd.f32 %v3634_v61, %v2088_v62 }
 0xc4f   : > { %v3830_v1 = vpop.f32.mrf.mxu0 }
 0xc50   : > { %2347 = vrot.lane.b32.xlu0 %v5031_v63, %s4527_s7 }
 0xc55   : > { %v2172_v3 = vpop.f32.mrf.mxu0 }
 0xc56   : > { %v5035_v4 = vadd.f32 %v3636_v2, %v2172_v3 }
 0xc57   : > { %v3841_v6 = vpop.f32.mrf.mxu0 }
 0xc58   : > { %2349 = vrot.lane.b32.xlu1 %v5035_v4, %s4527_s7  ;;  %3843 = vmatpush3.xpose.msk.msra.mxu0 %vm1010_vm2, %v5035_v4  ;;  %v2178_v6 = vld [vmem:[%s5249_s14 + $0x10] sm:$0xff]  ;;  %s5308_s7 = smov 72  }
 0xc59   : > { %3852 = vmatprep.subr.mxu0 %v4525_v0 }
 0xc5b   : > { %3845 = vmatmul.mubr.msk.f32.vlgmr.msra.gmra.mxu0 %vm1010_vm2, %v5031_v63 }
 0xc5c   : > { %3854 = vmatprep.mubr.msk.f32.mxu0 %vm4526_vm0, %v4525_v0 }
 0xcc2   : > { %v2348_v9 = vpop.permute.xlu0 %2347 }
 0xcca   : > { %v2350_v7 = vpop.permute.xlu1 %2349 }
 0xccb   : > { %3853 = vmatpush3.xpose.msk.msra.mxu0 %vm1010_vm2, %v2350_v7 }
 0xccc   : > { %3862 = vmatprep.subr.mxu0 %v4525_v0 }
 0xcce   : > { %3855 = vmatmul.mubr.msk.f32.vlgmr.msra.gmra.mxu0 %vm1010_vm2, %v2348_v9 }
 0xccf   : > { %3864 = vmatprep.mubr.msk.f32.mxu0 %vm4526_vm0, %v4525_v0  ;;  %3863 = vmatpush3.msra.mxu0 %v2177_v39 }
 0xcd0   : > { %3872 = vmatprep.subr.mxu0 %v4525_v0 }
 0xd1b   : > { %v2253_v11 = vpop.f32.mrf.mxu0 }
 0xd1c   : > { %v2258_v12 = vsel %vm2257_vm4, -1e+20, %v2253_v11 }
 0xd1d   : > { %v2259_v14 = vmul.f32 0.17677669, %v2258_v12  ;;  %v3846_v15 = vpop.f32.mrf.mxu0 }
 0xd1f   : > { %v2260_v16 = vsel %vm1010_vm2, %v2259_v14, -inf }
 0xd20   : > { %2261 = vmax.xlane.f32.xlu0 %v2260_v16 }
 0xd8e   : > { %v2421_v17 = vpop.f32.mrf.mxu0 }
 0xd8f   : > { %v2425_v18 = vsel %vm2257_vm4, -1e+20, %v2421_v17 }
 0xd90   : > { %v2426_v19 = vmul.f32 0.17677669, %v2425_v18  ;;  %v3856_v20 = vpop.f32.mrf.mxu0 }
 0xd92   : > { %v2427_v21 = vsel %vm1010_vm2, %v2426_v19, -inf }
 0xd93   : > { %2428 = vmax.xlane.f32.xlu1 %v2427_v21 }
 0xda4   : > { %2438 = vrot.lane.b32.xlu1 %v5035_v4, %s4529_s8  ;;  %s5305_s8 = smov 96  }
 0xda8   : > { %2662 = vrot.lane.b32.xlu1 %v5035_v4, %s4533_s28 }
 0xda9   : > { %v2262_v22 = vpop.xlane.xlu0 %2261 }
 0xdaa   : > { %v2263_v23 = vsub.f32 %v2259_v14, %v2262_v22  ;;  %v2179_v22 = vld [vmem:[%s5249_s14 + $0x18] sm:$0xff] }
 0xdac   : > { %v2264_v13 = vmul.f32 1.442695, %v2263_v23 }
 0xdae   : > { %4118 = vpow2.f32 %v2264_v13 }
 0xdbb   : > { %v4119_v24 = vpop.eup %4118 }
 0xdbc   : > { %v2266_v25 = vsel %vm1010_vm2, %v4119_v24, 0.0 }
 0xdbd   : > { %2267 = vadd.xlane.f32.xlu0 %v2266_v25 }
 0xe1c   : > { %v2429_v8 = vpop.xlane.xlu1 %2428 }
 0xe1d   : > { %v2430_v26 = vsub.f32 %v2426_v19, %v2429_v8 }
 0xe1f   : > { %v2431_v27 = vmul.f32 1.442695, %v2430_v26 }
 0xe20   : > { %v2439_v35 = vpop.permute.xlu1 %2438 }
 0xe21   : > { %4120 = vpow2.f32 %v2431_v27 }
 0xe24   : > { %v2663_v43 = vpop.permute.xlu1 %2662 }
 0xe2e   : > { %v4121_v28 = vpop.eup %4120 }
 0xe2f   : > { %v2433_v29 = vsel %vm1010_vm2, %v4121_v28, 0.0 }
 0xe30   : > { %2434 = vadd.xlane.f32.xlu0 %v2433_v29 }
 0xe46   : > { %2271 = vrot.lane.b32.xlu0 %v5035_v4, %s5305_s8  ;;  %v2268_v30 = vpop.xlane.xlu0 %2267 }
 0xe47   : > { %4122 = vrcp.f32 %v2268_v30 }
 0xe4a   : > { %2660 = vrot.lane.b32.xlu0 %v5031_v63, %s4533_s28 }
 0xe54   : > { %v4123_v32 = vpop.eup %4122 }
 0xe55   : > { %v2270_v34 = vmul.f32 %v4123_v32, %v4119_v24 }
 0xeb9   : > { %v2435_v31 = vpop.xlane.xlu0 %2434 }
 0xeba   : > { %4124 = vrcp.f32 %v2435_v31 }
 0xebd   : > { %v2272_v33 = vpop.permute.xlu0 %2271 }
 0xebe   : > { %3848 = vmatpush3.msra.mxu1 %v2272_v33 }
 0xebf   : > { %3850 = vmatmul.mubr.msk.f32.vlgmr.msra.gmra.mxu1 %vm1010_vm2, %v2270_v34  ;;  %3857 = vmatprep.subr.mxu1 %v4525_v0 }
 0xec0   : > { %3858 = vmatpush3.msra.mxu1 %v2439_v35  ;;  %3859 = vmatprep.mubr.msk.f32.mxu1 %vm4526_vm0, %v4525_v0 }
 0xec1   : > { %3867 = vmatprep.subr.mxu1 %v4525_v0  ;;  %v2661_v5 = vpop.permute.xlu0 %2660 }
 0xec7   : > { %v4125_v36 = vpop.eup %4124 }
 0xec8   : > { %v2437_v37 = vmul.f32 %v4125_v36, %v4121_v28  ;;  %v3654_v28 = vld [vmem:[#allocation12] ss:$0 sm:$0xff] }
 0xeca   : > { %3860 = vmatmul.mubr.msk.f32.vlgmr.msra.gmra.mxu1 %vm1010_vm2, %v2437_v37 }
 0xecb   : > { %3869 = vmatprep.mubr.msk.f32.mxu1 %vm4526_vm0, %v4525_v0  ;;  %3868 = vmatpush3.msra.mxu1 %v2176_v38 }
 0xecc   : > { %3877 = vmatprep.subr.mxu1 %v4525_v0 }
 0xf7f   : > { %v2343_v40 = vpop.f32.mrf.mxu1 }
 0xf80   : > { %3870 = vmatmul.mubr.msk.f32.vlgmr.msra.gmra.mxu1 %vm1010_vm2, %v2343_v40  ;;  %v3182_v40 = vld [vmem:[%s5253_s18 + $0x18] sm:$0xff] }
 0xf81   : > { %v3851_v41 = vpop.f32.mrf.mxu1  ;;  %3879 = vmatprep.mubr.msk.f32.mxu1 %vm4526_vm0, %v4525_v0 }
 0xf82   : > { %v3181_v41 = vld [vmem:[%s5253_s18 + $0x10] sm:$0xff] }
 0xf8a   : > { %v2510_v42 = vpop.f32.mrf.mxu1 }
 0xf8b   : > { %3865 = vmatmul.mubr.msk.f32.vlgmr.msra.gmra.mxu0 %vm1010_vm2, %v2510_v42  ;;  %v3179_v42 = vld [vmem:[%s5253_s18] sm:$0xff] }
 0xf8c   : > { %3873 = vmatpush3.xpose.msk.msra.mxu0 %vm1010_vm2, %v2663_v43  ;;  %v3861_v44 = vpop.f32.mrf.mxu1  ;;  %3874 = vmatprep.mubr.msk.f32.mxu0 %vm4526_vm0, %v4525_v0  ;;  %v3279_v43 = vld [vmem:[%s5255_s20 + $0x78] sm:$0xff] }
 0xf8d   : > { %3882 = vmatprep.subr.mxu0 %v4525_v0  ;;  %v3278_v44 = vld [vmem:[%s5255_s20 + $0x70] sm:$0xff] }
 0xf8f   : > { %3875 = vmatmul.mubr.msk.f32.vlgmr.msra.gmra.mxu0 %vm1010_vm2, %v2661_v5  ;;  %v3277_v5 = vld [vmem:[%s5255_s20 + $0x68] sm:$0xff] }
 0xf90   : > { %3884 = vmatprep.mubr.msk.f32.mxu0 %vm4526_vm0, %v4525_v0  ;;  %3883 = vmatpush3.msra.mxu0 %v2178_v6  ;;  %v3264_v6 = vld [vmem:[%s5255_s20] sm:$0xff] }
 0xf91   : > { %3892 = vmatprep.subr.mxu0 %v4525_v0 }
0x1040   : > { %v2656_v45 = vpop.f32.mrf.mxu1 }
0x1042   : > { %v3871_v46 = vpop.f32.mrf.mxu1 }
0x1043   : > { %v3275_v46 = vld [vmem:[%s5255_s20 + $0x58] sm:$0xff] }
0x104b   : > { %v2583_v47 = vpop.f32.mrf.mxu0 }
0x104c   : > { %v2657_v48 = vadd.f32 %v2656_v45, %v2583_v47  ;;  %v3276_v45 = vld [vmem:[%s5255_s20 + $0x60] sm:$0xff]  ;;  %v3274_v47 = vld [vmem:[%s5255_s20 + $0x50] sm:$0xff] }
0x104d   : > { %v3866_v49 = vpop.f32.mrf.mxu0 }
0x104e   : > { %v3272_v49 = vld [vmem:[%s5255_s20 + $0x40] sm:$0xff] }
0x104f   : > { %v2734_v50 = vpop.f32.mrf.mxu0 }
0x1050   : > { %v2738_v51 = vsel %vm2257_vm4, -1e+20, %v2734_v50  ;;  %v3271_v50 = vld [vmem:[%s5255_s20 + $0x38] sm:$0xff] }
0x1051   : > { %v2739_v52 = vmul.f32 0.17677669, %v2738_v51  ;;  %v3876_v53 = vpop.f32.mrf.mxu0  ;;  %v3270_v51 = vld [vmem:[%s5255_s20 + $0x30] sm:$0xff] }
0x1052   : > { %v3268_v53 = vld [vmem:[%s5255_s20 + $0x20] sm:$0xff] }
0x1053   : > { %v2740_v54 = vsel %vm1010_vm2, %v2739_v52, -inf }
0x1054   : > { %2741 = vmax.xlane.f32.xlu1 %v2740_v54  ;;  %v3267_v54 = vld [vmem:[%s5255_s20 + $0x18] sm:$0xff] }
0x1065   : > { %2903 = vrot.lane.b32.xlu1 %v5035_v4, %s5306_s26 }
0x1069   : > { %2901 = vrot.lane.b32.xlu1 %v5031_v63, %s5306_s26 }
0x10dd   : > { %v2742_v56 = vpop.xlane.xlu1 %2741 }
0x10de   : > { %v2743_v57 = vsub.f32 %v2739_v52, %v2742_v56  ;;  %v3269_v52 = vld [vmem:[%s5255_s20 + $0x28] sm:$0xff] }
0x10e0   : > { %v2744_v58 = vmul.f32 1.442695, %v2743_v57 }
0x10e1   : > { %v2904_v2 = vpop.permute.xlu1 %2903 }
0x10e2   : > { %4126 = vpow2.f32 %v2744_v58 }
0x10e5   : > { %v2902_v3 = vpop.permute.xlu1 %2901 }
0x10ef   : > { %v4127_v59 = vpop.eup %4126 }
0x10f0   : > { %v2746_v60 = vsel %vm1010_vm2, %v4127_v59, 0.0 }
0x10f1   : > { %2747 = vadd.xlane.f32.xlu0 %v2746_v60  ;;  %v3655_v60 = vld [vmem:[#allocation13] ss:$0 sm:$0xff] }
0x1107   : > { %2751 = vrot.lane.b32.xlu0 %v5035_v4, %s5307_s0  ;;  %s912_s0 = scalar_lea.vmem %s5259_s24, %s4845_s6 }
0x117a   : > { %v2748_v61 = vpop.xlane.xlu0 %2747 }
0x117b   : > { %4128 = vrcp.f32 %v2748_v61 }
0x117e   : > { %v2752_v62 = vpop.permute.xlu0 %2751 }
0x117f   : > { %3878 = vmatpush3.msra.mxu1 %v2752_v62  ;;  %v3656_v62 = vld [vmem:[#allocation15] ss:$0 sm:$0xff] }
0x1180   : > { %3887 = vmatprep.subr.mxu1 %v4525_v0 }
0x1188   : > { %v4129_v1 = vpop.eup %4128 }
0x1189   : > { %v2750_v63 = vmul.f32 %v4129_v1, %v4127_v59 }
0x118b   : > { %3880 = vmatmul.mubr.msk.f32.vlgmr.msra.gmra.mxu1 %vm1010_vm2, %v2750_v63  ;;  %v3266_v63 = vld [vmem:[%s5255_s20 + $0x10] sm:$0xff] }
0x118c   : > { %3888 = vmatpush3.xpose.msk.msra.mxu1 %vm1010_vm2, %v2904_v2  ;;  %3889 = vmatprep.mubr.msk.f32.mxu1 %vm4526_vm0, %v4525_v0 }
0x118d   : > { %3897 = vmatprep.subr.mxu1 %v4525_v0 }
0x118f   : > { %3890 = vmatmul.mubr.msk.f32.vlgmr.msra.gmra.mxu1 %vm1010_vm2, %v2902_v3  ;;  %v3265_v3 = vld [vmem:[%s5255_s20 + $0x8] sm:$0xff] }
0x1190   : > { %3899 = vmatprep.mubr.msk.f32.mxu1 %vm4526_vm0, %v4525_v0  ;;  %3898 = vmatpush3.msra.mxu1 %v2179_v22 }
0x1191   : > { %3913 = vmatprep.subr.mxu1 %v4525_v0 }
0x124b   : > { %v2823_v7 = vpop.f32.mrf.mxu1 }
0x124c   : > { %3885 = vmatmul.mubr.msk.f32.vlgmr.msra.gmra.mxu0 %vm1010_vm2, %v2823_v7  ;;  %v3657_v7 = vld [vmem:[#allocation16] ss:$0 sm:$0xff] }
0x124d   : > { %v3881_v9 = vpop.f32.mrf.mxu1  ;;  %3894 = vmatprep.mubr.msk.f32.mxu0 %vm4526_vm0, %v4525_v0 }
0x124f   : > { %v2975_v11 = vpop.f32.mrf.mxu1 }
0x1250   : > { %v2979_v12 = vsel %vm2257_vm4, -1e+20, %v2975_v11 }
0x1251   : > { %v2980_v14 = vmul.f32 0.17677669, %v2979_v12  ;;  %v3891_v15 = vpop.f32.mrf.mxu1 }
0x1252   : > { %v3659_v15 = vld [vmem:[#allocation18] ss:$0 sm:$0xff] }
0x1253   : > { %v2981_v16 = vsel %vm1010_vm2, %v2980_v14, -inf }
0x1254   : > { %2982 = vmax.xlane.f32.xlu0 %v2981_v16 }
0x126a   : > { %2992 = vrot.lane.b32.xlu0 %v5035_v4, %s5308_s7 }
0x12dd   : > { %v2983_v17 = vpop.xlane.xlu0 %2982 }
0x12de   : > { %v2984_v18 = vsub.f32 %v2980_v14, %v2983_v17 }
0x12e0   : > { %v2985_v19 = vmul.f32 1.442695, %v2984_v18 }
0x12e1   : > { %v2993_v20 = vpop.permute.xlu0 %2992 }
0x12e2   : > { %4130 = vpow2.f32 %v2985_v19  ;;  %3893 = vmatpush3.msra.mxu0 %v2993_v20 }
0x12e3   : > { %3902 = vmatprep.subr.mxu0 %v4525_v0 }
0x12ef   : > { %v4131_v21 = vpop.eup %4130 }
0x12f0   : > { %v2987_v10 = vsel %vm1010_vm2, %v4131_v21, 0.0 }
0x12f1   : > { %2988 = vadd.xlane.f32.xlu1 %v2987_v10 }
0x130c   : > { %v2896_v23 = vpop.f32.mrf.mxu0 }
0x130d   : > { %v2900_v13 = vadd.f32 %v2896_v23, %v2657_v48  ;;  %v3273_v48 = vld [vmem:[%s5255_s20 + $0x48] sm:$0xff] }
0x130e   : > { %v3886_v4 = vpop.f32.mrf.mxu0 }
0x137a   : > { %v2989_v24 = vpop.xlane.xlu1 %2988 }
0x137b   : > { %4132 = vrcp.f32 %v2989_v24 }
0x1388   : > { %v4133_v25 = vpop.eup %4132 }
0x1389   : > { %v2991_v8 = vmul.f32 %v4133_v25, %v4131_v21 }
0x138b   : > { %3895 = vmatmul.mubr.msk.f32.vlgmr.msra.gmra.mxu0 %vm1010_vm2, %v2991_v8  ;;  %v3660_v8 = vld [vmem:[#allocation19] ss:$0 sm:$0xff] }
0x138c   : > { %3910 = vmatprep.mubr.msk.f32.mxu0 %vm4526_vm0, %v4525_v0  ;;  %3903 = vmatpush3.msra.mxu0 %v3182_v40 }
0x138d   : > { %3904 = vmatprep.subr.mxu0 %v4525_v0 }
0x138e   : > { %3905 = vmatpush3.msra.mxu0 %v3181_v41 }
0x138f   : > { %3906 = vmatprep.subr.mxu0 %v4525_v0 }
0x144b   : > { %v3064_v26 = vpop.f32.mrf.mxu0 }
0x144c   : > { %3900 = vmatmul.mubr.msk.f32.vlgmr.msra.gmra.mxu1 %vm1010_vm2, %v3064_v26 }
0x144d   : > { %v3896_v27 = vpop.f32.mrf.mxu0  ;;  %3945 = vmatprep.mubr.msk.f32.mxu1 %vm4526_vm0, %v4525_v0  ;;  %3914 = vmatpush3.msra.mxu1 %v3279_v43 }
0x144e   : > { %3915 = vmatprep.subr.mxu1 %v4525_v0  ;;  %v3661_v27 = vld [vmem:[#allocation21] ss:$0 sm:$0xff] }
0x144f   : > { %3916 = vmatpush3.msra.mxu1 %v3278_v44 }
0x1450   : > { %3917 = vmatprep.subr.mxu1 %v4525_v0 }
0x1451   : > { %3918 = vmatpush3.msra.mxu1 %v3277_v5 }
0x1452   : > { %3919 = vmatprep.subr.mxu1 %v4525_v0 }
0x1453   : > { %3920 = vmatpush3.msra.mxu1 %v3276_v45 }
0x1454   : > { %3921 = vmatprep.subr.mxu1 %v4525_v0 }
0x1455   : > { %3922 = vmatpush3.msra.mxu1 %v3275_v46 }
0x1456   : > { %3923 = vmatprep.subr.mxu1 %v4525_v0 }
0x1457   : > { %3924 = vmatpush3.msra.mxu1 %v3274_v47 }
0x1458   : > { %3925 = vmatprep.subr.mxu1 %v4525_v0 }
0x1459   : > { %3926 = vmatpush3.msra.mxu1 %v3273_v48 }
0x145a   : > { %3927 = vmatprep.subr.mxu1 %v4525_v0 }
0x145b   : > { %3928 = vmatpush3.msra.mxu1 %v3272_v49 }
0x145c   : > { %3929 = vmatprep.subr.mxu1 %v4525_v0 }
0x145d   : > { %3930 = vmatpush3.msra.mxu1 %v3271_v50 }
0x145e   : > { %3931 = vmatprep.subr.mxu1 %v4525_v0 }
0x145f   : > { %3932 = vmatpush3.msra.mxu1 %v3270_v51 }
0x1460   : > { %3933 = vmatprep.subr.mxu1 %v4525_v0 }
0x1461   : > { %3934 = vmatpush3.msra.mxu1 %v3269_v52 }
0x1462   : > { %3935 = vmatprep.subr.mxu1 %v4525_v0 }
0x1463   : > { %3936 = vmatpush3.msra.mxu1 %v3268_v53 }
0x1464   : > { %3937 = vmatprep.subr.mxu1 %v4525_v0 }
0x1465   : > { %3938 = vmatpush3.msra.mxu1 %v3267_v54 }
0x1466   : > { %3939 = vmatprep.subr.mxu1 %v4525_v0 }
0x1467   : > { %3940 = vmatpush3.msra.mxu1 %v3266_v63 }
0x1468   : > { %3941 = vmatprep.subr.mxu1 %v4525_v0 }
0x1469   : > { %3942 = vmatpush3.msra.mxu1 %v3265_v3 }
0x146a   : > { %3943 = vmatprep.subr.mxu1 %v4525_v0 }
0x146b   : > { %3944 = vmatpush3.msra.mxu1 %v3264_v6 }
0x150c   : > { %v3137_v29 = vpop.f32.mrf.mxu1 }
0x150d   : > { %v3141_v30 = vadd.f32 %v3137_v29, %v2900_v13 }
0x150e   : > { %v3901_v31 = vpop.f32.mrf.mxu1 }
0x150f   : > { %v3148_v32 = vadd.f32 %v3654_v28, %v3141_v30 }
0x1511   : > { %v3149_v33 = vadd.f32 %v3148_v32, %v5002_v55  ;;  %v3180_v55 = vld [vmem:[%s5253_s18 + $0x8] sm:$0xff] }
0x1512   : > { %3907 = vmatpush3.msra.mxu0 %v3180_v55 }
0x1513   : > { %v3152_v34 = vsel %vm928_vm1, %v3149_v33, 0.0  ;;  %3908 = vmatprep.subr.mxu0 %v4525_v0 }
0x1514   : > { %3153 = vadd.xlane.f32.xlu1 %v3152_v34  ;;  %3909 = vmatpush3.msra.mxu0 %v3179_v42 }
0x159d   : > { %v3154_v35 = vpop.xlane.xlu1 %3153 }
0x159e   : > { %v3155_v36 = vmul.f32 0.03125, %v3154_v35 }
0x15a0   : > { %v3156_v37 = vsub.f32 %v3149_v33, %v3155_v36 }
0x15a2   : > { %v3157_v38 = vmul.f32 %v3156_v37, %v3156_v37 }
0x15a4   : > { %v3158_v39 = vsel %vm928_vm1, %v3157_v38, 0.0 }
0x15a5   : > { %3159 = vadd.xlane.f32.xlu1 %v3158_v39 }
0x162e   : > { %v3160_v56 = vpop.xlane.xlu1 %3159 }
0x162f   : > { %v3161_v57 = vmul.f32 0.03125, %v3160_v56 }
0x1631   : > { %v3162_v58 = vadd.f32 1e-05, %v3161_v57 }
0x1633   : > { %4134 = vrsqrt.f32 %v3162_v58 }
0x1640   : > { %v4135_v59 = vpop.eup %4134 }
0x1641   : > { %v3164_v61 = vmul.f32 %v4135_v59, %v3156_v37 }
0x1643   : > { %v3171_v1 = vmul.f32 %v3655_v60, %v3164_v61 }
0x1645   : > { %v3178_v2 = vadd.f32 %v3656_v62, %v3171_v1 }
0x1647   : > { %3911 = vmatmul.mubr.msk.f32.vlgmr.msra.gmra.mxu0 %vm928_vm1, %v3178_v2 }
0x1707   : > { %v3259_v9 = vpop.f32.mrf.mxu0 }
0x1708   : > { %v3260_v11 = vadd.f32 %v3657_v7, %v3259_v9 }
0x1709   : > { %v3912_v12 = vpop.f32.mrf.mxu0 }
0x170a   : > { %v3263_v14 = vmax.f32 %v3260_v11, 0.0 }
0x170c   : > { %3946 = vmatmul.mubr.f32.vlgmr.msra.gmra.mxu1 %v3263_v14 }
0x17cc   : > { %v3353_v16 = vpop.f32.mrf.mxu1 }
0x17cd   : > { %v3354_v17 = vadd.f32 %v3659_v15, %v3353_v16 }
0x17ce   : > { %v3947_v18 = vpop.f32.mrf.mxu1 }
0x17cf   : > { %v3357_v19 = vadd.f32 %v3354_v17, %v3178_v2 }
0x17d1   : > { %v3360_v20 = vsel %vm928_vm1, %v3357_v19, 0.0 }
0x17d2   : > { %3361 = vadd.xlane.f32.xlu1 %v3360_v20 }
0x185b   : > { %v3362_v21 = vpop.xlane.xlu1 %3361 }
0x185c   : > { %v3363_v10 = vmul.f32 0.03125, %v3362_v21 }
0x185e   : > { %v3364_v22 = vsub.f32 %v3357_v19, %v3363_v10 }
0x1860   : > { %v3365_v0 = vmul.f32 %v3364_v22, %v3364_v22 }
0x1862   : > { %v3366_v23 = vsel %vm928_vm1, %v3365_v0, 0.0 }
0x1863   : > { %3367 = vadd.xlane.f32.xlu1 %v3366_v23 }
0x18ec   : > { %v3368_v13 = vpop.xlane.xlu1 %3367 }
0x18ed   : > { %v3369_v4 = vmul.f32 0.03125, %v3368_v13 }
0x18ef   : > { %v3370_v24 = vadd.f32 1e-05, %v3369_v4 }
0x18f1   : > { %4136 = vrsqrt.f32 %v3370_v24 }
0x18fe   : > { %v4137_v25 = vpop.eup %4136 }
0x18ff   : > { %v3372_v26 = vmul.f32 %v4137_v25, %v3364_v22 }
0x1901   : > { %v3379_v28 = vmul.f32 %v3660_v8, %v3372_v26 }
0x1903   : > { %v3386_v29 = vadd.f32 %v3661_v27, %v3379_v28 }
0x1905   : > { %3387 = vst.msk [vmem:[%s912_s0] sm:$0xff] %vm928_vm1, %v3386_v29 }
0x1906 PF: > { %s41_s5 = sadd.s32 1, %s4510_s5  }
0x1907   : > { %p38_p6 = scmp.ge.s32.totalorder %s41_s5, 4  }
0x1909   :  { %40 = sbr.rel (!%p38_p6) target bundleno = 18 (0x12), region = 202 }
0x190e   :  { %3407 = vsyncpa [#allocation3], 1 }
0x190f   :  { %3409 = vsyncpa [#allocation3 + $0x1], 1 }
0x1910   :  { %3410 = vsyncpa [#allocation5], 1 }
0x1911   :  { %3411 = vsyncpa [#allocation8], 1 }
0x1912   :  { %3412 = vsyncpa [#allocation11], 1 }
0x1913   :  { %3413 = vsyncpa [#allocation14], 1 }
0x1914   :  { %3414 = vsyncpa [#allocation17], 1 }
0x1915   :  { %3415 = vsyncpa [#allocation20], 1 }

</bundles_post_ra>
